<compile_context>
chip_gen: v6e
topology: v6e:2x2x1
jax: 0.10.0
libtpu: 0.0.40
codegen_flags: <defaults>
</compile_context>

<pallas_src>
import functools

import numpy as np
import jax
import jax.numpy as jnp
from jax.experimental import pallas as pl
from jax.experimental.pallas import tpu as pltpu


def _round_up(x, m):
    return (x + m - 1) // m * m


def _shift_left(x, s):
    """y[:, m] = x[:, (m + s) mod P] via an XLU lane rotation (wrap -> junk)."""
    if s == 0:
        return x
    return pltpu.roll(x, x.shape[1] - s, axis=1)


def _conv_relu_pool(x, H, W, w_mat, b_col, sel):
    """Conv2d(3x3, valid) -> ReLU -> MaxPool2d(2,2) on one image (channel-major).

    x     : (Cin, P)       P = H*W rounded up to a multiple of 128 lanes.
    w_mat : (Cout, 9*Cin)  column index = (dh*3 + dw)*Cin + ci.
    b_col : (Cout, 1)
    sel   : (P, P_next)    one-hot compaction: row 2r'*W + 2c' -> col r'*Wp + c'.
    """
    # im2col: tap (dh, dw) for output position m reads x[:, m + dh*W + dw].
    taps = [_shift_left(x, dh * W + dw) for dh in range(3) for dw in range(3)]
    patch = jnp.concatenate(taps, axis=0)                       # (9*Cin, P)

    acc = jnp.dot(w_mat, patch, preferred_element_type=jnp.float32)
    acc = jnp.maximum(acc + b_col, 0.0)                         # bias + ReLU

    # 2x2 max pool, stride 2 (floor semantics): pairwise maxes via lane rolls,
    # then one exact one-hot matmul keeps only the (2r', 2c') anchors.
    v = jnp.maximum(acc, _shift_left(acc, W))                   # rows r, r+1
    hmax = jnp.maximum(v, _shift_left(v, 1))                    # cols c, c+1
    pooled = jnp.dot(hmax, sel, preferred_element_type=jnp.float32)
    return pooled, (H - 2) // 2, (W - 2) // 2


def _encoder_kernel(H, W, x_ref, w1_ref, w2_ref, w3_ref, b_ref,
                    s1_ref, s2_ref, s3_ref, o_ref):
    # x_ref : (1, Cin, P1)   one image, channel-major flattened (NCHW order)
    # wX_ref: (32, 9*Cin_l)  im2col-folded conv weights of layer l
    # b_ref : (3, 32, 1)     per-layer bias columns
    # sX_ref: (P_l, P_{l+1}) one-hot pool-compaction matrices
    # o_ref : (1, 32, P4)    block-3 output, channel-major, lane-dense
    x = x_ref[0]
    x, H, W = _conv_relu_pool(x, H, W, w1_ref[...], b_ref[0], s1_ref[...])
    x, H, W = _conv_relu_pool(x, H, W, w2_ref[...], b_ref[1], s2_ref[...])
    x, H, W = _conv_relu_pool(x, H, W, w3_ref[...], b_ref[2], s3_ref[...])
    o_ref[0] = x.astype(o_ref.dtype)


def _pool_select(H, W, p_in, p_out):
    """One-hot (p_in, p_out) matrix mapping flat (2r', 2c') -> r'*Wp + c'."""
    Hp, Wp = (H - 2) // 2, (W - 2) // 2
    s = np.zeros((p_in, p_out), np.float32)
    for r in range(Hp):
        for c in range(Wp):
            s[2 * r * W + 2 * c, r * Wp + c] = 1.0
    return jnp.asarray(s)


def _block_hw(h):
    return (h - 2) // 2


@jax.jit
def encoder_forward(x_nchw, params):
    """Full Encoder forward. Input/Output layout: NCHW (PyTorch convention)."""
    N, Cin, H, W = x_nchw.shape
    (w1, b1), (w2, b2), (w3, b3) = params
    Cout = w1.shape[3]

    H1, W1 = H, W
    H2, W2 = _block_hw(H1), _block_hw(W1)
    H3, W3 = _block_hw(H2), _block_hw(W2)
    H4, W4 = _block_hw(H3), _block_hw(W3)
    P1 = _round_up(H1 * W1, 128)
    P2 = _round_up(H2 * W2, 128)
    P3 = _round_up(H3 * W3, 128)
    P4 = _round_up(H4 * W4, 128)

    # NCHW is already channel-major: flattening is a pure reshape (no transpose).
    x_flat = x_nchw.reshape(N, Cin, H1 * W1)
    if P1 != H1 * W1:
        x_flat = jnp.pad(x_flat, ((0, 0), (0, 0), (0, P1 - H1 * W1)))

    # Fold the 3x3 taps into the contraction dim; weights end up (Cout, 9*Cin).
    w1f = w1.reshape(9 * Cin, Cout).T
    w2f = w2.reshape(9 * Cout, Cout).T
    w3f = w3.reshape(9 * Cout, Cout).T
    b_all = jnp.stack([b1, b2, b3], axis=0).reshape(3, Cout, 1)

    sel1 = _pool_select(H1, W1, P1, P2)
    sel2 = _pool_select(H2, W2, P2, P3)
    sel3 = _pool_select(H3, W3, P3, P4)

    out = pl.pallas_call(
        functools.partial(_encoder_kernel, H1, W1),
        out_shape=jax.ShapeDtypeStruct((N, Cout, P4), x_nchw.dtype),
        grid=(N,),
        in_specs=[
            pl.BlockSpec((1, Cin, P1), lambda n: (n, 0, 0)),
            pl.BlockSpec((Cout, 9 * Cin), lambda n: (0, 0)),
            pl.BlockSpec((Cout, 9 * Cout), lambda n: (0, 0)),
            pl.BlockSpec((Cout, 9 * Cout), lambda n: (0, 0)),
            pl.BlockSpec((3, Cout, 1), lambda n: (0, 0, 0)),
            pl.BlockSpec((P1, P2), lambda n: (0, 0)),
            pl.BlockSpec((P2, P3), lambda n: (0, 0)),
            pl.BlockSpec((P3, P4), lambda n: (0, 0)),
        ],
        out_specs=pl.BlockSpec((1, Cout, P4), lambda n: (n, 0, 0)),
        compiler_params=pltpu.CompilerParams(
            dimension_semantics=("parallel",)),
    )(x_flat, w1f, w2f, w3f, b_all, sel1, sel2, sel3)

    # Channel-major flat -> NCHW is a slice + reshape only (no transpose).
    return out[:, :, :H4 * W4].reshape(N, Cout, H4, W4)


def init_encoder_params(key):
    """Deterministic params matching the PyTorch module's shapes (HWIO)."""
    chans = [(3, 32), (32, 32), (32, 32)]
    params = []
    for i, (cin, cout) in enumerate(chans):
        kw_, kb = jax.random.split(jax.random.fold_in(key, i))
        w = jax.random.normal(kw_, (3, 3, cin, cout), jnp.float32) * 0.1
        b = jax.random.normal(kb, (cout,), jnp.float32) * 0.1
        params.append((w, b))
    return params


# ---------------- pure-JAX reference (for correctness check) ----------------
def _ref_conv_block(x_nhwc, w_hwio, b):
    y = jax.lax.conv_general_dilated(
        x_nhwc, w_hwio, window_strides=(1, 1), padding="VALID",
        dimension_numbers=("NHWC", "HWIO", "NHWC"))
    y = jnp.maximum(y + b, 0.0)
    y = jax.lax.reduce_window(y, -jnp.inf, jax.lax.max,
                              (1, 2, 2, 1), (1, 2, 2, 1), "VALID")
    return y


def _ref_encoder(x_nchw, params):
    x = jnp.transpose(x_nchw, (0, 2, 3, 1))
    for (w, b) in params:
        x = _ref_conv_block(x, w, b)
    return jnp.transpose(x, (0, 3, 1, 2))


if __name__ == "__main__":
    key = jax.random.PRNGKey(0)
    kx, kp = jax.random.split(key)

    # NCHW input, 3 channels; spatial 32 keeps all three (conv3 valid + pool2)
    # blocks valid: 32 -> 30 -> 15 -> 13 -> 6 -> 4 -> 2.
    x = jax.random.normal(kx, (2, 3, 32, 32), jnp.float32)
    params = init_encoder_params(kp)

    out = jax.block_until_ready(encoder_forward(x, params))
    ref = jax.block_until_ready(_ref_encoder(x, params))

    assert out.shape == (2, 32, 2, 2), out.shape
    assert jnp.allclose(out, ref, atol=1e-4, rtol=1e-4), float(
        jnp.max(jnp.abs(out - ref)))
    print("KERNEL_OK")
</pallas_src>

<mosaic_0001>
module attributes {stable_mosaic.version = 11 : i64} {
  func.func @_encoder_kernel(%arg0: i32, %arg1: memref<1x3x1024xf32, #tpu.memory_space<vmem>>, %arg2: memref<32x27xf32, #tpu.memory_space<vmem>>, %arg3: memref<32x288xf32, #tpu.memory_space<vmem>>, %arg4: memref<32x288xf32, #tpu.memory_space<vmem>>, %arg5: memref<3x32x1xf32, #tpu.memory_space<vmem>>, %arg6: memref<1024x256xf32, #tpu.memory_space<vmem>>, %arg7: memref<256x128xf32, #tpu.memory_space<vmem>>, %arg8: memref<128x128xf32, #tpu.memory_space<vmem>>, %arg9: memref<1x32x128xf32, #tpu.memory_space<vmem>>) attributes {dimension_semantics = [#tpu.dimension_semantics<parallel>], iteration_bounds = array<i64: 2>, scalar_prefetch = 0 : i64, scratch_operands = 0 : i64, tpu.core_type = #tpu.core_type<tc>, window_params = [{transform_indices = @transform_0, window_bounds = array<i64: 1, 3, 1024>}, {pipeline_mode = #tpu.pipeline_mode<synchronous>, transform_indices = @transform_1, window_bounds = array<i64: 32, 27>}, {pipeline_mode = #tpu.pipeline_mode<synchronous>, transform_indices = @transform_2, window_bounds = array<i64: 32, 288>}, {pipeline_mode = #tpu.pipeline_mode<synchronous>, transform_indices = @transform_3, window_bounds = array<i64: 32, 288>}, {pipeline_mode = #tpu.pipeline_mode<synchronous>, transform_indices = @transform_4, window_bounds = array<i64: 3, 32, 1>}, {pipeline_mode = #tpu.pipeline_mode<synchronous>, transform_indices = @transform_5, window_bounds = array<i64: 1024, 256>}, {pipeline_mode = #tpu.pipeline_mode<synchronous>, transform_indices = @transform_6, window_bounds = array<i64: 256, 128>}, {pipeline_mode = #tpu.pipeline_mode<synchronous>, transform_indices = @transform_7, window_bounds = array<i64: 128, 128>}, {transform_indices = @transform_8, window_bounds = array<i64: 1, 32, 128>}]} {
    %c0 = arith.constant 0 : index
    %c0_0 = arith.constant 0 : index
    %c0_1 = arith.constant 0 : index
    %0 = vector.load %arg1[%c0, %c0_0, %c0_1] : memref<1x3x1024xf32, #tpu.memory_space<vmem>>, vector<1x3x1024xf32>
    %1 = vector.shape_cast %0 : vector<1x3x1024xf32> to vector<3x1024xf32>
    %c0_2 = arith.constant 0 : index
    %c0_3 = arith.constant 0 : index
    %2 = vector.load %arg2[%c0_2, %c0_3] : memref<32x27xf32, #tpu.memory_space<vmem>>, vector<32x27xf32>
    %c0_4 = arith.constant 0 : index
    %c0_5 = arith.constant 0 : index
    %c0_6 = arith.constant 0 : index
    %3 = vector.load %arg5[%c0_4, %c0_5, %c0_6] : memref<3x32x1xf32, #tpu.memory_space<vmem>>, vector<1x32x1xf32>
    %4 = vector.shape_cast %3 : vector<1x32x1xf32> to vector<32x1xf32>
    %c0_7 = arith.constant 0 : index
    %c0_8 = arith.constant 0 : index
    %5 = vector.load %arg6[%c0_7, %c0_8] : memref<1024x256xf32, #tpu.memory_space<vmem>>, vector<1024x256xf32>
    %c1023_i32 = arith.constant 1023 : i32
    %6 = tpu.dynamic_rotate %1 by %c1023_i32 dim 1 : vector<3x1024xf32>, i32 -> vector<3x1024xf32>
    %c1022_i32 = arith.constant 1022 : i32
    %7 = tpu.dynamic_rotate %1 by %c1022_i32 dim 1 : vector<3x1024xf32>, i32 -> vector<3x1024xf32>
    %c992_i32 = arith.constant 992 : i32
    %8 = tpu.dynamic_rotate %1 by %c992_i32 dim 1 : vector<3x1024xf32>, i32 -> vector<3x1024xf32>
    %c991_i32 = arith.constant 991 : i32
    %9 = tpu.dynamic_rotate %1 by %c991_i32 dim 1 : vector<3x1024xf32>, i32 -> vector<3x1024xf32>
    %c990_i32 = arith.constant 990 : i32
    %10 = tpu.dynamic_rotate %1 by %c990_i32 dim 1 : vector<3x1024xf32>, i32 -> vector<3x1024xf32>
    %c960_i32 = arith.constant 960 : i32
    %11 = tpu.dynamic_rotate %1 by %c960_i32 dim 1 : vector<3x1024xf32>, i32 -> vector<3x1024xf32>
    %c959_i32 = arith.constant 959 : i32
    %12 = tpu.dynamic_rotate %1 by %c959_i32 dim 1 : vector<3x1024xf32>, i32 -> vector<3x1024xf32>
    %c958_i32 = arith.constant 958 : i32
    %13 = tpu.dynamic_rotate %1 by %c958_i32 dim 1 : vector<3x1024xf32>, i32 -> vector<3x1024xf32>
    %14 = tpu.concatenate %1, %6, %7, %8, %9, %10, %11, %12, %13 in 0 : vector<3x1024xf32>, vector<3x1024xf32>, vector<3x1024xf32>, vector<3x1024xf32>, vector<3x1024xf32>, vector<3x1024xf32>, vector<3x1024xf32>, vector<3x1024xf32>, vector<3x1024xf32> -> vector<27x1024xf32>
    %cst = arith.constant dense<0.000000e+00> : vector<32x1024xf32>
    %15 = tpu.matmul %2, %14, %cst {dimension_numbers = #tpu.dot_dimension_numbers<[1], [0], [0], [1], [0, 0, 1, 1], [], []>} : vector<32x27xf32>, vector<27x1024xf32>, vector<32x1024xf32> -> vector<32x1024xf32>
    %16 = vector.broadcast %4 : vector<32x1xf32> to vector<32x1024xf32>
    %17 = arith.addf %15, %16 : vector<32x1024xf32>
    %cst_9 = arith.constant 0.000000e+00 : f32
    %18 = vector.broadcast %cst_9 : f32 to vector<32x1024xf32>
    %19 = arith.maximumf %17, %18 : vector<32x1024xf32>
    %c992_i32_10 = arith.constant 992 : i32
    %20 = tpu.dynamic_rotate %19 by %c992_i32_10 dim 1 : vector<32x1024xf32>, i32 -> vector<32x1024xf32>
    %21 = arith.maximumf %19, %20 : vector<32x1024xf32>
    %c1023_i32_11 = arith.constant 1023 : i32
    %22 = tpu.dynamic_rotate %21 by %c1023_i32_11 dim 1 : vector<32x1024xf32>, i32 -> vector<32x1024xf32>
    %23 = arith.maximumf %21, %22 : vector<32x1024xf32>
    %cst_12 = arith.constant dense<0.000000e+00> : vector<32x256xf32>
    %24 = tpu.matmul %23, %5, %cst_12 {dimension_numbers = #tpu.dot_dimension_numbers<[1], [0], [0], [1], [0, 0, 1, 1], [], []>} : vector<32x1024xf32>, vector<1024x256xf32>, vector<32x256xf32> -> vector<32x256xf32>
    %c0_13 = arith.constant 0 : index
    %c0_14 = arith.constant 0 : index
    %25 = vector.load %arg3[%c0_13, %c0_14] : memref<32x288xf32, #tpu.memory_space<vmem>>, vector<32x288xf32>
    %c1 = arith.constant 1 : index
    %c0_15 = arith.constant 0 : index
    %c0_16 = arith.constant 0 : index
    %26 = vector.load %arg5[%c1, %c0_15, %c0_16] : memref<3x32x1xf32, #tpu.memory_space<vmem>>, vector<1x32x1xf32>
    %27 = vector.shape_cast %26 : vector<1x32x1xf32> to vector<32x1xf32>
    %c0_17 = arith.constant 0 : index
    %c0_18 = arith.constant 0 : index
    %28 = vector.load %arg7[%c0_17, %c0_18] : memref<256x128xf32, #tpu.memory_space<vmem>>, vector<256x128xf32>
    %c255_i32 = arith.constant 255 : i32
    %29 = tpu.dynamic_rotate %24 by %c255_i32 dim 1 : vector<32x256xf32>, i32 -> vector<32x256xf32>
    %c254_i32 = arith.constant 254 : i32
    %30 = tpu.dynamic_rotate %24 by %c254_i32 dim 1 : vector<32x256xf32>, i32 -> vector<32x256xf32>
    %c241_i32 = arith.constant 241 : i32
    %31 = tpu.dynamic_rotate %24 by %c241_i32 dim 1 : vector<32x256xf32>, i32 -> vector<32x256xf32>
    %c240_i32 = arith.constant 240 : i32
    %32 = tpu.dynamic_rotate %24 by %c240_i32 dim 1 : vector<32x256xf32>, i32 -> vector<32x256xf32>
    %c239_i32 = arith.constant 239 : i32
    %33 = tpu.dynamic_rotate %24 by %c239_i32 dim 1 : vector<32x256xf32>, i32 -> vector<32x256xf32>
    %c226_i32 = arith.constant 226 : i32
    %34 = tpu.dynamic_rotate %24 by %c226_i32 dim 1 : vector<32x256xf32>, i32 -> vector<32x256xf32>
    %c225_i32 = arith.constant 225 : i32
    %35 = tpu.dynamic_rotate %24 by %c225_i32 dim 1 : vector<32x256xf32>, i32 -> vector<32x256xf32>
    %c224_i32 = arith.constant 224 : i32
    %36 = tpu.dynamic_rotate %24 by %c224_i32 dim 1 : vector<32x256xf32>, i32 -> vector<32x256xf32>
    %37 = tpu.concatenate %24, %29, %30, %31, %32, %33, %34, %35, %36 in 0 : vector<32x256xf32>, vector<32x256xf32>, vector<32x256xf32>, vector<32x256xf32>, vector<32x256xf32>, vector<32x256xf32>, vector<32x256xf32>, vector<32x256xf32>, vector<32x256xf32> -> vector<288x256xf32>
    %cst_19 = arith.constant dense<0.000000e+00> : vector<32x256xf32>
    %38 = tpu.matmul %25, %37, %cst_19 {dimension_numbers = #tpu.dot_dimension_numbers<[1], [0], [0], [1], [0, 0, 1, 1], [], []>} : vector<32x288xf32>, vector<288x256xf32>, vector<32x256xf32> -> vector<32x256xf32>
    %39 = vector.broadcast %27 : vector<32x1xf32> to vector<32x256xf32>
    %40 = arith.addf %38, %39 : vector<32x256xf32>
    %cst_20 = arith.constant 0.000000e+00 : f32
    %41 = vector.broadcast %cst_20 : f32 to vector<32x256xf32>
    %42 = arith.maximumf %40, %41 : vector<32x256xf32>
    %c241_i32_21 = arith.constant 241 : i32
    %43 = tpu.dynamic_rotate %42 by %c241_i32_21 dim 1 : vector<32x256xf32>, i32 -> vector<32x256xf32>
    %44 = arith.maximumf %42, %43 : vector<32x256xf32>
    %c255_i32_22 = arith.constant 255 : i32
    %45 = tpu.dynamic_rotate %44 by %c255_i32_22 dim 1 : vector<32x256xf32>, i32 -> vector<32x256xf32>
    %46 = arith.maximumf %44, %45 : vector<32x256xf32>
    %cst_23 = arith.constant dense<0.000000e+00> : vector<32x128xf32>
    %47 = tpu.matmul %46, %28, %cst_23 {dimension_numbers = #tpu.dot_dimension_numbers<[1], [0], [0], [1], [0, 0, 1, 1], [], []>} : vector<32x256xf32>, vector<256x128xf32>, vector<32x128xf32> -> vector<32x128xf32>
    %c0_24 = arith.constant 0 : index
    %c0_25 = arith.constant 0 : index
    %48 = vector.load %arg4[%c0_24, %c0_25] : memref<32x288xf32, #tpu.memory_space<vmem>>, vector<32x288xf32>
    %c2 = arith.constant 2 : index
    %c0_26 = arith.constant 0 : index
    %c0_27 = arith.constant 0 : index
    %49 = vector.load %arg5[%c2, %c0_26, %c0_27] : memref<3x32x1xf32, #tpu.memory_space<vmem>>, vector<1x32x1xf32>
    %50 = vector.shape_cast %49 : vector<1x32x1xf32> to vector<32x1xf32>
    %c0_28 = arith.constant 0 : index
    %c0_29 = arith.constant 0 : index
    %51 = vector.load %arg8[%c0_28, %c0_29] : memref<128x128xf32, #tpu.memory_space<vmem>>, vector<128x128xf32>
    %c127_i32 = arith.constant 127 : i32
    %52 = tpu.dynamic_rotate %47 by %c127_i32 dim 1 : vector<32x128xf32>, i32 -> vector<32x128xf32>
    %c126_i32 = arith.constant 126 : i32
    %53 = tpu.dynamic_rotate %47 by %c126_i32 dim 1 : vector<32x128xf32>, i32 -> vector<32x128xf32>
    %c122_i32 = arith.constant 122 : i32
    %54 = tpu.dynamic_rotate %47 by %c122_i32 dim 1 : vector<32x128xf32>, i32 -> vector<32x128xf32>
    %c121_i32 = arith.constant 121 : i32
    %55 = tpu.dynamic_rotate %47 by %c121_i32 dim 1 : vector<32x128xf32>, i32 -> vector<32x128xf32>
    %c120_i32 = arith.constant 120 : i32
    %56 = tpu.dynamic_rotate %47 by %c120_i32 dim 1 : vector<32x128xf32>, i32 -> vector<32x128xf32>
    %c116_i32 = arith.constant 116 : i32
    %57 = tpu.dynamic_rotate %47 by %c116_i32 dim 1 : vector<32x128xf32>, i32 -> vector<32x128xf32>
    %c115_i32 = arith.constant 115 : i32
    %58 = tpu.dynamic_rotate %47 by %c115_i32 dim 1 : vector<32x128xf32>, i32 -> vector<32x128xf32>
    %c114_i32 = arith.constant 114 : i32
    %59 = tpu.dynamic_rotate %47 by %c114_i32 dim 1 : vector<32x128xf32>, i32 -> vector<32x128xf32>
    %60 = tpu.concatenate %47, %52, %53, %54, %55, %56, %57, %58, %59 in 0 : vector<32x128xf32>, vector<32x128xf32>, vector<32x128xf32>, vector<32x128xf32>, vector<32x128xf32>, vector<32x128xf32>, vector<32x128xf32>, vector<32x128xf32>, vector<32x128xf32> -> vector<288x128xf32>
    %cst_30 = arith.constant dense<0.000000e+00> : vector<32x128xf32>
    %61 = tpu.matmul %48, %60, %cst_30 {dimension_numbers = #tpu.dot_dimension_numbers<[1], [0], [0], [1], [0, 0, 1, 1], [], []>} : vector<32x288xf32>, vector<288x128xf32>, vector<32x128xf32> -> vector<32x128xf32>
    %62 = vector.broadcast %50 : vector<32x1xf32> to vector<32x128xf32>
    %63 = arith.addf %61, %62 : vector<32x128xf32>
    %cst_31 = arith.constant 0.000000e+00 : f32
    %64 = vector.broadcast %cst_31 : f32 to vector<32x128xf32>
    %65 = arith.maximumf %63, %64 : vector<32x128xf32>
    %c122_i32_32 = arith.constant 122 : i32
    %66 = tpu.dynamic_rotate %65 by %c122_i32_32 dim 1 : vector<32x128xf32>, i32 -> vector<32x128xf32>
    %67 = arith.maximumf %65, %66 : vector<32x128xf32>
    %c127_i32_33 = arith.constant 127 : i32
    %68 = tpu.dynamic_rotate %67 by %c127_i32_33 dim 1 : vector<32x128xf32>, i32 -> vector<32x128xf32>
    %69 = arith.maximumf %67, %68 : vector<32x128xf32>
    %cst_34 = arith.constant dense<0.000000e+00> : vector<32x128xf32>
    %70 = tpu.matmul %69, %51, %cst_34 {dimension_numbers = #tpu.dot_dimension_numbers<[1], [0], [0], [1], [0, 0, 1, 1], [], []>} : vector<32x128xf32>, vector<128x128xf32>, vector<32x128xf32> -> vector<32x128xf32>
    %c0_35 = arith.constant 0 : index
    %c0_36 = arith.constant 0 : index
    %c0_37 = arith.constant 0 : index
    %71 = vector.load %arg9[%c0_35, %c0_36, %c0_37] : memref<1x32x128xf32, #tpu.memory_space<vmem>>, vector<1x32x128xf32>
    %72 = vector.shape_cast %71 : vector<1x32x128xf32> to vector<32x128xf32>
    %73 = vector.shape_cast %70 : vector<32x128xf32> to vector<1x32x128xf32>
    tpu.vector_store %arg9[%c0_35, %c0_36, %c0_37], %73 {strides = array<i32>} : memref<1x32x128xf32, #tpu.memory_space<vmem>>, vector<1x32x128xf32>,
    return
  }
  func.func @transform_0(%arg0: i32) -> (i32, i32, i32) {
    %c0_i32 = arith.constant 0 : i32
    %c0_i32_0 = arith.constant 0 : i32
    %c0_i32_1 = arith.constant 0 : i32
    return %arg0, %c0_i32, %c0_i32_0 : i32, i32, i32
  }
  func.func @transform_1(%arg0: i32) -> (i32, i32) {
    %c0_i32 = arith.constant 0 : i32
    %c0_i32_0 = arith.constant 0 : i32
    %c0_i32_1 = arith.constant 0 : i32
    return %c0_i32, %c0_i32_0 : i32, i32
  }
  func.func @transform_2(%arg0: i32) -> (i32, i32) {
    %c0_i32 = arith.constant 0 : i32
    %c0_i32_0 = arith.constant 0 : i32
    %c0_i32_1 = arith.constant 0 : i32
    return %c0_i32, %c0_i32_0 : i32, i32
  }
  func.func @transform_3(%arg0: i32) -> (i32, i32) {
    %c0_i32 = arith.constant 0 : i32
    %c0_i32_0 = arith.constant 0 : i32
    %c0_i32_1 = arith.constant 0 : i32
    return %c0_i32, %c0_i32_0 : i32, i32
  }
  func.func @transform_4(%arg0: i32) -> (i32, i32, i32) {
    %c0_i32 = arith.constant 0 : i32
    %c0_i32_0 = arith.constant 0 : i32
    %c0_i32_1 = arith.constant 0 : i32
    %c0_i32_2 = arith.constant 0 : i32
    return %c0_i32, %c0_i32_0, %c0_i32_1 : i32, i32, i32
  }
  func.func @transform_5(%arg0: i32) -> (i32, i32) {
    %c0_i32 = arith.constant 0 : i32
    %c0_i32_0 = arith.constant 0 : i32
    %c0_i32_1 = arith.constant 0 : i32
    return %c0_i32, %c0_i32_0 : i32, i32
  }
  func.func @transform_6(%arg0: i32) -> (i32, i32) {
    %c0_i32 = arith.constant 0 : i32
    %c0_i32_0 = arith.constant 0 : i32
    %c0_i32_1 = arith.constant 0 : i32
    return %c0_i32, %c0_i32_0 : i32, i32
  }
  func.func @transform_7(%arg0: i32) -> (i32, i32) {
    %c0_i32 = arith.constant 0 : i32
    %c0_i32_0 = arith.constant 0 : i32
    %c0_i32_1 = arith.constant 0 : i32
    return %c0_i32, %c0_i32_0 : i32, i32
  }
  func.func @transform_8(%arg0: i32) -> (i32, i32, i32) {
    %c0_i32 = arith.constant 0 : i32
    %c0_i32_0 = arith.constant 0 : i32
    %c0_i32_1 = arith.constant 0 : i32
    return %arg0, %c0_i32, %c0_i32_0 : i32, i32, i32
  }
}

</mosaic_0001>

<bundles_post_ra>
// kernel: encoder_forward.1
= control target key start
LH: loop header
LB: loop body
LE: loop exit
PB: predicated region body
PF: predicated region fallthrough
CT: control target
= control target key end

     0   :  { %13 = vsyncpa [#allocation3], 0  ;;  %s3781_s27 = smov 0   ;;  %s5940_s0 = inlined_call_operand.vmem [shape: f32[2,3,1024], index: 0, kind: input, shape index: {}]   ;;  %s5941_s1 = inlined_call_operand.vmem [shape: f32[32,27], index: 1, kind: input, shape index: {}]   ;;  %s5942_s2 = inlined_call_operand.vmem [shape: f32[32,288], index: 2, kind: input, shape index: {}]   ;;  %s5943_s3 = inlined_call_operand.vmem [shape: f32[32,288], index: 3, kind: input, shape index: {}]   ;;  %s5944_s4 = inlined_call_operand.vmem [shape: f32[3,32,1], index: 4, kind: input, shape index: {}]   ;;  %s5945_s5 = inlined_call_operand.hbm [shape: f32[1024,256], index: 5, kind: input, shape index: {}]   ;;  %s5946_s6 = inlined_call_operand.vmem [shape: f32[256,128], index: 6, kind: input, shape index: {}]   ;;  %s5947_s7 = inlined_call_operand.vmem [shape: f32[128,128], index: 7, kind: input, shape index: {}]   ;;  %s5948_s8 = inlined_call_operand.vmem [shape: f32[2,32,128], index: 8, kind: output, shape index: {}]  }
   0x1 LB: > { %s3188_s28 = sadd.s32 4294967295, %s3710_s27   ;;  %p3190_p0 = scmp.ge.s32.totalorder %s3710_s27, 1  ;;  %s3710_s27 = sphi %s3781_s27, %s19_s27  }
   0x2   : > { %p223_p1 = scmp.lt.s32.totalorder %s3710_s27, 3  ;;  %s3712_s29 = smov [#allocation2]  }
   0x3   : > { %s247_s30 = sshll.u32 %s3712_s29, 4  ;;  %p3419_p3 = scmp.eq.s32.totalorder %s3188_s28, 0  ;;  %s248_s30 = int_to_ptr.vmem [resolvable:$true] %s247_s30 }
   0x4   : > { %p3789_p2 = pnand %p3190_p0, %p223_p1  ;;  %s3685_s10 = scalar_lea.vmem %s248_s30, 32768 }
   0x5   : > { %p3686_p7 = scmp.ne.s32.totalorder %s248_s30, %s3685_s10  ;;  %p3693_p10 = scmp.lt.s32.totalorder %s248_s30, %s248_s30 }
   0x6   : > { %p3415_p4 = pneg %p3789_p2  ;;  %p3694_p11 = scmp.lt.s32.totalorder %s3685_s10, %s3685_s10 }
   0x8   : > { %p3416_p5 = pnand %p3419_p3, %p3415_p4  ;;  %p3695_p12 = por %p3694_p11, %p3693_p10 }
   0xa   : > { %p3676_p6 = pneg %p3416_p5 }
   0xc   : > { %p3688_p8 = pnand %p3686_p7, %p3676_p6 }
   0xe   : > { %p3689_p9 = pneg %p3688_p8 }
  0x10   : > { %p3696_p13 = pnand %p3695_p12, %p3689_p9 }
  0x12   : > { %3699 = shalt.err (!%p3696_p13)
}
  0x13   : > { %s3713_s11 = smov 256   ;;  %s3714_s12 = smov 16  }
  0x14   : > { %3418 = dma.hbm_to_vmem [thread:$0]  (!%p3416_p5), %s5945_s5, 32768, %s248_s30, [#allocation3], %s3713_s11, %s3713_s11, %s3714_s12  }
  0x15   : > { %277 = sbr.rel (%p3789_p2) target bundleno = 2734 (0xaae), region = 52 }
  0x1a   : > { %3705 = dma.done.wait (%p3419_p3), [#allocation3], 32768  }
  0x1b   : > { %3707 = vsyncadd (%p3419_p3), [#allocation3], 4294934528  ;;  %p311_p0 = scmp.lt.s32.totalorder %s3188_s28, 1  ;;  %s3715_s19 = smov 64   ;;  %v5949_v7 = vmov 0.0   ;;  %v329_v19 = vld [vmem:[%s5944_s4] sm:$0xff]  ;;  %v617_v26 = vlaneseq }
  0x1c   : > { %s3716_s20 = smov 94   ;;  %s3717_s21 = smov 126   ;;  %1155 = vmatprep.mubr.f32.mxu0 %v5949_v7  ;;  %1244 = vmatprep.mubr.f32.mxu1 %v5949_v7  ;;  %v330_v20 = vld [vmem:[%s5944_s4 + $0x8] sm:$0xff]  ;;  %v3724_v21 = vmov 0   ;;  %v332_v24 = vld [vmem:[%s5944_s4 + $0x18] sm:$0xff]  ;;  %v331_v25 = vld [vmem:[%s5944_s4 + $0x10] sm:$0xff] }
  0x1d   : > { %s6000_s28 = smov (!%p311_p0, %s3188_s28), 1  ;;  %s3718_s22 = smov 96   ;;  %3453 = vset.pattern.permute.xlu0 %v3724_v21  ;;  %3454 = vset.pattern.permute.xlu1 %v3724_v21  ;;  %v4001_v29 = vand.u32 127, %v617_v26  ;;  %vm1016_vm5 = vcmask 1041408   ;;  %vm989_vm7 = vcmask 1040384   ;;  %vm998_vm8 = vcmask 1043456  }
  0x1e   : > { %s3241_s15 = sshll.u32 %s6000_s28, 5  ;;  %s3719_s23 = smov 63   ;;  %vm971_vm10 = vcmask 1042432   ;;  %vm1025_vm11 = vcmask 1044480   ;;  %vm1007_vm12 = vcmask 1046528   ;;  %vm980_vm14 = vcmask 1045504  }
  0x1f   : > { %s3811_s18 = scalar_lea.vmem %s5940_s0, %s3241_s15  ;;  %s3720_s24 = smov 95   ;;  %vm744_vm0 = vcmp.lt.s32.totalorder %v4001_v29, 64  ;;  %vm644_vm1 = vcmp.lt.s32.totalorder %v4001_v29, 126  ;;  %vm669_vm2 = vcmp.lt.s32.totalorder %v4001_v29, 96  ;;  %vm719_vm3 = vcmp.lt.s32.totalorder %v4001_v29, 94 }
  0x20   : > { %v3814_v0 = vld [vmem:[%s3811_s18 + $0x8] sm:$0x77]  ;;  %v3817_v1 = vld [vmem:[%s3811_s18] sm:$0x77]  ;;  %s3721_s25 = smov 62   ;;  %s3722_s26 = smov 127  }
  0x21   : > { %732 = vrot.lane.b32.xlu1 %v3814_v0, %s3715_s19  ;;  %707 = vrot.lane.b32.xlu0 %v3814_v0, %s3716_s20  ;;  %v3825_v2 = vcombine.high %v3817_v1, %v3817_v1  ;;  %v3873_v3 = vcombine.high %v3814_v0, %v3814_v0  ;;  %v3876_v4 = vld [vmem:[%s3811_s18 + $0x10] sm:$0x77]  ;;  %v3907_v6 = vld [vmem:[%s3811_s18 + $0x18] sm:$0x77]  ;;  %vm694_vm4 = vcmp.lt.s32.totalorder %v4001_v29, 95  ;;  %vm769_vm6 = vcmp.lt.s32.totalorder %v4001_v29, 63 }
  0x22   : > { %v3904_v5 = vcombine.high %v3876_v4, %v3876_v4  ;;  %v3953_v8 = vcombine.high %v3907_v6, %v3907_v6  ;;  %vm794_vm9 = vcmp.lt.s32.totalorder %v4001_v29, 62  ;;  %vm619_vm13 = vcmp.lt.s32.totalorder %v4001_v29, 127  ;;  %s3725_s29 = smov 113   ;;  %s3726_s30 = smov 97  }
  0x23   : > { %vm1054_vm15 = vcmask 220160   ;;  %s3727_s9 = smov 98   ;;  %s3728_s10 = smov 111  }
  0x24   : > { %s3729_s11 = smov 112   ;;  %s3733_s12 = smov 120  }
  0x25   : > { %632 = vrot.lane.b32.xlu1 %v3814_v0, %s3717_s21  ;;  %705 = vrot.lane.b32.xlu0 %v3825_v2, %s3716_s20  ;;  %s3734_s14 = smov 121   ;;  %s3735_s16 = smov 114  }
  0x29   : > { %730 = vrot.lane.b32.xlu1 %v3825_v2, %s3715_s19  ;;  %630 = vrot.lane.b32.xlu0 %v3825_v2, %s3717_s21 }
  0x2d   : > { %657 = vrot.lane.b32.xlu1 %v3814_v0, %s3718_s22  ;;  %655 = vrot.lane.b32.xlu0 %v3825_v2, %s3718_s22 }
  0x31   : > { %728 = vrot.lane.b32.xlu1 %v3817_v1, %s3715_s19  ;;  %703 = vrot.lane.b32.xlu0 %v3817_v1, %s3716_s20 }
  0x35   : > { %757 = vrot.lane.b32.xlu1 %v3814_v0, %s3719_s23  ;;  %755 = vrot.lane.b32.xlu0 %v3825_v2, %s3719_s23 }
  0x39   : > { %653 = vrot.lane.b32.xlu1 %v3817_v1, %s3718_s22  ;;  %628 = vrot.lane.b32.xlu0 %v3817_v1, %s3717_s21 }
  0x3d   : > { %682 = vrot.lane.b32.xlu1 %v3814_v0, %s3720_s24  ;;  %680 = vrot.lane.b32.xlu0 %v3825_v2, %s3720_s24 }
  0x41   : > { %780 = vrot.lane.b32.xlu1 %v3825_v2, %s3721_s25  ;;  %753 = vrot.lane.b32.xlu0 %v3817_v1, %s3719_s23 }
  0x45   : > { %678 = vrot.lane.b32.xlu1 %v3817_v1, %s3720_s24  ;;  %782 = vrot.lane.b32.xlu0 %v3814_v0, %s3721_s25 }
  0x49   : > { %603 = vrot.lane.b32.xlu1 %v3825_v2, %s3722_s26  ;;  %778 = vrot.lane.b32.xlu0 %v3817_v1, %s3721_s25 }
  0x4d   : > { %601 = vrot.lane.b32.xlu1 %v3817_v1, %s3722_s26  ;;  %605 = vrot.lane.b32.xlu0 %v3814_v0, %s3722_s26 }
  0x51   : > { %711 = vrot.lane.b32.xlu1 %v3876_v4, %s3716_s20  ;;  %709 = vrot.lane.b32.xlu0 %v3873_v3, %s3716_s20 }
  0x55   : > { %736 = vrot.lane.b32.xlu1 %v3876_v4, %s3715_s19  ;;  %734 = vrot.lane.b32.xlu0 %v3873_v3, %s3715_s19 }
  0x59   : > { %636 = vrot.lane.b32.xlu1 %v3876_v4, %s3717_s21  ;;  %634 = vrot.lane.b32.xlu0 %v3873_v3, %s3717_s21 }
  0x5d   : > { %661 = vrot.lane.b32.xlu1 %v3876_v4, %s3718_s22  ;;  %659 = vrot.lane.b32.xlu0 %v3873_v3, %s3718_s22 }
  0x61   : > { %761 = vrot.lane.b32.xlu1 %v3876_v4, %s3719_s23  ;;  %759 = vrot.lane.b32.xlu0 %v3873_v3, %s3719_s23 }
  0x65   : > { %686 = vrot.lane.b32.xlu1 %v3876_v4, %s3720_s24  ;;  %684 = vrot.lane.b32.xlu0 %v3873_v3, %s3720_s24 }
  0x69   : > { %715 = vrot.lane.b32.xlu1 %v3907_v6, %s3716_s20  ;;  %713 = vrot.lane.b32.xlu0 %v3904_v5, %s3716_s20 }
  0x6d   : > { %740 = vrot.lane.b32.xlu1 %v3907_v6, %s3715_s19  ;;  %738 = vrot.lane.b32.xlu0 %v3904_v5, %s3715_s19 }
  0x71   : > { %786 = vrot.lane.b32.xlu1 %v3876_v4, %s3721_s25  ;;  %784 = vrot.lane.b32.xlu0 %v3873_v3, %s3721_s25 }
  0x75   : > { %640 = vrot.lane.b32.xlu1 %v3907_v6, %s3717_s21  ;;  %638 = vrot.lane.b32.xlu0 %v3904_v5, %s3717_s21 }
  0x79   : > { %665 = vrot.lane.b32.xlu1 %v3907_v6, %s3718_s22  ;;  %663 = vrot.lane.b32.xlu0 %v3904_v5, %s3718_s22 }
  0x7d   : > { %765 = vrot.lane.b32.xlu1 %v3907_v6, %s3719_s23  ;;  %763 = vrot.lane.b32.xlu0 %v3904_v5, %s3719_s23 }
  0x81   : > { %609 = vrot.lane.b32.xlu1 %v3876_v4, %s3722_s26  ;;  %607 = vrot.lane.b32.xlu0 %v3873_v3, %s3722_s26 }
  0x85   : > { %690 = vrot.lane.b32.xlu1 %v3907_v6, %s3720_s24  ;;  %688 = vrot.lane.b32.xlu0 %v3904_v5, %s3720_s24 }
  0x89   : > { %790 = vrot.lane.b32.xlu1 %v3907_v6, %s3721_s25  ;;  %788 = vrot.lane.b32.xlu0 %v3904_v5, %s3721_s25 }
  0x8d   : > { %613 = vrot.lane.b32.xlu1 %v3907_v6, %s3722_s26  ;;  %611 = vrot.lane.b32.xlu0 %v3904_v5, %s3722_s26 }
  0x91   : > { %742 = vrot.lane.b32.xlu1 %v3953_v8, %s3715_s19  ;;  %717 = vrot.lane.b32.xlu0 %v3953_v8, %s3716_s20 }
  0x93   : > { %v3959_v9 = vpop.permute.xlu1 %732  ;;  %v3961_v10 = vpop.permute.xlu0 %707 }
  0x95   : > { %667 = vrot.lane.b32.xlu1 %v3953_v8, %s3718_s22  ;;  %642 = vrot.lane.b32.xlu0 %v3953_v8, %s3717_s21 }
  0x97   : > { %v3967_v11 = vpop.permute.xlu1 %632  ;;  %v706_v12 = vpop.permute.xlu0 %705 }
  0x98   : > { %v725_v38 = vsel %vm719_vm3, %v706_v12, %v3961_v10 }
  0x99   : > { %692 = vrot.lane.b32.xlu1 %v3953_v8, %s3720_s24  ;;  %767 = vrot.lane.b32.xlu0 %v3953_v8, %s3719_s23  ;;  %v908_v59 = vrot.slane %v725_v38, 1 }
  0x9b   : > { %v731_v13 = vpop.permute.xlu1 %730  ;;  %v631_v14 = vpop.permute.xlu0 %630 }
  0x9c   : > { %v750_v32 = vsel %vm744_vm0, %v731_v13, %v3959_v9  ;;  %v4019_v35 = vsel %vm644_vm1, %v631_v14, %v3967_v11 }
  0x9d   : > { %615 = vrot.lane.b32.xlu1 %v3953_v8, %s3722_s26  ;;  %792 = vrot.lane.b32.xlu0 %v3953_v8, %s3721_s25  ;;  %v932_v41 = vrot.slane %v750_v32, 6  ;;  %v836_v45 = vrot.slane %v4019_v35, 2 }
  0x9f   : > { %v3977_v15 = vpop.permute.xlu1 %657  ;;  %v656_v16 = vpop.permute.xlu0 %655 }
  0xa0   : > { %v675_v36 = vsel %vm669_vm2, %v656_v16, %v3977_v15 }
  0xa1   : > { %1036 = vperm.xlu0 %3453, %v329_v19   ;;  %1041 = vperm.xlu1 %3454, %v330_v20   ;;  %v860_v46 = vrot.slane %v675_v36, 7 }
  0xa3   : > { %v3979_v17 = vpop.permute.xlu1 %728  ;;  %v3981_v18 = vpop.permute.xlu0 %703  ;;  %v991_v63 = vsel %vm989_vm7, %v836_v45, %v860_v46 }
  0xa4   : > { %v751_v42 = vsel %vm744_vm0, %v3979_v17, %v731_v13  ;;  %v726_v43 = vsel %vm719_vm3, %v3981_v18, %v706_v12  ;;  %v1018_v13 = vsel %vm1016_vm5, %v908_v59, %v932_v41 }
  0xa5   : > { %1051 = vperm.xlu0 %3453, %v332_v24   ;;  %1046 = vperm.xlu1 %3454, %v331_v25   ;;  %v931_v55 = vrot.slane %v751_v42, 6  ;;  %v907_v56 = vrot.slane %v726_v43, 1  ;;  %v4099_v43 = vld [vmem:[%s5941_s1] sm:$0xff] }
  0xa7   : > { %v3989_v22 = vpop.permute.xlu1 %757  ;;  %v756_v23 = vpop.permute.xlu0 %755  ;;  %v1017_v20 = vsel %vm1016_vm5, %v907_v56, %v931_v55 }
  0xa8   : > { %v775_v44 = vsel %vm769_vm6, %v756_v23, %v3989_v22 }
  0xa9   : > { %v956_v57 = vrot.slane %v775_v44, 3 }
  0xab   : > { %v3997_v27 = vpop.permute.xlu1 %653  ;;  %v3999_v28 = vpop.permute.xlu0 %628  ;;  %v1027_v19 = vsel %vm1025_vm11, %v1018_v13, %v956_v57 }
  0xac   : > { %v676_v37 = vsel %vm669_vm2, %v3997_v27, %v656_v16  ;;  %v651_v39 = vsel %vm644_vm1, %v3999_v28, %v631_v14 }
  0xad   : > { %v859_v47 = vrot.slane %v676_v37, 7  ;;  %v835_v51 = vrot.slane %v651_v39, 2 }
  0xaf   : > { %v4003_v30 = vpop.permute.xlu1 %682  ;;  %v681_v31 = vpop.permute.xlu0 %680  ;;  %v990_v16 = vsel %vm989_vm7, %v835_v51, %v859_v47  ;;  %v4119_v47 = vld [vmem:[%s5941_s1 + $0x10] sm:$0xff] }
  0xb0   : > { %v700_v40 = vsel %vm694_vm4, %v681_v31, %v4003_v30 }
  0xb1   : > { %v884_v52 = vrot.slane %v700_v40, 4 }
  0xb3   : > { %v781_v33 = vpop.permute.xlu1 %780  ;;  %v4014_v34 = vpop.permute.xlu0 %753  ;;  %v1000_v14 = vsel %vm998_vm8, %v991_v63, %v884_v52  ;;  %v4129_v52 = vld [vmem:[%s5941_s1 + $0x18] sm:$0xff] }
  0xb4   : > { %v776_v48 = vsel %vm769_vm6, %v4014_v34, %v756_v23  ;;  %v1009_v26 = vsel %vm1007_vm12, %v1000_v14, %v908_v59 }
  0xb5   : > { %v955_v60 = vrot.slane %v776_v48, 3 }
  0xb7   : > { %v4050_v49 = vpop.permute.xlu1 %678  ;;  %v4052_v50 = vpop.permute.xlu0 %782  ;;  %v1026_v23 = vsel %vm1025_vm11, %v1017_v20, %v955_v60 }
  0xb8   : > { %v701_v53 = vsel %vm694_vm4, %v4050_v49, %v681_v31  ;;  %v800_v54 = vsel %vm794_vm9, %v781_v33, %v4052_v50 }
  0xb9   : > { %v883_v58 = vrot.slane %v701_v53, 4  ;;  %3199 = vmatprep.subr.msk.mxu0 %vm971_vm10, %v800_v54 }
  0xbb   : > { %v604_v61 = vpop.permute.xlu1 %603  ;;  %v4061_v62 = vpop.permute.xlu0 %778  ;;  %v999_v21 = vsel %vm998_vm8, %v990_v16, %v883_v58 }
  0xbc   : > { %v801_v12 = vsel %vm794_vm9, %v4061_v62, %v781_v33  ;;  %v1008_v33 = vsel %vm1007_vm12, %v999_v21, %v907_v56 }
  0xbd   : > { %3200 = vmatpush1.msk.msra.mxu0 %vm971_vm10, %v801_v12 }
  0xbe   : > { %1117 = vmatprep.subr.mxu0 %v1027_v19 }
  0xbf   : > { %v4076_v24 = vpop.permute.xlu1 %601  ;;  %1118 = vmatpush1.msra.mxu0 %v1026_v23  ;;  %v4078_v25 = vpop.permute.xlu0 %605 }
  0xc0   : > { %v626_v31 = vsel %vm619_vm13, %v4076_v24, %v604_v61  ;;  %v625_v32 = vsel %vm619_vm13, %v604_v61, %v4078_v25  ;;  %1119 = vmatprep.subr.mxu0 %v1009_v26 }
  0xc1   : > { %v811_v35 = vrot.slane %v626_v31, 5  ;;  %v812_v36 = vrot.slane %v625_v32, 5  ;;  %1120 = vmatpush1.msra.mxu0 %v1008_v33 }
  0xc3   : > { %v4088_v37 = vpop.permute.xlu1 %711  ;;  %v710_v38 = vpop.permute.xlu0 %709  ;;  %v973_v39 = vsel %vm971_vm10, %v3825_v2, %v812_v36  ;;  %v972_v40 = vsel %vm971_vm10, %v3817_v1, %v811_v35  ;;  %v4109_v1 = vld [vmem:[%s5941_s1 + $0x8] sm:$0xff] }
  0xc4   : > { %v982_v41 = vsel %vm980_vm14, %v973_v39, %v836_v45  ;;  %v981_v42 = vsel %vm980_vm14, %v972_v40, %v835_v51 }
  0xc5   : > { %1121 = vmatprep.subr.mxu0 %v982_v41 }
  0xc6   : > { %1122 = vmatpush1.msra.mxu0 %v981_v42 }
  0xc7   : > { %v4101_v44 = vpop.permute.xlu1 %736  ;;  %v735_v46 = vpop.permute.xlu0 %734  ;;  %3201 = vmatmul.mubr.msk.f32.vlgmr.msra.gmra.mxu0 %vm1054_vm15, %v4099_v43 }
  0xc8   : > { %1161 = vmatprep.mubr.f32.mxu0 %v5949_v7  ;;  %v748_v60 = vsel %vm744_vm0, %v735_v46, %v4101_v44  ;;  %v749_v12 = vsel %vm744_vm0, %v3959_v9, %v735_v46  ;;  %v723_v9 = vsel %vm719_vm3, %v710_v38, %v4088_v37 }
  0xc9   : > { %v934_v26 = vrot.slane %v748_v60, 6  ;;  %v933_v33 = vrot.slane %v749_v12, 6  ;;  %v910_v40 = vrot.slane %v723_v9, 1 }
  0xcb   : > { %v4111_v2 = vpop.permute.xlu1 %636  ;;  %v635_v45 = vpop.permute.xlu0 %634  ;;  %3202 = vmatmul.mubr.msk.f32.gmra.mxu0 %vm1054_vm15, %v4109_v1 }
  0xcc   : > { %1167 = vmatprep.mubr.f32.mxu0 %v5949_v7  ;;  %v4160_v13 = vsel %vm644_vm1, %v635_v45, %v4111_v2  ;;  %v4176_v20 = vsel %vm644_vm1, %v3967_v11, %v635_v45 }
  0xcd   : > { %v838_v35 = vrot.slane %v4160_v13, 2  ;;  %v837_v11 = vrot.slane %v4176_v20, 2 }
  0xcf   : > { %v4121_v48 = vpop.permute.xlu1 %661  ;;  %v660_v51 = vpop.permute.xlu0 %659  ;;  %3203 = vmatmul.mubr.msk.f32.gmra.mxu0 %vm1054_vm15, %v4119_v47 }
  0xd0   : > { %1173 = vmatprep.mubr.f32.mxu0 %v5949_v7  ;;  %v673_v59 = vsel %vm669_vm2, %v660_v51, %v4121_v48  ;;  %v674_v61 = vsel %vm669_vm2, %v3977_v15, %v660_v51  ;;  %v1020_v51 = vsel %vm1016_vm5, %v910_v40, %v934_v26 }
  0xd1   : > { %v862_v21 = vrot.slane %v673_v59, 7  ;;  %v861_v31 = vrot.slane %v674_v61, 7 }
  0xd3   : > { %v4131_v53 = vpop.permute.xlu1 %761  ;;  %v760_v54 = vpop.permute.xlu0 %759  ;;  %3204 = vmatmul.mubr.msk.f32.gmra.mxu0 %vm1054_vm15, %v4129_v52  ;;  %v993_v45 = vsel %vm989_vm7, %v838_v35, %v862_v21 }
  0xd4   : > { %1333 = vmatprep.mubr.f32.mxu0 %v5949_v7  ;;  %v773_v14 = vsel %vm769_vm6, %v760_v54, %v4131_v53  ;;  %v774_v23 = vsel %vm769_vm6, %v3989_v22, %v760_v54 }
  0xd5   : > { %v958_v36 = vrot.slane %v773_v14, 3  ;;  %v957_v41 = vrot.slane %v774_v23, 3 }
  0xd7   : > { %v4136_v55 = vpop.permute.xlu1 %686  ;;  %v685_v56 = vpop.permute.xlu0 %684  ;;  %v1029_v59 = vsel %vm1025_vm11, %v1020_v51, %v958_v36 }
  0xd8   : > { %v698_v63 = vsel %vm694_vm4, %v685_v56, %v4136_v55  ;;  %v699_v15 = vsel %vm694_vm4, %v4003_v30, %v685_v56  ;;  %v724_v30 = vsel %vm719_vm3, %v3961_v10, %v710_v38  ;;  %v992_v56 = vsel %vm989_vm7, %v837_v11, %v861_v31 }
  0xd9   : > { %v886_v32 = vrot.slane %v698_v63, 4  ;;  %v885_v39 = vrot.slane %v699_v15, 4  ;;  %v909_v22 = vrot.slane %v724_v30, 1 }
  0xdb   : > { %v4138_v57 = vpop.permute.xlu1 %715  ;;  %v4140_v58 = vpop.permute.xlu0 %713  ;;  %v1002_v54 = vsel %vm998_vm8, %v993_v45, %v886_v32  ;;  %v1019_v60 = vsel %vm1016_vm5, %v909_v22, %v933_v33  ;;  %v1001_v61 = vsel %vm998_vm8, %v992_v56, %v885_v39 }
  0xdc   : > { %v1028_v12 = vsel %vm1025_vm11, %v1019_v60, %v957_v41  ;;  %v1011_v13 = vsel %vm1007_vm12, %v1002_v54, %v910_v40  ;;  %v1010_v14 = vsel %vm1007_vm12, %v1001_v61, %v909_v22  ;;  %v721_v31 = vsel %vm719_vm3, %v4140_v58, %v4138_v57 }
  0xdf   : > { %v4168_v16 = vpop.permute.xlu1 %740  ;;  %v739_v19 = vpop.permute.xlu0 %738 }
  0xe0   : > { %v746_v36 = vsel %vm744_vm0, %v739_v19, %v4168_v16  ;;  %v747_v39 = vsel %vm744_vm0, %v4101_v44, %v739_v19 }
  0xe1   : > { %v935_v61 = vrot.slane %v747_v39, 6 }
  0xe3   : > { %v4186_v42 = vpop.permute.xlu1 %786  ;;  %v785_v46 = vpop.permute.xlu0 %784 }
  0xe4   : > { %v798_v10 = vsel %vm794_vm9, %v785_v46, %v4186_v42  ;;  %v799_v38 = vsel %vm794_vm9, %v4052_v50, %v785_v46 }
  0xe5   : > { %3205 = vmatprep.subr.msk.mxu1 %vm971_vm10, %v798_v10 }
  0xe6   : > { %3206 = vmatpush1.msk.msra.mxu1 %vm971_vm10, %v799_v38 }
  0xe7   : > { %v4203_v63 = vpop.permute.xlu1 %640  ;;  %1206 = vmatprep.subr.mxu1 %v1029_v59  ;;  %v639_v50 = vpop.permute.xlu0 %638  ;;  %v936_v59 = vrot.slane %v746_v36, 6 }
  0xe8   : > { %1207 = vmatpush1.msra.mxu1 %v1028_v12  ;;  %v4233_v46 = vsel %vm644_vm1, %v639_v50, %v4203_v63  ;;  %v4238_v22 = vsel %vm644_vm1, %v4111_v2, %v639_v50 }
  0xe9   : > { %1208 = vmatprep.subr.mxu1 %v1011_v13  ;;  %v840_v50 = vrot.slane %v4233_v46, 2 }
  0xea   : > { %1209 = vmatpush1.msra.mxu1 %v1010_v14 }
  0xeb   : > { %v4208_v15 = vpop.permute.xlu1 %665  ;;  %v664_v9 = vpop.permute.xlu0 %663 }
  0xec   : > { %v671_v23 = vsel %vm669_vm2, %v664_v9, %v4208_v15 }
  0xed   : > { %v864_v10 = vrot.slane %v671_v23, 7 }
  0xef   : > { %v4210_v20 = vpop.permute.xlu1 %765  ;;  %v764_v21 = vpop.permute.xlu0 %763  ;;  %v995_v23 = vsel %vm989_vm7, %v840_v50, %v864_v10 }
  0xf0   : > { %v771_v44 = vsel %vm769_vm6, %v764_v21, %v4210_v20  ;;  %v772_v19 = vsel %vm769_vm6, %v4131_v53, %v764_v21 }
  0xf1   : > { %v960_v12 = vrot.slane %v771_v44, 3  ;;  %v959_v14 = vrot.slane %v772_v19, 3 }
  0xf3   : > { %v610_v30 = vpop.permute.xlu1 %609  ;;  %v608_v26 = vpop.permute.xlu0 %607 }
  0xf4   : > { %v623_v32 = vsel %vm619_vm13, %v608_v26, %v610_v30  ;;  %v624_v33 = vsel %vm619_vm13, %v4078_v25, %v608_v26  ;;  %v672_v25 = vsel %vm669_vm2, %v4121_v48, %v664_v9 }
  0xf5   : > { %v813_v40 = vrot.slane %v624_v33, 5  ;;  %v814_v41 = vrot.slane %v623_v32, 5  ;;  %v863_v60 = vrot.slane %v672_v25, 7 }
  0xf7   : > { %v4249_v38 = vpop.permute.xlu1 %690  ;;  %v689_v45 = vpop.permute.xlu0 %688  ;;  %v975_v2 = vsel %vm971_vm10, %v3873_v3, %v814_v41  ;;  %v974_v51 = vsel %vm971_vm10, %v3814_v0, %v813_v40  ;;  %v722_v3 = vsel %vm719_vm3, %v4088_v37, %v4140_v58 }
  0xf8   : > { %v696_v48 = vsel %vm694_vm4, %v689_v45, %v4249_v38  ;;  %v697_v54 = vsel %vm694_vm4, %v4136_v55, %v689_v45  ;;  %v984_v56 = vsel %vm980_vm14, %v975_v2, %v838_v35  ;;  %v983_v53 = vsel %vm980_vm14, %v974_v51, %v837_v11 }
  0xf9   : > { %v888_v0 = vrot.slane %v696_v48, 4  ;;  %1210 = vmatprep.subr.mxu1 %v984_v56  ;;  %v887_v13 = vrot.slane %v697_v54, 4  ;;  %v912_v55 = vrot.slane %v721_v31, 1  ;;  %v839_v35 = vrot.slane %v4238_v22, 2 }
  0xfa   : > { %1211 = vmatpush1.msra.mxu1 %v983_v53  ;;  %v911_v58 = vrot.slane %v722_v3, 1 }
  0xfb   : > { %v4269_v11 = vpop.permute.xlu1 %790  ;;  %3207 = vmatmul.mubr.msk.f32.vlgmr.msra.gmra.mxu1 %vm1054_vm15, %v4099_v43  ;;  %v789_v37 = vpop.permute.xlu0 %788  ;;  %v1022_v26 = vsel %vm1016_vm5, %v912_v55, %v936_v59  ;;  %v1004_v31 = vsel %vm998_vm8, %v995_v23, %v888_v0  ;;  %v994_v32 = vsel %vm989_vm7, %v839_v35, %v863_v60 }
  0xfc   : > { %v797_v9 = vsel %vm794_vm9, %v4186_v42, %v789_v37  ;;  %v796_v21 = vsel %vm794_vm9, %v789_v37, %v4269_v11  ;;  %1250 = vmatprep.mubr.f32.mxu1 %v5949_v7  ;;  %v1031_v42 = vsel %vm1025_vm11, %v1022_v26, %v960_v12  ;;  %v1021_v33 = vsel %vm1016_vm5, %v911_v58, %v935_v61 }
  0xfd   : > { %3211 = vmatprep.subr.msk.mxu0 %vm971_vm10, %v796_v21  ;;  %v1003_v36 = vsel %vm998_vm8, %v994_v32, %v887_v13  ;;  %v1030_v41 = vsel %vm1025_vm11, %v1021_v33, %v959_v14  ;;  %v1013_v25 = vsel %vm1007_vm12, %v1004_v31, %v912_v55 }
  0xfe   : > { %3212 = vmatpush1.msk.msra.mxu0 %vm971_vm10, %v797_v9  ;;  %v1012_v19 = vsel %vm1007_vm12, %v1003_v36, %v911_v58 }
  0xff   : > { %v4289_v39 = vpop.permute.xlu1 %613  ;;  %3208 = vmatmul.mubr.msk.f32.gmra.mxu1 %vm1054_vm15, %v4109_v1  ;;  %1295 = vmatprep.subr.mxu0 %v1031_v42  ;;  %v612_v40 = vpop.permute.xlu0 %611 }
 0x100   : > { %v621_v46 = vsel %vm619_vm13, %v612_v40, %v4289_v39  ;;  %v622_v22 = vsel %vm619_vm13, %v610_v30, %v612_v40  ;;  %1296 = vmatpush1.msra.mxu0 %v1030_v41  ;;  %1256 = vmatprep.mubr.f32.mxu1 %v5949_v7 }
 0x101   : > { %v815_v10 = vrot.slane %v622_v22, 5  ;;  %v816_v44 = vrot.slane %v621_v46, 5  ;;  %1297 = vmatprep.subr.mxu0 %v1013_v25 }
 0x102   : > { %1298 = vmatpush1.msra.mxu0 %v1012_v19 }
 0x103   : > { %v743_v45 = vpop.permute.xlu1 %742  ;;  %3209 = vmatmul.mubr.msk.f32.gmra.mxu1 %vm1054_vm15, %v4119_v47  ;;  %v718_v2 = vpop.permute.xlu0 %717  ;;  %v977_v51 = vsel %vm971_vm10, %v3904_v5, %v816_v44  ;;  %v976_v30 = vsel %vm971_vm10, %v3876_v4, %v815_v10 }
 0x104   : > { %1262 = vmatprep.mubr.f32.mxu1 %v5949_v7  ;;  %v986_v48 = vsel %vm980_vm14, %v977_v51, %v840_v50  ;;  %v985_v54 = vsel %vm980_vm14, %v976_v30, %v839_v35  ;;  %v752_v3 = vsel %vm744_vm0, %v743_v45, %v3979_v17  ;;  %v727_v4 = vsel %vm719_vm3, %v718_v2, %v3981_v18 }
 0x105   : > { %1299 = vmatprep.subr.mxu0 %v986_v48  ;;  %v745_v17 = vsel %vm744_vm0, %v4168_v16, %v743_v45  ;;  %v720_v18 = vsel %vm719_vm3, %v4138_v57, %v718_v2  ;;  %v938_v60 = vrot.slane %v752_v3, 6  ;;  %v914_v0 = vrot.slane %v727_v4, 1 }
 0x106   : > { %1300 = vmatpush1.msra.mxu0 %v985_v54  ;;  %v937_v37 = vrot.slane %v745_v17, 6  ;;  %vm2279_vm0 = vcmp.lt.s32.totalorder %v4001_v29, 98  ;;  %vm2204_vm3 = vcmp.lt.s32.totalorder %v4001_v29, 113 }
 0x107   : > { %v668_v56 = vpop.permute.xlu1 %667  ;;  %3210 = vmatmul.mubr.msk.f32.gmra.mxu1 %vm1054_vm15, %v4129_v52  ;;  %v643_v53 = vpop.permute.xlu0 %642  ;;  %3213 = vmatmul.mubr.msk.f32.vlgmr.msra.gmra.mxu0 %vm1054_vm15, %v4099_v43 }
 0x108   : > { %v677_v5 = vsel %vm669_vm2, %v668_v56, %v3997_v27  ;;  %v652_v59 = vsel %vm644_vm1, %v643_v53, %v3999_v28  ;;  %1422 = vmatprep.mubr.f32.mxu1 %v5949_v7  ;;  %v670_v27 = vsel %vm669_vm2, %v4208_v15, %v668_v56  ;;  %v645_v28 = vsel %vm644_vm1, %v4203_v63, %v643_v53 }
 0x109   : > { %1339 = vmatprep.mubr.f32.mxu0 %v5949_v7  ;;  %v866_v61 = vrot.slane %v677_v5, 7  ;;  %v842_v50 = vrot.slane %v652_v59, 2  ;;  %v865_v55 = vrot.slane %v670_v27, 7  ;;  %v841_v35 = vrot.slane %v645_v28, 2 }
 0x10b   : > { %v693_v12 = vpop.permute.xlu1 %692  ;;  %v768_v16 = vpop.permute.xlu0 %767  ;;  %3214 = vmatmul.mubr.msk.f32.gmra.mxu0 %vm1054_vm15, %v4109_v1  ;;  %v997_v26 = vsel %vm989_vm7, %v842_v50, %v866_v61  ;;  %v996_v40 = vsel %vm989_vm7, %v841_v35, %v865_v55 }
 0x10c   : > { %v695_v57 = vsel %vm694_vm4, %v4249_v38, %v693_v12  ;;  %v702_v15 = vsel %vm694_vm4, %v693_v12, %v4050_v49  ;;  %v770_v63 = vsel %vm769_vm6, %v4210_v20, %v768_v16  ;;  %v777_v13 = vsel %vm769_vm6, %v768_v16, %v4014_v34  ;;  %1345 = vmatprep.mubr.f32.mxu0 %v5949_v7 }
 0x10d   : > { %v890_v14 = vrot.slane %v702_v15, 4  ;;  %v913_v38 = vrot.slane %v720_v18, 1  ;;  %v889_v58 = vrot.slane %v695_v57, 4  ;;  %v962_v9 = vrot.slane %v777_v13, 3 }
 0x10e   : > { %v961_v49 = vrot.slane %v770_v63, 3  ;;  %v1024_v20 = vsel %vm1016_vm5, %v914_v0, %v938_v60  ;;  %vm2254_vm4 = vcmp.lt.s32.totalorder %v4001_v29, 111  ;;  %vm2357_vm6 = vcmask 261120  }
 0x10f   : > { %v616_v21 = vpop.permute.xlu1 %615  ;;  %v793_v23 = vpop.permute.xlu0 %792  ;;  %3215 = vmatmul.mubr.msk.f32.gmra.mxu0 %vm1054_vm15, %v4119_v47 }
 0x110   : > { %v620_v34 = vsel %vm619_vm13, %v4289_v39, %v616_v21  ;;  %v627_v31 = vsel %vm619_vm13, %v616_v21, %v4076_v24  ;;  %v795_v32 = vsel %vm794_vm9, %v4269_v11, %v793_v23  ;;  %v802_v42 = vsel %vm794_vm9, %v793_v23, %v4061_v62  ;;  %1351 = vmatprep.mubr.f32.mxu0 %v5949_v7 }
 0x111   : > { %v817_v33 = vrot.slane %v620_v34, 5  ;;  %v818_v36 = vrot.slane %v627_v31, 5  ;;  %3217 = vmatprep.subr.msk.mxu1 %vm971_vm10, %v802_v42  ;;  %v1006_v39 = vsel %vm998_vm8, %v997_v26, %v890_v14  ;;  %v1033_v24 = vsel %vm1025_vm11, %v1024_v20, %v962_v9 }
 0x112   : > { %3218 = vmatpush1.msk.msra.mxu1 %vm971_vm10, %v795_v32  ;;  %v1023_v11 = vsel %vm1016_vm5, %v913_v38, %v937_v37  ;;  %v1005_v62 = vsel %vm998_vm8, %v996_v40, %v889_v58  ;;  %v1015_v22 = vsel %vm1007_vm12, %v1006_v39, %v914_v0  ;;  %vm2229_vm5 = vcmp.lt.s32.totalorder %v4001_v29, 112 }
 0x113   : > { %1384 = vmatprep.subr.mxu1 %v1033_v24  ;;  %v1032_v41 = vsel %vm1025_vm11, %v1023_v11, %v961_v49  ;;  %v979_v46 = vsel %vm971_vm10, %v3953_v8, %v818_v36  ;;  %v978_v25 = vsel %vm971_vm10, %v3907_v6, %v817_v33  ;;  %3216 = vmatmul.mubr.msk.f32.gmra.mxu0 %vm1054_vm15, %v4129_v52 }
 0x114   : > { %1385 = vmatpush1.msra.mxu1 %v1032_v41  ;;  %v1014_v10 = vsel %vm1007_vm12, %v1005_v62, %v913_v38  ;;  %v988_v44 = vsel %vm980_vm14, %v979_v46, %v842_v50  ;;  %v987_v19 = vsel %vm980_vm14, %v978_v25, %v841_v35 }
 0x115   : > { %1386 = vmatprep.subr.mxu1 %v1015_v22 }
 0x116   : > { %1387 = vmatpush1.msra.mxu1 %v1014_v10 }
 0x117   : > { %1388 = vmatprep.subr.mxu1 %v988_v44 }
 0x118   : > { %1389 = vmatpush1.msra.mxu1 %v987_v19 }
 0x119   : > { %3219 = vmatmul.mubr.msk.f32.vlgmr.msra.gmra.mxu1 %vm1054_vm15, %v4099_v43 }
 0x11a   : > { %1428 = vmatprep.mubr.f32.mxu1 %v5949_v7 }
 0x11c   : > { %v4402_v43 = vpop.permute.xlu0 %1036  ;;  %v4407_v30 = vpop.permute.xlu1 %1041 }
 0x11d   : > { %3220 = vmatmul.mubr.msk.f32.gmra.mxu1 %vm1054_vm15, %v4109_v1 }
 0x11e   : > { %1434 = vmatprep.mubr.f32.mxu1 %v5949_v7 }
 0x120   : > { %v4424_v18 = vpop.permute.xlu1 %1046  ;;  %v4444_v63 = vpop.permute.xlu0 %1051 }
 0x121   : > { %3221 = vmatmul.mubr.msk.f32.gmra.mxu1 %vm1054_vm15, %v4119_v47 }
 0x122   : > { %1440 = vmatprep.mubr.f32.mxu1 %v5949_v7  ;;  %v426_v7 = vld [vmem:[#allocation2 + $0x2e8] sm:$0xff] }
 0x125   : > { %3222 = vmatmul.mubr.msk.f32.gmra.mxu1 %vm1054_vm15, %v4129_v52 }
 0x187   : > { %v1157_v6 = vpop.f32.mrf.mxu0 }
 0x188   : > { %v4410_v47 = vadd.f32 %v1157_v6, %v4402_v43 }
 0x189   : > { %v1159_v8 = vpop.f32.mrf.mxu0 }
 0x18a   : > { %v4405_v51 = vadd.f32 %v1159_v8, %v4402_v43  ;;  %v1447_v59 = vmax.f32 %v4410_v47, 0.0 }
 0x18b   : > { %v1163_v45 = vpop.f32.mrf.mxu0 }
 0x18c   : > { %v1448_v52 = vmax.f32 %v4405_v51, 0.0  ;;  %v4472_v34 = vadd.f32 %v1163_v45, %v4407_v30 }
 0x18d   : > { %v1165_v2 = vpop.f32.mrf.mxu0 }
 0x18e   : > { %v4417_v56 = vadd.f32 %v1165_v2, %v4407_v30  ;;  %v1455_v62 = vmax.f32 %v4472_v34, 0.0 }
 0x18f   : > { %v1169_v1 = vpop.f32.mrf.mxu0 }
 0x190   : > { %v5962_v0 = vmax.f32 %v4417_v56, 0.0  ;;  %v4441_v16 = vadd.f32 %v1169_v1, %v4424_v18 }
 0x191   : > { %v1171_v53 = vpop.f32.mrf.mxu0 }
 0x192   : > { %v1463_v37 = vmax.f32 %v4441_v16, 0.0  ;;  %v4494_v22 = vadd.f32 %v1171_v53, %v4424_v18 }
 0x193   : > { %v1175_v61 = vpop.f32.mrf.mxu0 }
 0x194   : > { %v5961_v1 = vmax.f32 %v4494_v22, 0.0 }
 0x195   : > { %v1177_v55 = vpop.f32.mrf.mxu0 }
 0x196   : > { %v4457_v9 = vadd.f32 %v1177_v55, %v4444_v63 }
 0x198   : > { %v5964_v42 = vmax.f32 %v4457_v9, 0.0 }
 0x1bb   : > { %v1246_v48 = vpop.f32.mrf.mxu1 }
 0x1bc   : > { %v4413_v54 = vadd.f32 %v1246_v48, %v4402_v43 }
 0x1bd   : > { %v1248_v3 = vpop.f32.mrf.mxu1 }
 0x1be   : > { %v1449_v4 = vmax.f32 %v4413_v54, 0.0  ;;  %v4421_v5 = vadd.f32 %v1248_v3, %v4402_v43 }
 0x1bf   : > { %v1252_v17 = vpop.f32.mrf.mxu1 }
 0x1c0   : > { %v3455_v27 = vpack.i.bf16 %v1449_v4, %v1448_v52  ;;  %v1450_v28 = vmax.f32 %v4421_v5, 0.0  ;;  %v4432_v60 = vadd.f32 %v1252_v17, %v4407_v30 }
 0x1c1   : > { %v1254_v50 = vpop.f32.mrf.mxu1 }
 0x1c2   : > { %v3460_v12 = vpack.i.bf16 %v1447_v59, %v1450_v28  ;;  %3456 = vrot.lane.b32.xlu1 %v3455_v27, %s3718_s22  ;;  %v1457_v57 = vmax.f32 %v4432_v60, 0.0  ;;  %v4475_v31 = vadd.f32 %v1254_v50, %v4407_v30  ;;  %v4524_v27 = vadd.f32 %v1175_v61, %v4444_v63 }
 0x1c3   : > { %v1258_v15 = vpop.f32.mrf.mxu1 }
 0x1c4   : > { %3461 = vrot.lane.b32.xlu0 %v3460_v12, %s3718_s22  ;;  %v3470_v13 = vpack.i.bf16 %v1457_v57, %v5962_v0  ;;  %v1458_v41 = vmax.f32 %v4475_v31, 0.0  ;;  %v4506_v19 = vadd.f32 %v1258_v15, %v4424_v18  ;;  %v440_v0 = vld [vmem:[#allocation2 + $0x358] sm:$0xff] }
 0x1c5   : > { %v1260_v35 = vpop.f32.mrf.mxu1 }
 0x1c6   : > { %v4452_v14 = vadd.f32 %v1260_v35, %v4424_v18  ;;  %v3475_v48 = vpack.i.bf16 %v1455_v62, %v1458_v41  ;;  %v1465_v17 = vmax.f32 %v4506_v19, 0.0 }
 0x1c7   : > { %v1264_v38 = vpop.f32.mrf.mxu1  ;;  %v1335_v21 = vpop.f32.mrf.mxu0 }
 0x1c8   : > { %v5959_v58 = vmax.f32 %v4452_v14, 0.0  ;;  %v4460_v49 = vadd.f32 %v1264_v38, %v4444_v63  ;;  %3471 = vrot.lane.b32.xlu0 %v3470_v13, %s3718_s22  ;;  %v4469_v26 = vadd.f32 %v1335_v21, %v4402_v43  ;;  %v3480_v38 = vpack.i.bf16 %v1465_v17, %v5961_v1  ;;  %v373_v1 = vld [vmem:[#allocation2 + $0x140] sm:$0xff] }
 0x1c9   : > { %v1337_v32 = vpop.f32.mrf.mxu0  ;;  %v1266_v6 = vpop.f32.mrf.mxu1  ;;  %v5957_v21 = vmax.f32 %v4524_v27, 0.0 }
 0x1ca   : > { %v3485_v23 = vpack.i.bf16 %v1463_v37, %v5959_v58  ;;  %v5963_v20 = vmax.f32 %v4460_v49, 0.0  ;;  %v4479_v33 = vadd.f32 %v1337_v32, %v4402_v43  ;;  %v1451_v40 = vmax.f32 %v4469_v26, 0.0  ;;  %v442_v58 = vld [vmem:[#allocation2 + $0x368] sm:$0xff] }
 0x1cb   : > { %v1341_v36 = vpop.f32.mrf.mxu0  ;;  %v4516_v53 = vadd.f32 %v1266_v6, %v4444_v63  ;;  %v5976_v60 = vmax.f32 %v4460_v49, 0.0 }
 0x1cc   : > { %3486 = vrot.lane.b32.xlu0 %v3485_v23, %s3718_s22  ;;  %v3490_v39 = vpack.i.bf16 %v5963_v20, %v5964_v42  ;;  %v5955_v24 = vmax.f32 %v4479_v33, 0.0  ;;  %v4489_v11 = vadd.f32 %v1341_v36, %v4407_v30  ;;  %v372_v20 = vld [vmem:[#allocation2 + $0x138] sm:$0xff] }
 0x1cd   : > { %v1343_v46 = vpop.f32.mrf.mxu0  ;;  %v5956_v35 = vmax.f32 %v4516_v53, 0.0 }
 0x1ce   : > { %v3465_v25 = vpack.i.bf16 %v5955_v24, %v1451_v40  ;;  %v5960_v10 = vmax.f32 %v4489_v11, 0.0  ;;  %v4502_v44 = vadd.f32 %v1343_v46, %v4407_v30  ;;  %v418_v24 = vld [vmem:[#allocation2 + $0x2a8] sm:$0xff] }
 0x1cf   : > { %v1347_v8 = vpop.f32.mrf.mxu0  ;;  %v3495_v46 = vpack.i.bf16 %v5957_v21, %v5956_v35  ;;  %v376_v21 = vld [vmem:[#allocation2 + $0x158] sm:$0xff] }
 0x1d0   : > { %3491 = vrot.lane.b32.xlu0 %v3490_v39, %s3718_s22  ;;  %v5953_v45 = vmax.f32 %v4502_v44, 0.0  ;;  %3466 = vrot.lane.b32.xlu1 %v3465_v25, %s3718_s22  ;;  %v4527_v12 = vadd.f32 %v1347_v8, %v4424_v18  ;;  %v364_v8 = vld [vmem:[#allocation2 + $0xf8] sm:$0xff] }
 0x1d1   : > { %v1349_v2 = vpop.f32.mrf.mxu0  ;;  %1735 = vmatprep.subr.mxu0 %v364_v8  ;;  %v422_v8 = vld [vmem:[#allocation2 + $0x2c8] sm:$0xff] }
 0x1d2   : > { %v3500_v3 = vpack.i.bf16 %v5953_v45, %v5960_v10  ;;  %v4530_v15 = vadd.f32 %v1349_v2, %v4424_v18  ;;  %v5958_v23 = vmax.f32 %v4527_v12, 0.0  ;;  %v363_v2 = vld [vmem:[#allocation2 + $0xf0] sm:$0xff]  ;;  %v357_v45 = vld [vmem:[#allocation2 + $0xc0] sm:$0xff] }
 0x1d3   : > { %v1353_v50 = vpop.f32.mrf.mxu0  ;;  %1736 = vmatpush1.msra.mxu0 %v363_v2  ;;  %v356_v2 = vld [vmem:[#allocation2 + $0xb8] sm:$0xff] }
 0x1d4   : > { %v4533_v13 = vadd.f32 %v1353_v50, %v4444_v63  ;;  %3476 = vrot.lane.b32.xlu1 %v3475_v48, %s3718_s22  ;;  %3501 = vrot.lane.b32.xlu0 %v3500_v3, %s3718_s22  ;;  %v5951_v32 = vmax.f32 %v4530_v15, 0.0  ;;  %v362_v48 = vld [vmem:[#allocation2 + $0xe8] sm:$0xff]  ;;  %v361_v3 = vld [vmem:[#allocation2 + $0xe0] sm:$0xff]  ;;  %v428_v50 = vld [vmem:[#allocation2 + $0x2f8] sm:$0xff] }
 0x1d5   : > { %v1355_v55 = vpop.f32.mrf.mxu0  ;;  %1824 = vmatprep.subr.mxu1 %v428_v50  ;;  %1737 = vmatprep.subr.mxu0 %v362_v48  ;;  %v421_v50 = vld [vmem:[#allocation2 + $0x2c0] sm:$0xff]  ;;  %v420_v48 = vld [vmem:[#allocation2 + $0x2b8] sm:$0xff] }
 0x1d6   : > { %v4539_v61 = vadd.f32 %v1355_v55, %v4444_v63  ;;  %v5954_v36 = vmax.f32 %v4533_v13, 0.0  ;;  %v3505_v6 = vpack.i.bf16 %v5951_v32, %v5958_v23  ;;  %v360_v55 = vld [vmem:[#allocation2 + $0xd8] sm:$0xff]  ;;  %v359_v32 = vld [vmem:[#allocation2 + $0xd0] sm:$0xff]  ;;  %1738 = vmatpush1.msra.mxu0 %v361_v3 }
 0x1d7   : > { %1739 = vmatprep.subr.mxu0 %v360_v55  ;;  %v419_v3 = vld [vmem:[#allocation2 + $0x2b0] sm:$0xff]  ;;  %v417_v55 = vld [vmem:[#allocation2 + $0x2a0] sm:$0xff] }
 0x1d8   : > { %v5952_v39 = vmax.f32 %v4539_v61, 0.0  ;;  %3481 = vrot.lane.b32.xlu1 %v3480_v38, %s3718_s22  ;;  %v427_v38 = vld [vmem:[#allocation2 + $0x2f0] sm:$0xff]  ;;  %1740 = vmatpush1.msra.mxu0 %v359_v32 }
 0x1d9   : > { %1825 = vmatpush1.msra.mxu1 %v427_v38  ;;  %v354_v38 = vld [vmem:[#allocation2 + $0xa8] sm:$0xff]  ;;  %v351_v32 = vld [vmem:[#allocation2 + $0x90] sm:$0xff] }
 0x1da   : > { %v3510_v25 = vpack.i.bf16 %v5952_v39, %v5954_v36  ;;  %v425_v39 = vld [vmem:[#allocation2 + $0x2e0] sm:$0xff]  ;;  %1826 = vmatprep.subr.mxu1 %v426_v7  ;;  %v355_v36 = vld [vmem:[#allocation2 + $0xb0] sm:$0xff] }
 0x1db   : > { %1827 = vmatpush1.msra.mxu1 %v425_v39  ;;  %v353_v7 = vld [vmem:[#allocation2 + $0xa0] sm:$0xff]  ;;  %v352_v39 = vld [vmem:[#allocation2 + $0x98] sm:$0xff] }
 0x1dc   : > { %3511 = vrot.lane.b32.xlu0 %v3510_v25, %s3718_s22  ;;  %3496 = vrot.lane.b32.xlu1 %v3495_v46, %s3718_s22  ;;  %v358_v46 = vld [vmem:[#allocation2 + $0xc8] sm:$0xff]  ;;  %v424_v25 = vld [vmem:[#allocation2 + $0x2d8] sm:$0xff] }
 0x1dd   : > { %1828 = vmatprep.subr.mxu1 %v424_v25  ;;  %1741 = vmatprep.subr.mxu0 %v358_v46  ;;  %v416_v25 = vld [vmem:[#allocation2 + $0x298] sm:$0xff]  ;;  %v350_v46 = vld [vmem:[#allocation2 + $0x88] sm:$0xff] }
 0x1de   : > { %1742 = vmatpush1.msra.mxu0 %v357_v45  ;;  %v349_v45 = vld [vmem:[#allocation2 + $0x80] sm:$0xff] }
 0x1df   : > { %1743 = vmatprep.subr.mxu0 %v356_v2  ;;  %v348_v2 = vld [vmem:[#allocation2 + $0x78] sm:$0xff] }
 0x1e0   : > { %3506 = vrot.lane.b32.xlu1 %v3505_v6, %s3718_s22  ;;  %v423_v6 = vld [vmem:[#allocation2 + $0x2d0] sm:$0xff]  ;;  %1744 = vmatpush1.msra.mxu0 %v355_v36 }
 0x1e1   : > { %1829 = vmatpush1.msra.mxu1 %v423_v6  ;;  %1745 = vmatprep.subr.mxu0 %v354_v38  ;;  %v415_v6 = vld [vmem:[#allocation2 + $0x290] sm:$0xff]  ;;  %v346_v38 = vld [vmem:[#allocation2 + $0x68] sm:$0xff] }
 0x1e2   : > { %1830 = vmatprep.subr.mxu1 %v422_v8  ;;  %1746 = vmatpush1.msra.mxu0 %v353_v7  ;;  %v414_v8 = vld [vmem:[#allocation2 + $0x288] sm:$0xff]  ;;  %v347_v36 = vld [vmem:[#allocation2 + $0x70] sm:$0xff] }
 0x1e3   : > { %1831 = vmatpush1.msra.mxu1 %v421_v50  ;;  %1747 = vmatprep.subr.mxu0 %v352_v39  ;;  %v413_v50 = vld [vmem:[#allocation2 + $0x280] sm:$0xff]  ;;  %v410_v7 = vld [vmem:[#allocation2 + $0x268] sm:$0xff]  ;;  %v344_v39 = vld [vmem:[#allocation2 + $0x58] sm:$0xff] }
 0x1e4   : > { %1832 = vmatprep.subr.mxu1 %v420_v48  ;;  %1748 = vmatpush1.msra.mxu0 %v351_v32  ;;  %v412_v48 = vld [vmem:[#allocation2 + $0x278] sm:$0xff]  ;;  %v343_v32 = vld [vmem:[#allocation2 + $0x50] sm:$0xff] }
 0x1e5   : > { %1833 = vmatpush1.msra.mxu1 %v419_v3  ;;  %1749 = vmatprep.subr.mxu0 %v350_v46  ;;  %v411_v3 = vld [vmem:[#allocation2 + $0x270] sm:$0xff]  ;;  %v342_v46 = vld [vmem:[#allocation2 + $0x48] sm:$0xff] }
 0x1e6   : > { %1834 = vmatprep.subr.mxu1 %v418_v24  ;;  %1750 = vmatpush1.msra.mxu0 %v349_v45  ;;  %v345_v24 = vld [vmem:[#allocation2 + $0x60] sm:$0xff] }
 0x1e7   : > { %1835 = vmatpush1.msra.mxu1 %v417_v55  ;;  %1751 = vmatprep.subr.mxu0 %v348_v2  ;;  %v409_v55 = vld [vmem:[#allocation2 + $0x260] sm:$0xff]  ;;  %v340_v2 = vld [vmem:[#allocation2 + $0x38] sm:$0xff] }
 0x1e8   : > { %1836 = vmatprep.subr.mxu1 %v416_v25  ;;  %1752 = vmatpush1.msra.mxu0 %v347_v36  ;;  %v408_v25 = vld [vmem:[#allocation2 + $0x258] sm:$0xff]  ;;  %v341_v45 = vld [vmem:[#allocation2 + $0x40] sm:$0xff]  ;;  %v339_v36 = vld [vmem:[#allocation2 + $0x30] sm:$0xff] }
 0x1e9   : > { %1837 = vmatpush1.msra.mxu1 %v415_v6  ;;  %1753 = vmatprep.subr.mxu0 %v346_v38  ;;  %v407_v6 = vld [vmem:[#allocation2 + $0x250] sm:$0xff]  ;;  %v338_v38 = vld [vmem:[#allocation2 + $0x28] sm:$0xff] }
 0x1ea   : > { %1838 = vmatprep.subr.mxu1 %v414_v8  ;;  %1754 = vmatpush1.msra.mxu0 %v345_v24  ;;  %v406_v8 = vld [vmem:[#allocation2 + $0x248] sm:$0xff]  ;;  %v337_v24 = vld [vmem:[#allocation2 + $0x20] sm:$0xff] }
 0x1eb   : > { %1839 = vmatpush1.msra.mxu1 %v413_v50  ;;  %1755 = vmatprep.subr.mxu0 %v344_v39  ;;  %v405_v50 = vld [vmem:[#allocation2 + $0x240] sm:$0xff]  ;;  %v336_v39 = vld [vmem:[#allocation2 + $0x18] sm:$0xff] }
 0x1ec   : > { %1840 = vmatprep.subr.mxu1 %v412_v48  ;;  %1756 = vmatpush1.msra.mxu0 %v343_v32  ;;  %v404_v48 = vld [vmem:[#allocation2 + $0x238] sm:$0xff]  ;;  %v335_v32 = vld [vmem:[#allocation2 + $0x10] sm:$0xff] }
 0x1ed   : > { %1841 = vmatpush1.msra.mxu1 %v411_v3  ;;  %1757 = vmatprep.subr.mxu0 %v342_v46  ;;  %v403_v3 = vld [vmem:[#allocation2 + $0x230] sm:$0xff]  ;;  %v334_v46 = vld [vmem:[#allocation2 + $0x8] sm:$0xff] }
 0x1ee   : > { %1842 = vmatprep.subr.mxu1 %v410_v7  ;;  %1758 = vmatpush1.msra.mxu0 %v341_v45  ;;  %v402_v7 = vld [vmem:[#allocation2 + $0x228] sm:$0xff]  ;;  %v333_v45 = vld [vmem:[#allocation2] sm:$0xff] }
 0x1ef   : > { %1843 = vmatpush1.msra.mxu1 %v409_v55  ;;  %1759 = vmatprep.subr.mxu0 %v340_v2  ;;  %v401_v55 = vld [vmem:[#allocation2 + $0x220] sm:$0xff]  ;;  %v396_v2 = vld [vmem:[#allocation2 + $0x1f8] sm:$0xff] }
 0x1f0   : > { %1844 = vmatprep.subr.mxu1 %v408_v25  ;;  %1760 = vmatpush1.msra.mxu0 %v339_v36  ;;  %v400_v25 = vld [vmem:[#allocation2 + $0x218] sm:$0xff]  ;;  %v395_v36 = vld [vmem:[#allocation2 + $0x1f0] sm:$0xff] }
 0x1f1   : > { %1845 = vmatpush1.msra.mxu1 %v407_v6  ;;  %1761 = vmatprep.subr.mxu0 %v338_v38  ;;  %v399_v6 = vld [vmem:[#allocation2 + $0x210] sm:$0xff]  ;;  %v394_v38 = vld [vmem:[#allocation2 + $0x1e8] sm:$0xff] }
 0x1f2   : > { %1846 = vmatprep.subr.mxu1 %v406_v8  ;;  %1762 = vmatpush1.msra.mxu0 %v337_v24  ;;  %v398_v8 = vld [vmem:[#allocation2 + $0x208] sm:$0xff]  ;;  %v393_v24 = vld [vmem:[#allocation2 + $0x1e0] sm:$0xff] }
 0x1f3   : > { %1847 = vmatpush1.msra.mxu1 %v405_v50  ;;  %1763 = vmatprep.subr.mxu0 %v336_v39  ;;  %v397_v50 = vld [vmem:[#allocation2 + $0x200] sm:$0xff]  ;;  %v392_v39 = vld [vmem:[#allocation2 + $0x1d8] sm:$0xff] }
 0x1f4   : > { %1848 = vmatprep.subr.mxu1 %v404_v48  ;;  %1764 = vmatpush1.msra.mxu0 %v335_v32  ;;  %v460_v48 = vld [vmem:[#allocation2 + $0x3f8] sm:$0xff]  ;;  %v391_v32 = vld [vmem:[#allocation2 + $0x1d0] sm:$0xff] }
 0x1f5   : > { %1849 = vmatpush1.msra.mxu1 %v403_v3  ;;  %1765 = vmatprep.subr.mxu0 %v334_v46  ;;  %v459_v3 = vld [vmem:[#allocation2 + $0x3f0] sm:$0xff]  ;;  %v390_v46 = vld [vmem:[#allocation2 + $0x1c8] sm:$0xff] }
 0x1f6   : > { %1850 = vmatprep.subr.mxu1 %v402_v7  ;;  %1766 = vmatpush1.msra.mxu0 %v333_v45  ;;  %v458_v7 = vld [vmem:[#allocation2 + $0x3e8] sm:$0xff]  ;;  %v389_v45 = vld [vmem:[#allocation2 + $0x1c0] sm:$0xff] }
 0x1f7   : > { %1851 = vmatpush1.msra.mxu1 %v401_v55  ;;  %1767 = vmatprep.subr.mxu0 %v396_v2  ;;  %v457_v55 = vld [vmem:[#allocation2 + $0x3e0] sm:$0xff]  ;;  %v388_v2 = vld [vmem:[#allocation2 + $0x1b8] sm:$0xff] }
 0x1f8   : > { %1852 = vmatprep.subr.mxu1 %v400_v25  ;;  %1768 = vmatpush2.msra.mxu0 %v395_v36  ;;  %v456_v25 = vld [vmem:[#allocation2 + $0x3d8] sm:$0xff]  ;;  %v387_v36 = vld [vmem:[#allocation2 + $0x1b0] sm:$0xff] }
 0x1f9   : > { %1853 = vmatpush1.msra.mxu1 %v399_v6  ;;  %1769 = vmatprep.subr.mxu0 %v394_v38  ;;  %v455_v6 = vld [vmem:[#allocation2 + $0x3d0] sm:$0xff]  ;;  %v386_v38 = vld [vmem:[#allocation2 + $0x1a8] sm:$0xff] }
 0x1fa   : > { %1854 = vmatprep.subr.mxu1 %v398_v8  ;;  %1770 = vmatpush2.msra.mxu0 %v393_v24  ;;  %v454_v8 = vld [vmem:[#allocation2 + $0x3c8] sm:$0xff]  ;;  %v385_v24 = vld [vmem:[#allocation2 + $0x1a0] sm:$0xff] }
 0x1fb   : > { %1855 = vmatpush1.msra.mxu1 %v397_v50  ;;  %1771 = vmatprep.subr.mxu0 %v392_v39  ;;  %v453_v50 = vld [vmem:[#allocation2 + $0x3c0] sm:$0xff]  ;;  %v384_v39 = vld [vmem:[#allocation2 + $0x198] sm:$0xff] }
 0x1fc   : > { %1856 = vmatprep.subr.mxu1 %v460_v48  ;;  %1772 = vmatpush2.msra.mxu0 %v391_v32  ;;  %v452_v48 = vld [vmem:[#allocation2 + $0x3b8] sm:$0xff]  ;;  %v383_v32 = vld [vmem:[#allocation2 + $0x190] sm:$0xff] }
 0x1fd   : > { %1857 = vmatpush2.msra.mxu1 %v459_v3  ;;  %1773 = vmatprep.subr.mxu0 %v390_v46  ;;  %v451_v3 = vld [vmem:[#allocation2 + $0x3b0] sm:$0xff]  ;;  %v1424_v46 = vpop.f32.mrf.mxu1 }
 0x1fe   : > { %1858 = vmatprep.subr.mxu1 %v458_v7  ;;  %1774 = vmatpush2.msra.mxu0 %v389_v45  ;;  %v450_v7 = vld [vmem:[#allocation2 + $0x3a8] sm:$0xff] }
 0x1ff   : > { %1859 = vmatpush2.msra.mxu1 %v457_v55  ;;  %1775 = vmatprep.subr.mxu0 %v388_v2  ;;  %v449_v55 = vld [vmem:[#allocation2 + $0x3a0] sm:$0xff] }
 0x200   : > { %1860 = vmatprep.subr.mxu1 %v456_v25  ;;  %1776 = vmatpush2.msra.mxu0 %v387_v36  ;;  %v382_v25 = vld [vmem:[#allocation2 + $0x188] sm:$0xff]  ;;  %v448_v36 = vld [vmem:[#allocation2 + $0x398] sm:$0xff] }
 0x201   : > { %1861 = vmatpush2.msra.mxu1 %v455_v6  ;;  %1777 = vmatprep.subr.mxu0 %v386_v38  ;;  %v1426_v6 = vpop.f32.mrf.mxu1  ;;  %v447_v38 = vld [vmem:[#allocation2 + $0x390] sm:$0xff] }
 0x202   : > { %1862 = vmatprep.subr.mxu1 %v454_v8  ;;  %1778 = vmatpush2.msra.mxu0 %v385_v24  ;;  %v446_v24 = vld [vmem:[#allocation2 + $0x388] sm:$0xff]  ;;  %v4582_v10 = vadd.f32 %v1426_v6, %v4402_v43 }
 0x203   : > { %1863 = vmatpush2.msra.mxu1 %v453_v50  ;;  %1779 = vmatprep.subr.mxu0 %v384_v39  ;;  %v1430_v45 = vpop.f32.mrf.mxu1  ;;  %v381_v50 = vld [vmem:[#allocation2 + $0x180] sm:$0xff] }
 0x204   : > { %1864 = vmatprep.subr.mxu1 %v452_v48  ;;  %1780 = vmatpush2.msra.mxu0 %v383_v32  ;;  %v380_v48 = vld [vmem:[#allocation2 + $0x178] sm:$0xff]  ;;  %v445_v39 = vld [vmem:[#allocation2 + $0x380] sm:$0xff]  ;;  %v4603_v42 = vadd.f32 %v1430_v45, %v4407_v30 }
 0x205   : > { %1865 = vmatpush2.msra.mxu1 %v451_v3  ;;  %1781 = vmatprep.subr.mxu0 %v382_v25  ;;  %v1432_v8 = vpop.f32.mrf.mxu1  ;;  %v379_v3 = vld [vmem:[#allocation2 + $0x170] sm:$0xff] }
 0x206   : > { %1866 = vmatprep.subr.mxu1 %v450_v7  ;;  %1782 = vmatpush2.msra.mxu0 %v381_v50  ;;  %v378_v7 = vld [vmem:[#allocation2 + $0x168] sm:$0xff]  ;;  %v377_v50 = vld [vmem:[#allocation2 + $0x160] sm:$0xff]  ;;  %v4606_v51 = vadd.f32 %v1432_v8, %v4407_v30  ;;  %v5967_v45 = vmax.f32 %v4603_v42, 0.0 }
 0x207   : > { %1867 = vmatpush2.msra.mxu1 %v449_v55  ;;  %v4566_v2 = vpop.f32.mrf.mxu1  ;;  %1783 = vmatprep.subr.mxu0 %v380_v48  ;;  %v443_v48 = vld [vmem:[#allocation2 + $0x370] sm:$0xff] }
 0x208   : > { %1868 = vmatprep.subr.mxu1 %v448_v36  ;;  %1784 = vmatpush2.msra.mxu0 %v379_v3  ;;  %v444_v36 = vld [vmem:[#allocation2 + $0x378] sm:$0xff]  ;;  %v5966_v8 = vmax.f32 %v4606_v51, 0.0 }
 0x209   : > { %1869 = vmatpush2.msra.mxu1 %v447_v38  ;;  %v4570_v32 = vpop.f32.mrf.mxu1  ;;  %1785 = vmatprep.subr.mxu0 %v378_v7  ;;  %v375_v38 = vld [vmem:[#allocation2 + $0x150] sm:$0xff]  ;;  %v374_v7 = vld [vmem:[#allocation2 + $0x148] sm:$0xff] }
 0x20a   : > { %1870 = vmatprep.subr.mxu1 %v446_v24  ;;  %1786 = vmatpush2.msra.mxu0 %v377_v50  ;;  %v4677_v47 = vadd.f32 %v4570_v32, %v4424_v18 }
 0x20b   : > { %1871 = vmatpush2.msra.mxu1 %v445_v39  ;;  %1787 = vmatprep.subr.mxu0 %v376_v21  ;;  %v441_v39 = vld [vmem:[#allocation2 + $0x360] sm:$0xff]  ;;  %v1442_v50 = vpop.f32.mrf.mxu1  ;;  %v4589_v21 = vadd.f32 %v1424_v46, %v4402_v43  ;;  %v5965_v46 = vmax.f32 %v4582_v10, 0.0 }
 0x20c   : > { %1872 = vmatprep.subr.mxu1 %v444_v36  ;;  %1788 = vmatpush2.msra.mxu0 %v375_v38  ;;  %v371_v38 = vld [vmem:[#allocation2 + $0x130] sm:$0xff]  ;;  %v437_v43 = vld [vmem:[#allocation2 + $0x340] sm:$0xff] }
 0x20d   : > { %1873 = vmatpush2.msra.mxu1 %v443_v48  ;;  %1789 = vmatprep.subr.mxu0 %v374_v7  ;;  %v438_v7 = vld [vmem:[#allocation2 + $0x348] sm:$0xff] }
 0x20e   : > { %1874 = vmatprep.subr.mxu1 %v442_v58  ;;  %1790 = vmatpush2.msra.mxu0 %v373_v1  ;;  %v436_v1 = vld [vmem:[#allocation2 + $0x338] sm:$0xff] }
 0x20f   : > { %1875 = vmatpush2.msra.mxu1 %v441_v39  ;;  %1791 = vmatprep.subr.mxu0 %v372_v20  ;;  %v370_v39 = vld [vmem:[#allocation2 + $0x128] sm:$0xff]  ;;  %v369_v20 = vld [vmem:[#allocation2 + $0x120] sm:$0xff] }
 0x210   : > { %1876 = vmatprep.subr.mxu1 %v440_v0  ;;  %1792 = vmatpush2.msra.mxu0 %v371_v38 }
 0x211   : > { %1793 = vmatprep.subr.mxu0 %v370_v39  ;;  %v434_v39 = vld [vmem:[#allocation2 + $0x328] sm:$0xff] }
 0x212   : > { %1794 = vmatpush2.msra.mxu0 %v369_v20  ;;  %v365_v20 = vld [vmem:[#allocation2 + $0x100] sm:$0xff] }
 0x234   : > { %v4568_v55 = vpop.permute.xlu1 %3456 }
 0x235   : > { %v3459_v25 = vunpack.i.h.bf16 %v4568_v55  ;;  %v3458_v35 = vunpack.i.l.bf16 %v4568_v55 }
 0x236   : > { %v4574_v23 = vpop.permute.xlu0 %3461 }
 0x237   : > { %v3463_v3 = vunpack.i.l.bf16 %v4574_v23  ;;  %v1563_v24 = vsel %vm669_vm2, %v3458_v35, %v3459_v25  ;;  %v5972_v38 = vunpack.i.h.bf16 %v4574_v23 }
 0x238   : > { %v4595_v6 = vmax.f32 %v1448_v52, %v1563_v24  ;;  %v1444_v52 = vpop.f32.mrf.mxu1 }
 0x239   : > { %v1559_v36 = vsel %vm669_vm2, %v3459_v25, %v3463_v3  ;;  %v439_v25 = vld [vmem:[#allocation2 + $0x350] sm:$0xff]  ;;  %v4621_v24 = vadd.f32 %v1444_v52, %v4444_v63  ;;  %v366_v52 = vld [vmem:[#allocation2 + $0x108] sm:$0xff] }
 0x23a   : > { %v4591_v48 = vpop.permute.xlu0 %3471  ;;  %v4599_v58 = vmax.f32 %v1449_v4, %v1559_v36  ;;  %1877 = vmatpush2.msra.mxu1 %v439_v25  ;;  %v5971_v4 = vmax.f32 %v4589_v21, 0.0  ;;  %v368_v36 = vld [vmem:[#allocation2 + $0x118] sm:$0xff]  ;;  %v435_v25 = vld [vmem:[#allocation2 + $0x330] sm:$0xff] }
 0x23b   : > { %1878 = vmatprep.subr.mxu1 %v438_v7  ;;  %1795 = vmatprep.subr.mxu0 %v368_v36  ;;  %v367_v7 = vld [vmem:[#allocation2 + $0x110] sm:$0xff]  ;;  %v3530_v36 = vpack.i.bf16 %v5966_v8, %v5967_v45 }
 0x23c   : > { %v3515_v54 = vpack.i.bf16 %v4599_v58, %v4595_v6  ;;  %1879 = vmatpush2.msra.mxu1 %v437_v43  ;;  %v3520_v30 = vpack.i.bf16 %v5965_v46, %v5971_v4  ;;  %v4625_v43 = vadd.f32 %v1442_v50, %v4444_v63  ;;  %1796 = vmatpush2.msra.mxu0 %v367_v7  ;;  %v433_v46 = vld [vmem:[#allocation2 + $0x320] sm:$0xff]  ;;  %v431_v50 = vld [vmem:[#allocation2 + $0x310] sm:$0xff] }
 0x23d   : > { %1880 = vmatprep.subr.mxu1 %v436_v1  ;;  %1797 = vmatprep.subr.mxu0 %v366_v52  ;;  %v432_v1 = vld [vmem:[#allocation2 + $0x318] sm:$0xff]  ;;  %v1567_v7 = vsel %vm669_vm2, %v5972_v38, %v3458_v35  ;;  %v429_v52 = vld [vmem:[#allocation2 + $0x300] sm:$0xff] }
 0x23e   : > { %v4611_v0 = vpop.permute.xlu0 %3486  ;;  %3516 = vrot.lane.b32.xlu1 %v3515_v54, %s3722_s26  ;;  %1881 = vmatpush2.msra.mxu1 %v435_v25  ;;  %v5968_v25 = vmax.f32 %v4621_v24, 0.0  ;;  %v5969_v8 = vmax.f32 %v4625_v43, 0.0 }
 0x23f   : > { %1882 = vmatprep.subr.mxu1 %v434_v39  ;;  %1798 = vmatpush2.msra.mxu0 %v365_v20  ;;  %v430_v39 = vld [vmem:[#allocation2 + $0x308] sm:$0xff]  ;;  %v3489_v32 = vunpack.i.h.bf16 %v4611_v0 }
 0x240   : > { %1883 = vmatpush2.msra.mxu1 %v433_v46  ;;  %v3540_v35 = vpack.i.bf16 %v5968_v25, %v5969_v8  ;;  %v4673_v8 = vadd.f32 %v4566_v2, %v4424_v18 }
 0x241   : > { %1884 = vmatprep.subr.mxu1 %v432_v1 }
 0x242   : > { %v4627_v54 = vpop.permute.xlu0 %3491  ;;  %3521 = vrot.lane.b32.xlu1 %v3520_v30, %s3718_s22  ;;  %v4635_v63 = vpop.permute.xlu1 %3466  ;;  %1885 = vmatpush2.msra.mxu1 %v431_v50  ;;  %v1469_v38 = vmax.f32 %v4673_v8, 0.0 }
 0x243   : > { %v3468_v30 = vunpack.i.l.bf16 %v4635_v63  ;;  %v5973_v46 = vunpack.i.h.bf16 %v4635_v63  ;;  %1886 = vmatprep.subr.mxu1 %v430_v39 }
 0x244   : > { %1887 = vmatpush2.msra.mxu1 %v429_v52 }
 0x245   : > { %v1555_v55 = vsel %vm669_vm2, %v3463_v3, %v3468_v30  ;;  %v3473_v3 = vunpack.i.l.bf16 %v4591_v48  ;;  %v1551_v18 = vsel %vm669_vm2, %v3468_v30, %v5973_v46  ;;  %v1470_v46 = vmax.f32 %v4677_v47, 0.0 }
 0x246   : > { %3531 = vrot.lane.b32.xlu1 %v3530_v36, %s3718_s22  ;;  %v4655_v20 = vpop.permute.xlu1 %3476  ;;  %v4657_v1 = vpop.permute.xlu0 %3501  ;;  %v4661_v36 = vmax.f32 %v1447_v59, %v1567_v7  ;;  %v4665_v50 = vmax.f32 %v1450_v28, %v1555_v55  ;;  %v3474_v59 = vunpack.i.h.bf16 %v4591_v48  ;;  %v3488_v7 = vunpack.i.l.bf16 %v4611_v0 }
 0x247   : > { %v5970_v39 = vunpack.i.h.bf16 %v4655_v20  ;;  %v3478_v45 = vunpack.i.l.bf16 %v4655_v20  ;;  %v3503_v25 = vunpack.i.l.bf16 %v4657_v1  ;;  %v4712_v34 = vmax.f32 %v1451_v40, %v1551_v18 }
 0x248   : > { %v3525_v5 = vpack.i.bf16 %v4665_v50, %v4661_v36  ;;  %v1564_v18 = vsel %vm669_vm2, %v3473_v3, %v3474_v59  ;;  %v3535_v16 = vpack.i.bf16 %v1470_v46, %v1469_v38 }
 0x249   : > { %v1556_v28 = vsel %vm669_vm2, %v3478_v45, %v3503_v25  ;;  %v1568_v2 = vsel %vm669_vm2, %v5970_v39, %v3473_v3  ;;  %v3493_v39 = vunpack.i.l.bf16 %v4627_v54 }
 0x24a   : > { %3541 = vrot.lane.b32.xlu1 %v3540_v35, %s3718_s22  ;;  %v3482_v52 = vpop.permute.xlu1 %3481  ;;  %3526 = vrot.lane.b32.xlu0 %v3525_v5, %s3722_s26  ;;  %v4698_v48 = vmax.f32 %v1455_v62, %v1568_v2  ;;  %v4702_v55 = vmax.f32 %v1458_v41, %v1556_v28  ;;  %v3494_v35 = vunpack.i.h.bf16 %v4627_v54  ;;  %v1560_v41 = vsel %vm669_vm2, %v3474_v59, %v3478_v45 }
 0x24b   : > { %v3484_v30 = vunpack.i.h.bf16 %v3482_v52  ;;  %v3483_v4 = vunpack.i.l.bf16 %v3482_v52  ;;  %v3504_v28 = vunpack.i.h.bf16 %v4657_v1  ;;  %v4749_v19 = vmax.f32 %v1457_v57, %v1560_v41 }
 0x24c   : > { %v3550_v5 = vpack.i.bf16 %v4702_v55, %v4698_v48  ;;  %v1566_v45 = vsel %vm669_vm2, %v3493_v39, %v3494_v35  ;;  %v5975_v59 = vmax.f32 %v4457_v9, 0.0 }
 0x24d   : > { %v1561_v31 = vsel %vm669_vm2, %v3484_v30, %v3488_v7  ;;  %v1569_v62 = vsel %vm669_vm2, %v3489_v32, %v3483_v4  ;;  %v1565_v52 = vsel %vm669_vm2, %v3483_v4, %v3484_v30  ;;  %v1552_v41 = vsel %vm669_vm2, %v3503_v25, %v3504_v28 }
 0x24e   : > { %v4722_v54 = vpop.permute.xlu1 %3496  ;;  %3551 = vrot.lane.b32.xlu1 %v3550_v5, %s3722_s26  ;;  %1639 = vrot.lane.b32.xlu0 %v4712_v34, %s3722_s26  ;;  %v4729_v26 = vmax.f32 %v1463_v37, %v1569_v62  ;;  %v4733_v40 = vmax.f32 %v1465_v17, %v1561_v31  ;;  %v4755_v5 = vpop.permute.xlu0 %3511  ;;  %v4763_v31 = vmax.f32 %v5975_v59, %v1566_v45  ;;  %v5978_v45 = vmax.f32 %v4494_v22, 0.0 }
 0x24f   : > { %v3498_v2 = vunpack.i.l.bf16 %v4722_v54  ;;  %v5979_v22 = vmax.f32 %v4489_v11, 0.0  ;;  %v5980_v59 = vmax.f32 %v4452_v14, 0.0 }
 0x250   : > { %v3555_v37 = vpack.i.bf16 %v4729_v26, %v4733_v40 }
 0x251   : > { %v1562_v17 = vsel %vm669_vm2, %v3494_v35, %v3498_v2  ;;  %v5977_v35 = vmax.f32 %v4417_v56, 0.0  ;;  %v4785_v56 = vmax.f32 %v5978_v45, %v1565_v52 }
 0x252   : > { %v4757_v3 = vpop.permute.xlu1 %3506  ;;  %3556 = vrot.lane.b32.xlu1 %v3555_v37, %s3722_s26  ;;  %3536 = vrot.lane.b32.xlu0 %v3535_v16, %s3718_s22  ;;  %v4767_v57 = vmax.f32 %v5976_v60, %v1562_v17  ;;  %v3513_v16 = vunpack.i.l.bf16 %v4755_v5  ;;  %v4799_v17 = vmax.f32 %v5979_v22, %v1552_v41  ;;  %v556_v41 = vld [vmem:[#allocation2 + $0x6f8] sm:$0xff] }
 0x253   : > { %v4771_v62 = vmax.f32 %v5977_v35, %v1564_v18  ;;  %v3509_v4 = vunpack.i.h.bf16 %v4757_v3  ;;  %v3508_v30 = vunpack.i.l.bf16 %v4757_v3  ;;  %v3499_v18 = vunpack.i.h.bf16 %v4722_v54  ;;  %2002 = vmatprep.subr.mxu1 %v556_v41 }
 0x254   : > { %v3560_v9 = vpack.i.bf16 %v4767_v57, %v4763_v31  ;;  %v3565_v52 = vpack.i.bf16 %v4785_v56, %v4799_v17  ;;  %v5981_v35 = vmax.f32 %v4527_v12, 0.0  ;;  %v5982_v12 = vmax.f32 %v4524_v27, 0.0 }
 0x255   : > { %v3545_v49 = vpack.i.bf16 %v4749_v19, %v4771_v62  ;;  %v1553_v37 = vsel %vm669_vm2, %v3508_v30, %v3509_v4  ;;  %v1557_v25 = vsel %vm669_vm2, %v3488_v7, %v3508_v30  ;;  %v1558_v7 = vsel %vm669_vm2, %v3498_v2, %v3513_v16  ;;  %v492_v30 = vld [vmem:[#allocation2 + $0x4f8] sm:$0xff] }
 0x256   : > { %3561 = vrot.lane.b32.xlu1 %v3560_v9, %s3722_s26  ;;  %v4805_v60 = vmax.f32 %v5980_v59, %v1557_v25  ;;  %v4809_v45 = vmax.f32 %v5981_v35, %v1553_v37  ;;  %v1570_v11 = vsel %vm669_vm2, %v3499_v18, %v3493_v39  ;;  %1913 = vmatprep.subr.mxu0 %v492_v30  ;;  %v3514_v25 = vunpack.i.h.bf16 %v4755_v5 }
 0x257   : > { %3546 = vrot.lane.b32.xlu0 %v3545_v49, %s3722_s26  ;;  %v4822_v9 = vmax.f32 %v5982_v12, %v1570_v11  ;;  %v5983_v49 = vmax.f32 %v4516_v53, 0.0  ;;  %v5984_v30 = vunpack.i.h.bf16 %v4635_v63  ;;  %v5988_v63 = vmax.f32 %v4589_v21, 0.0 }
 0x258   : > { %v3570_v14 = vpack.i.bf16 %v4809_v45, %v4805_v60  ;;  %v1554_v11 = vsel %vm669_vm2, %v3513_v16, %v3514_v25  ;;  %v5987_v16 = vmax.f32 %v4533_v13, 0.0  ;;  %v5995_v3 = vmax.f32 %v4530_v15, 0.0 }
 0x259   : > { %v4826_v2 = vmax.f32 %v5983_v49, %v1558_v7  ;;  %v5986_v49 = vmax.f32 %v4479_v33, 0.0 }
 0x25b   : > { %3566 = vrot.lane.b32.xlu0 %v3565_v52, %s3722_s26  ;;  %v3575_v39 = vpack.i.bf16 %v4826_v2, %v4822_v9 }
 0x25f   : > { %3571 = vrot.lane.b32.xlu0 %v3570_v14, %s3722_s26  ;;  %v5985_v14 = vunpack.i.h.bf16 %v4574_v23 }
 0x263   : > { %3576 = vrot.lane.b32.xlu0 %v3575_v39, %s3722_s26 }
 0x2b0   : > { %v3517_v37 = vpop.permute.xlu1 %3516 }
 0x2b1   : > { %v3519_v22 = vunpack.i.h.bf16 %v3517_v37  ;;  %v3518_v52 = vunpack.i.l.bf16 %v3517_v37  ;;  %v4854_v37 = vmax.f32 %v5987_v16, %v1554_v11 }
 0x2b3   : > { %v1691_v27 = vsel %vm619_vm13, %v3518_v52, %v3519_v22 }
 0x2b4   : > { %v3522_v59 = vpop.permute.xlu1 %3521  ;;  %v1704_v53 = vmax.f32 %v4595_v6, %v1691_v27 }
 0x2b5   : > { %v3524_v35 = vunpack.i.h.bf16 %v3522_v59  ;;  %v3523_v7 = vunpack.i.l.bf16 %v3522_v59  ;;  %v5989_v59 = vmax.f32 %v4582_v10, 0.0  ;;  %v5990_v10 = vmax.f32 %v4502_v44, 0.0 }
 0x2b6   : > { %1799 = vmatprep.mubr.f32.mxu0 %v1704_v53 }
 0x2b7   : > { %v1547_v41 = vsel %vm669_vm2, %v5984_v30, %v3523_v7  ;;  %v1543_v5 = vsel %vm669_vm2, %v3523_v7, %v3524_v35  ;;  %v1571_v12 = vsel %vm669_vm2, %v3524_v35, %v5985_v14 }
 0x2b8   : > { %v3532_v6 = vpop.permute.xlu1 %3531  ;;  %v4850_v39 = vmax.f32 %v5986_v49, %v1547_v41  ;;  %v4858_v27 = vmax.f32 %v5988_v63, %v1543_v5  ;;  %v4862_v53 = vmax.f32 %v5989_v59, %v1571_v12  ;;  %v5991_v41 = vmax.f32 %v4603_v42, 0.0 }
 0x2b9   : > { %v3534_v23 = vunpack.i.h.bf16 %v3532_v6  ;;  %v3533_v7 = vunpack.i.l.bf16 %v3532_v6 }
 0x2ba   : > { %v3580_v35 = vpack.i.bf16 %v4850_v39, %v4854_v37  ;;  %v3585_v33 = vpack.i.bf16 %v4862_v53, %v4858_v27 }
 0x2bb   : > { %v1544_v13 = vsel %vm669_vm2, %v3533_v7, %v3534_v23  ;;  %v1548_v21 = vsel %vm669_vm2, %v3504_v28, %v3533_v7  ;;  %v491_v7 = vld [vmem:[#allocation2 + $0x4f0] sm:$0xff] }
 0x2bc   : > { %v3542_v11 = vpop.permute.xlu1 %3541  ;;  %3581 = vrot.lane.b32.xlu1 %v3580_v35, %s3722_s26  ;;  %3586 = vrot.lane.b32.xlu0 %v3585_v33, %s3722_s26  ;;  %v4878_v30 = vmax.f32 %v5990_v10, %v1548_v21  ;;  %v4882_v5 = vmax.f32 %v5991_v41, %v1544_v13  ;;  %v4884_v14 = vpop.permute.xlu0 %3526  ;;  %v555_v41 = vld [vmem:[#allocation2 + $0x6f0] sm:$0xff] }
 0x2bd   : > { %v3529_v28 = vunpack.i.h.bf16 %v4884_v14  ;;  %v3528_v12 = vunpack.i.l.bf16 %v4884_v14  ;;  %v3543_v6 = vunpack.i.l.bf16 %v3542_v11  ;;  %v3544_v35 = vunpack.i.h.bf16 %v3542_v11  ;;  %v554_v11 = vld [vmem:[#allocation2 + $0x6e8] sm:$0xff] }
 0x2be   : > { %v3590_v1 = vpack.i.bf16 %v4882_v5, %v4878_v30 }
 0x2bf   : > { %v1687_v44 = vsel %vm619_vm13, %v3519_v22, %v3529_v28  ;;  %v1695_v42 = vsel %vm619_vm13, %v3528_v12, %v3518_v52  ;;  %v5992_v22 = vunpack.i.h.bf16 %v4655_v20  ;;  %v490_v52 = vld [vmem:[#allocation2 + $0x4e8] sm:$0xff]  ;;  %v1550_v21 = vsel %vm669_vm2, %v3514_v25, %v3543_v6  ;;  %v487_v25 = vld [vmem:[#allocation2 + $0x4d0] sm:$0xff] }
 0x2c0   : > { %3591 = vrot.lane.b32.xlu1 %v3590_v1, %s3722_s26  ;;  %v4897_v49 = vpop.permute.xlu1 %3551  ;;  %v4899_v16 = vpop.permute.xlu0 %1639  ;;  %v1703_v63 = vmax.f32 %v4661_v36, %v1695_v42  ;;  %v1705_v10 = vmax.f32 %v4599_v58, %v1687_v44  ;;  %v489_v36 = vld [vmem:[#allocation2 + $0x4e0] sm:$0xff]  ;;  %v1574_v44 = vsel %vm669_vm2, %v3544_v35, %v3499_v18 }
 0x2c1   : > { %v1683_v59 = vsel %vm619_vm13, %v3529_v28, %v4899_v16  ;;  %v1572_v13 = vsel %vm669_vm2, %v3534_v23, %v5992_v22  ;;  %v5993_v23 = vmax.f32 %v4606_v51, 0.0  ;;  %v553_v58 = vld [vmem:[#allocation2 + $0x6e0] sm:$0xff]  ;;  %v486_v51 = vld [vmem:[#allocation2 + $0x4c8] sm:$0xff]  ;;  %v552_v22 = vld [vmem:[#allocation2 + $0x6d8] sm:$0xff] }
 0x2c2   : > { %v1706_v33 = vmax.f32 %v4665_v50, %v1683_v59  ;;  %1800 = vmatmul.mubr.f32.vlgmr.msra.gmra.mxu0 %v1703_v63  ;;  %v488_v50 = vld [vmem:[#allocation2 + $0x4d8] sm:$0xff]  ;;  %v1546_v63 = vsel %vm669_vm2, %v3543_v6, %v3544_v35  ;;  %v551_v6 = vld [vmem:[#allocation2 + $0x6d0] sm:$0xff] }
 0x2c3   : > { %1914 = vmatpush1.msra.mxu0 %v491_v7  ;;  %v4917_v59 = vmax.f32 %v5993_v23, %v1572_v13  ;;  %v5994_v7 = vmax.f32 %v4539_v61, 0.0  ;;  %v485_v61 = vld [vmem:[#allocation2 + $0x4c0] sm:$0xff]  ;;  %v3554_v23 = vunpack.i.h.bf16 %v4897_v49 }
 0x2c4   : > { %v4913_v1 = vpop.permute.xlu1 %3556  ;;  %v3537_v28 = vpop.permute.xlu0 %3536  ;;  %1888 = vmatprep.mubr.f32.mxu1 %v1706_v33  ;;  %1915 = vmatprep.subr.mxu0 %v490_v52 }
 0x2c5   : > { %v3539_v20 = vunpack.i.h.bf16 %v3537_v28  ;;  %v3538_v42 = vunpack.i.l.bf16 %v3537_v28  ;;  %1889 = vmatmul.mubr.f32.vlgmr.msra.gmra.mxu1 %v1705_v10  ;;  %v4927_v33 = vmax.f32 %v5994_v7, %v1550_v21  ;;  %1916 = vmatpush1.msra.mxu0 %v489_v36  ;;  %v5996_v10 = vmax.f32 %v4625_v43, 0.0  ;;  %v483_v43 = vld [vmem:[#allocation2 + $0x4b0] sm:$0xff] }
 0x2c6   : > { %2003 = vmatpush1.msra.mxu1 %v555_v41  ;;  %1917 = vmatprep.subr.mxu0 %v488_v50  ;;  %v550_v50 = vld [vmem:[#allocation2 + $0x6c8] sm:$0xff]  ;;  %v5997_v7 = vmax.f32 %v4621_v24, 0.0 }
 0x2c7   : > { %v1573_v13 = vsel %vm669_vm2, %v3539_v20, %v3489_v32  ;;  %v1545_v54 = vsel %vm669_vm2, %v3538_v42, %v3539_v20  ;;  %v1549_v18 = vsel %vm669_vm2, %v3509_v4, %v3538_v42  ;;  %2004 = vmatprep.subr.mxu1 %v554_v11  ;;  %1918 = vmatpush1.msra.mxu0 %v487_v25  ;;  %v484_v4 = vld [vmem:[#allocation2 + $0x4b8] sm:$0xff]  ;;  %v482_v42 = vld [vmem:[#allocation2 + $0x4a8] sm:$0xff] }
 0x2c8   : > { %v4941_v35 = vmax.f32 %v1470_v46, %v1573_v13  ;;  %v4945_v0 = vmax.f32 %v1469_v38, %v1545_v54  ;;  %v4947_v32 = vpop.permute.xlu1 %3561  ;;  %v4951_v21 = vmax.f32 %v5995_v3, %v1549_v18  ;;  %2005 = vmatpush1.msra.mxu1 %v553_v58  ;;  %v4955_v36 = vmax.f32 %v5996_v10, %v1546_v63 }
 0x2c9   : > { %v3547_v52 = vpop.permute.xlu0 %3546  ;;  %v3553_v46 = vunpack.i.l.bf16 %v4897_v49  ;;  %1919 = vmatprep.subr.mxu0 %v486_v51  ;;  %2006 = vmatprep.subr.mxu1 %v552_v22  ;;  %v3564_v38 = vunpack.i.h.bf16 %v4947_v32  ;;  %v3563_v41 = vunpack.i.l.bf16 %v4947_v32  ;;  %v4979_v51 = vmax.f32 %v5997_v7, %v1574_v44  ;;  %v549_v22 = vld [vmem:[#allocation2 + $0x6c0] sm:$0xff] }
 0x2ca   : > { %v3549_v47 = vunpack.i.h.bf16 %v3547_v52  ;;  %v3548_v8 = vunpack.i.l.bf16 %v3547_v52  ;;  %v3595_v15 = vpack.i.bf16 %v4951_v21, %v4917_v59  ;;  %v3600_v28 = vpack.i.bf16 %v4941_v35, %v4945_v0  ;;  %1920 = vmatpush1.msra.mxu0 %v485_v61  ;;  %2007 = vmatpush1.msra.mxu1 %v551_v6  ;;  %v481_v44 = vld [vmem:[#allocation2 + $0x4a0] sm:$0xff]  ;;  %v548_v6 = vld [vmem:[#allocation2 + $0x6b8] sm:$0xff] }
 0x2cb   : > { %1921 = vmatprep.subr.mxu0 %v484_v4  ;;  %v3559_v13 = vunpack.i.h.bf16 %v4913_v1  ;;  %v3558_v54 = vunpack.i.l.bf16 %v4913_v1  ;;  %2008 = vmatprep.subr.mxu1 %v550_v50 }
 0x2cc   : > { %v1692_v11 = vsel %vm619_vm13, %v3548_v8, %v3549_v47  ;;  %v1696_v20 = vsel %vm619_vm13, %v3553_v46, %v3548_v8  ;;  %3596 = vrot.lane.b32.xlu0 %v3595_v15, %s3722_s26  ;;  %3601 = vrot.lane.b32.xlu1 %v3600_v28, %s3722_s26  ;;  %v1688_v24 = vsel %vm619_vm13, %v3549_v47, %v3554_v23 }
 0x2cd   : > { %v4971_v25 = vpop.permute.xlu0 %3566  ;;  %v1712_v58 = vmax.f32 %v4771_v62, %v1692_v11  ;;  %v1711_v63 = vmax.f32 %v4698_v48, %v1696_v20  ;;  %1922 = vmatpush1.msra.mxu0 %v483_v43  ;;  %v3605_v62 = vpack.i.bf16 %v4955_v36, %v4927_v33  ;;  %v1694_v48 = vsel %vm619_vm13, %v3563_v41, %v3564_v38  ;;  %v480_v11 = vld [vmem:[#allocation2 + $0x498] sm:$0xff] }
 0x2ce   : > { %v3569_v18 = vunpack.i.h.bf16 %v4971_v25  ;;  %v3568_v61 = vunpack.i.l.bf16 %v4971_v25  ;;  %1923 = vmatprep.subr.mxu0 %v482_v42  ;;  %2009 = vmatpush1.msra.mxu1 %v549_v22  ;;  %v1713_v50 = vmax.f32 %v4749_v19, %v1688_v24  ;;  %v1728_v20 = vmax.f32 %v4763_v31, %v1694_v48  ;;  %v479_v42 = vld [vmem:[#allocation2 + $0x490] sm:$0xff]  ;;  %v478_v19 = vld [vmem:[#allocation2 + $0x488] sm:$0xff]  ;;  %v477_v22 = vld [vmem:[#allocation2 + $0x480] sm:$0xff] }
 0x2cf   : > { %1805 = vmatprep.mubr.f32.mxu0 %v1712_v58  ;;  %1924 = vmatpush1.msra.mxu0 %v481_v44  ;;  %v475_v48 = vld [vmem:[#allocation2 + $0x470] sm:$0xff]  ;;  %v542_v44 = vld [vmem:[#allocation2 + $0x688] sm:$0xff] }
 0x2d0   : > { %1806 = vmatmul.mubr.f32.gmra.mxu0 %v1711_v63  ;;  %v1693_v52 = vsel %vm619_vm13, %v3569_v18, %v3558_v54  ;;  %v1684_v3 = vsel %vm619_vm13, %v3554_v23, %v3568_v61  ;;  %v1697_v4 = vsel %vm619_vm13, %v3559_v13, %v3569_v18  ;;  %3606 = vrot.lane.b32.xlu0 %v3605_v62, %s3722_s26  ;;  %v547_v23 = vld [vmem:[#allocation2 + $0x6b0] sm:$0xff]  ;;  %v546_v63 = vld [vmem:[#allocation2 + $0x6a8] sm:$0xff]  ;;  %v545_v18 = vld [vmem:[#allocation2 + $0x6a0] sm:$0xff] }
 0x2d1   : > { %v5005_v10 = vpop.permute.xlu0 %3571  ;;  %1669 = vrot.lane.b32.xlu1 %v4979_v51, %s3722_s26  ;;  %v1720_v47 = vmax.f32 %v4785_v56, %v1693_v52  ;;  %v1714_v8 = vmax.f32 %v4702_v55, %v1684_v3  ;;  %v1719_v15 = vmax.f32 %v4729_v26, %v1697_v4  ;;  %2010 = vmatprep.subr.mxu1 %v548_v6  ;;  %v476_v62 = vld [vmem:[#allocation2 + $0x478] sm:$0xff]  ;;  %v474_v6 = vld [vmem:[#allocation2 + $0x468] sm:$0xff]  ;;  %v541_v52 = vld [vmem:[#allocation2 + $0x680] sm:$0xff] }
 0x2d2   : > { %v3574_v28 = vunpack.i.h.bf16 %v5005_v10  ;;  %v3573_v43 = vunpack.i.l.bf16 %v5005_v10  ;;  %1925 = vmatprep.subr.mxu0 %v480_v11  ;;  %2011 = vmatpush1.msra.mxu1 %v547_v23  ;;  %v473_v3 = vld [vmem:[#allocation2 + $0x460] sm:$0xff]  ;;  %v540_v4 = vld [vmem:[#allocation2 + $0x678] sm:$0xff]  ;;  %v467_v23 = vld [vmem:[#allocation2 + $0x430] sm:$0xff] }
 0x2d3   : > { %1811 = vmatprep.mubr.f32.mxu0 %v1720_v47  ;;  %1894 = vmatprep.mubr.f32.mxu1 %v1714_v8  ;;  %v472_v47 = vld [vmem:[#allocation2 + $0x458] sm:$0xff]  ;;  %v471_v8 = vld [vmem:[#allocation2 + $0x450] sm:$0xff] }
 0x2d4   : > { %1812 = vmatmul.mubr.f32.gmra.mxu0 %v1719_v15  ;;  %1895 = vmatmul.mubr.f32.gmra.mxu1 %v1713_v50  ;;  %v1685_v55 = vsel %vm619_vm13, %v3573_v43, %v3574_v28  ;;  %v1689_v26 = vsel %vm619_vm13, %v3558_v54, %v3573_v43  ;;  %v544_v54 = vld [vmem:[#allocation2 + $0x698] sm:$0xff]  ;;  %v470_v15 = vld [vmem:[#allocation2 + $0x448] sm:$0xff]  ;;  %v537_v43 = vld [vmem:[#allocation2 + $0x660] sm:$0xff] }
 0x2d5   : > { %v5023_v56 = vpop.permute.xlu0 %3576  ;;  %1817 = vmatprep.mubr.f32.mxu0 %v1728_v20  ;;  %v1722_v58 = vmax.f32 %v4805_v60, %v1685_v55  ;;  %v1721_v31 = vmax.f32 %v4733_v40, %v1689_v26  ;;  %1926 = vmatpush1.msra.mxu0 %v479_v42  ;;  %v543_v60 = vld [vmem:[#allocation2 + $0x690] sm:$0xff]  ;;  %v469_v50 = vld [vmem:[#allocation2 + $0x440] sm:$0xff]  ;;  %v536_v11 = vld [vmem:[#allocation2 + $0x658] sm:$0xff] }
 0x2d6   : > { %v3578_v7 = vunpack.i.l.bf16 %v5023_v56  ;;  %1927 = vmatprep.subr.mxu0 %v478_v19  ;;  %2012 = vmatprep.subr.mxu1 %v546_v63  ;;  %v468_v20 = vld [vmem:[#allocation2 + $0x438] sm:$0xff]  ;;  %v535_v42 = vld [vmem:[#allocation2 + $0x650] sm:$0xff]  ;;  %v534_v55 = vld [vmem:[#allocation2 + $0x648] sm:$0xff] }
 0x2d7   : > { %1900 = vmatprep.mubr.f32.mxu1 %v1722_v58  ;;  %1928 = vmatpush1.msra.mxu0 %v477_v22  ;;  %v466_v26 = vld [vmem:[#allocation2 + $0x428] sm:$0xff]  ;;  %v533_v19 = vld [vmem:[#allocation2 + $0x640] sm:$0xff]  ;;  %v464_v63 = vld [vmem:[#allocation2 + $0x418] sm:$0xff] }
 0x2d8   : > { %1901 = vmatmul.mubr.f32.gmra.mxu1 %v1721_v31  ;;  %v1698_v40 = vsel %vm619_vm13, %v3578_v7, %v3563_v41  ;;  %1929 = vmatprep.subr.mxu0 %v476_v62  ;;  %v539_v41 = vld [vmem:[#allocation2 + $0x670] sm:$0xff]  ;;  %v465_v58 = vld [vmem:[#allocation2 + $0x420] sm:$0xff]  ;;  %v532_v31 = vld [vmem:[#allocation2 + $0x638] sm:$0xff] }
 0x2d9   : > { %v1727_v24 = vmax.f32 %v4822_v9, %v1698_v40  ;;  %2013 = vmatpush1.msra.mxu1 %v545_v18  ;;  %1930 = vmatpush1.msra.mxu0 %v475_v48  ;;  %v538_v9 = vld [vmem:[#allocation2 + $0x668] sm:$0xff]  ;;  %v531_v22 = vld [vmem:[#allocation2 + $0x630] sm:$0xff]  ;;  %v529_v40 = vld [vmem:[#allocation2 + $0x620] sm:$0xff] }
 0x2da   : > { %2014 = vmatprep.subr.mxu1 %v544_v54  ;;  %1931 = vmatprep.subr.mxu0 %v474_v6  ;;  %v463_v18 = vld [vmem:[#allocation2 + $0x410] sm:$0xff]  ;;  %v530_v62 = vld [vmem:[#allocation2 + $0x628] sm:$0xff]  ;;  %v524_v48 = vld [vmem:[#allocation2 + $0x5f8] sm:$0xff] }
 0x2db   : > { %1818 = vmatmul.mubr.f32.gmra.mxu0 %v1727_v24  ;;  %2015 = vmatpush1.msra.mxu1 %v543_v60  ;;  %v462_v54 = vld [vmem:[#allocation2 + $0x408] sm:$0xff]  ;;  %v461_v60 = vld [vmem:[#allocation2 + $0x400] sm:$0xff]  ;;  %v528_v24 = vld [vmem:[#allocation2 + $0x618] sm:$0xff] }
 0x2dc   : > { %2016 = vmatprep.subr.mxu1 %v542_v44  ;;  %1932 = vmatpush1.msra.mxu0 %v473_v3  ;;  %v527_v44 = vld [vmem:[#allocation2 + $0x610] sm:$0xff]  ;;  %v522_v3 = vld [vmem:[#allocation2 + $0x5e8] sm:$0xff] }
 0x2dd   : > { %2017 = vmatpush1.msra.mxu1 %v541_v52  ;;  %1933 = vmatprep.subr.mxu0 %v472_v47  ;;  %v523_v6 = vld [vmem:[#allocation2 + $0x5f0] sm:$0xff]  ;;  %v526_v52 = vld [vmem:[#allocation2 + $0x608] sm:$0xff]  ;;  %v521_v47 = vld [vmem:[#allocation2 + $0x5e0] sm:$0xff] }
 0x2de   : > { %2018 = vmatprep.subr.mxu1 %v540_v4  ;;  %1934 = vmatpush1.msra.mxu0 %v471_v8  ;;  %v525_v4 = vld [vmem:[#allocation2 + $0x600] sm:$0xff]  ;;  %v520_v8 = vld [vmem:[#allocation2 + $0x5d8] sm:$0xff] }
 0x2df   : > { %2019 = vmatpush1.msra.mxu1 %v539_v41  ;;  %1935 = vmatprep.subr.mxu0 %v470_v15  ;;  %v588_v41 = vld [vmem:[#allocation2 + $0x7f8] sm:$0xff]  ;;  %v519_v15 = vld [vmem:[#allocation2 + $0x5d0] sm:$0xff] }
 0x2e0   : > { %2020 = vmatprep.subr.mxu1 %v538_v9  ;;  %1936 = vmatpush1.msra.mxu0 %v469_v50  ;;  %v587_v9 = vld [vmem:[#allocation2 + $0x7f0] sm:$0xff]  ;;  %v518_v50 = vld [vmem:[#allocation2 + $0x5c8] sm:$0xff] }
 0x2e1   : > { %2021 = vmatpush1.msra.mxu1 %v537_v43  ;;  %1937 = vmatprep.subr.mxu0 %v468_v20  ;;  %v586_v43 = vld [vmem:[#allocation2 + $0x7e8] sm:$0xff]  ;;  %v517_v20 = vld [vmem:[#allocation2 + $0x5c0] sm:$0xff] }
 0x2e2   : > { %2022 = vmatprep.subr.mxu1 %v536_v11  ;;  %1938 = vmatpush1.msra.mxu0 %v467_v23  ;;  %v585_v11 = vld [vmem:[#allocation2 + $0x7e0] sm:$0xff]  ;;  %v516_v23 = vld [vmem:[#allocation2 + $0x5b8] sm:$0xff] }
 0x2e3   : > { %2023 = vmatpush1.msra.mxu1 %v535_v42  ;;  %1939 = vmatprep.subr.mxu0 %v466_v26  ;;  %v584_v42 = vld [vmem:[#allocation2 + $0x7d8] sm:$0xff]  ;;  %v515_v26 = vld [vmem:[#allocation2 + $0x5b0] sm:$0xff] }
 0x2e4   : > { %2024 = vmatprep.subr.mxu1 %v534_v55  ;;  %1940 = vmatpush1.msra.mxu0 %v465_v58  ;;  %v583_v55 = vld [vmem:[#allocation2 + $0x7d0] sm:$0xff]  ;;  %v514_v58 = vld [vmem:[#allocation2 + $0x5a8] sm:$0xff] }
 0x2e5   : > { %2025 = vmatpush1.msra.mxu1 %v533_v19  ;;  %1941 = vmatprep.subr.mxu0 %v464_v63  ;;  %v582_v19 = vld [vmem:[#allocation2 + $0x7c8] sm:$0xff]  ;;  %v513_v63 = vld [vmem:[#allocation2 + $0x5a0] sm:$0xff] }
 0x2e6   : > { %2026 = vmatprep.subr.mxu1 %v532_v31  ;;  %1942 = vmatpush1.msra.mxu0 %v463_v18  ;;  %v581_v31 = vld [vmem:[#allocation2 + $0x7c0] sm:$0xff]  ;;  %v512_v18 = vld [vmem:[#allocation2 + $0x598] sm:$0xff] }
 0x2e7   : > { %2027 = vmatpush1.msra.mxu1 %v531_v22  ;;  %1943 = vmatprep.subr.mxu0 %v462_v54  ;;  %v580_v22 = vld [vmem:[#allocation2 + $0x7b8] sm:$0xff]  ;;  %v511_v54 = vld [vmem:[#allocation2 + $0x590] sm:$0xff] }
 0x2e8   : > { %2028 = vmatprep.subr.mxu1 %v530_v62  ;;  %1944 = vmatpush1.msra.mxu0 %v461_v60  ;;  %v579_v62 = vld [vmem:[#allocation2 + $0x7b0] sm:$0xff]  ;;  %v510_v60 = vld [vmem:[#allocation2 + $0x588] sm:$0xff] }
 0x2e9   : > { %2029 = vmatpush1.msra.mxu1 %v529_v40  ;;  %1945 = vmatprep.subr.mxu0 %v524_v48  ;;  %v578_v40 = vld [vmem:[#allocation2 + $0x7a8] sm:$0xff]  ;;  %v509_v48 = vld [vmem:[#allocation2 + $0x580] sm:$0xff] }
 0x2ea   : > { %2030 = vmatprep.subr.mxu1 %v528_v24  ;;  %1946 = vmatpush2.msra.mxu0 %v523_v6  ;;  %v577_v24 = vld [vmem:[#allocation2 + $0x7a0] sm:$0xff]  ;;  %v508_v6 = vld [vmem:[#allocation2 + $0x578] sm:$0xff] }
 0x2eb   : > { %2031 = vmatpush1.msra.mxu1 %v527_v44  ;;  %1947 = vmatprep.subr.mxu0 %v522_v3  ;;  %v576_v44 = vld [vmem:[#allocation2 + $0x798] sm:$0xff]  ;;  %v507_v3 = vld [vmem:[#allocation2 + $0x570] sm:$0xff] }
 0x2ec   : > { %2032 = vmatprep.subr.mxu1 %v526_v52  ;;  %1948 = vmatpush2.msra.mxu0 %v521_v47  ;;  %v575_v52 = vld [vmem:[#allocation2 + $0x790] sm:$0xff]  ;;  %v506_v47 = vld [vmem:[#allocation2 + $0x568] sm:$0xff] }
 0x2ed   : > { %2033 = vmatpush1.msra.mxu1 %v525_v4  ;;  %1949 = vmatprep.subr.mxu0 %v520_v8  ;;  %v574_v4 = vld [vmem:[#allocation2 + $0x788] sm:$0xff]  ;;  %v505_v8 = vld [vmem:[#allocation2 + $0x560] sm:$0xff] }
 0x2ee   : > { %2034 = vmatprep.subr.mxu1 %v588_v41  ;;  %1950 = vmatpush2.msra.mxu0 %v519_v15  ;;  %v573_v41 = vld [vmem:[#allocation2 + $0x780] sm:$0xff]  ;;  %v504_v15 = vld [vmem:[#allocation2 + $0x558] sm:$0xff] }
 0x2ef   : > { %2035 = vmatpush2.msra.mxu1 %v587_v9  ;;  %1951 = vmatprep.subr.mxu0 %v518_v50  ;;  %v572_v9 = vld [vmem:[#allocation2 + $0x778] sm:$0xff]  ;;  %v503_v50 = vld [vmem:[#allocation2 + $0x550] sm:$0xff] }
 0x2f0   : > { %2036 = vmatprep.subr.mxu1 %v586_v43  ;;  %1952 = vmatpush2.msra.mxu0 %v517_v20  ;;  %v571_v43 = vld [vmem:[#allocation2 + $0x770] sm:$0xff]  ;;  %v502_v20 = vld [vmem:[#allocation2 + $0x548] sm:$0xff] }
 0x2f1   : > { %2037 = vmatpush2.msra.mxu1 %v585_v11  ;;  %1953 = vmatprep.subr.mxu0 %v516_v23  ;;  %v570_v11 = vld [vmem:[#allocation2 + $0x768] sm:$0xff]  ;;  %v501_v23 = vld [vmem:[#allocation2 + $0x540] sm:$0xff] }
 0x2f2   : > { %2038 = vmatprep.subr.mxu1 %v584_v42  ;;  %1954 = vmatpush2.msra.mxu0 %v515_v26  ;;  %v569_v42 = vld [vmem:[#allocation2 + $0x760] sm:$0xff]  ;;  %v500_v26 = vld [vmem:[#allocation2 + $0x538] sm:$0xff] }
 0x2f3   : > { %2039 = vmatpush2.msra.mxu1 %v583_v55  ;;  %1955 = vmatprep.subr.mxu0 %v514_v58  ;;  %v568_v55 = vld [vmem:[#allocation2 + $0x758] sm:$0xff]  ;;  %v499_v58 = vld [vmem:[#allocation2 + $0x530] sm:$0xff] }
 0x2f4   : > { %2040 = vmatprep.subr.mxu1 %v582_v19  ;;  %1956 = vmatpush2.msra.mxu0 %v513_v63  ;;  %v567_v19 = vld [vmem:[#allocation2 + $0x750] sm:$0xff]  ;;  %v498_v63 = vld [vmem:[#allocation2 + $0x528] sm:$0xff] }
 0x2f5   : > { %2041 = vmatpush2.msra.mxu1 %v581_v31  ;;  %1957 = vmatprep.subr.mxu0 %v512_v18  ;;  %v566_v31 = vld [vmem:[#allocation2 + $0x748] sm:$0xff]  ;;  %v497_v18 = vld [vmem:[#allocation2 + $0x520] sm:$0xff] }
 0x2f6   : > { %2042 = vmatprep.subr.mxu1 %v580_v22  ;;  %1958 = vmatpush2.msra.mxu0 %v511_v54  ;;  %v565_v22 = vld [vmem:[#allocation2 + $0x740] sm:$0xff]  ;;  %v496_v54 = vld [vmem:[#allocation2 + $0x518] sm:$0xff] }
 0x2f7   : > { %2043 = vmatpush2.msra.mxu1 %v579_v62  ;;  %1959 = vmatprep.subr.mxu0 %v510_v60  ;;  %v564_v62 = vld [vmem:[#allocation2 + $0x738] sm:$0xff]  ;;  %v495_v60 = vld [vmem:[#allocation2 + $0x510] sm:$0xff] }
 0x2f8   : > { %2044 = vmatprep.subr.mxu1 %v578_v40  ;;  %1960 = vmatpush2.msra.mxu0 %v509_v48  ;;  %v563_v40 = vld [vmem:[#allocation2 + $0x730] sm:$0xff]  ;;  %v494_v48 = vld [vmem:[#allocation2 + $0x508] sm:$0xff] }
 0x2f9   : > { %2045 = vmatpush2.msra.mxu1 %v577_v24  ;;  %1961 = vmatprep.subr.mxu0 %v508_v6  ;;  %v562_v24 = vld [vmem:[#allocation2 + $0x728] sm:$0xff]  ;;  %v493_v6 = vld [vmem:[#allocation2 + $0x500] sm:$0xff] }
 0x2fa   : > { %2046 = vmatprep.subr.mxu1 %v576_v44  ;;  %1962 = vmatpush2.msra.mxu0 %v507_v3  ;;  %v561_v44 = vld [vmem:[#allocation2 + $0x720] sm:$0xff]  ;;  %v559_v3 = vld [vmem:[#allocation2 + $0x710] sm:$0xff] }
 0x2fb   : > { %2047 = vmatpush2.msra.mxu1 %v575_v52  ;;  %1963 = vmatprep.subr.mxu0 %v506_v47  ;;  %v560_v52 = vld [vmem:[#allocation2 + $0x718] sm:$0xff]  ;;  %v557_v47 = vld [vmem:[#allocation2 + $0x700] sm:$0xff] }
 0x2fc   : > { %2048 = vmatprep.subr.mxu1 %v574_v4  ;;  %1964 = vmatpush2.msra.mxu0 %v505_v8  ;;  %v558_v4 = vld [vmem:[#allocation2 + $0x708] sm:$0xff] }
 0x2fd   : > { %2049 = vmatpush2.msra.mxu1 %v573_v41  ;;  %1965 = vmatprep.subr.mxu0 %v504_v15  ;;  %v3579_v41 = vunpack.i.h.bf16 %v5023_v56 }
 0x2fe   : > { %2050 = vmatprep.subr.mxu1 %v572_v9  ;;  %1966 = vmatpush2.msra.mxu0 %v503_v50 }
 0x2ff   : > { %2051 = vmatpush2.msra.mxu1 %v571_v43  ;;  %1967 = vmatprep.subr.mxu0 %v502_v20  ;;  %v1690_v20 = vsel %vm619_vm13, %v3564_v38, %v3579_v41 }
 0x300   : > { %2052 = vmatprep.subr.mxu1 %v570_v11  ;;  %1968 = vmatpush2.msra.mxu0 %v501_v23  ;;  %v1729_v38 = vmax.f32 %v4767_v57, %v1690_v20 }
 0x301   : > { %2053 = vmatpush2.msra.mxu1 %v569_v42  ;;  %1969 = vmatprep.subr.mxu0 %v500_v26 }
 0x302   : > { %2054 = vmatprep.subr.mxu1 %v568_v55  ;;  %1970 = vmatpush2.msra.mxu0 %v499_v58 }
 0x303   : > { %2055 = vmatpush2.msra.mxu1 %v567_v19  ;;  %1971 = vmatprep.subr.mxu0 %v498_v63 }
 0x304   : > { %2056 = vmatprep.subr.mxu1 %v566_v31  ;;  %1972 = vmatpush2.msra.mxu0 %v497_v18 }
 0x305   : > { %2057 = vmatpush2.msra.mxu1 %v565_v22  ;;  %1973 = vmatprep.subr.mxu0 %v496_v54 }
 0x306   : > { %2058 = vmatprep.subr.mxu1 %v564_v62  ;;  %1974 = vmatpush2.msra.mxu0 %v495_v60 }
 0x307   : > { %2059 = vmatpush2.msra.mxu1 %v563_v40  ;;  %1975 = vmatprep.subr.mxu0 %v494_v48 }
 0x308   : > { %2060 = vmatprep.subr.mxu1 %v562_v24  ;;  %1976 = vmatpush2.msra.mxu0 %v493_v6 }
 0x309   : > { %2061 = vmatpush2.msra.mxu1 %v561_v44 }
 0x30a   : > { %2062 = vmatprep.subr.mxu1 %v560_v52 }
 0x30b   : > { %2063 = vmatpush2.msra.mxu1 %v559_v3 }
 0x30c   : > { %2064 = vmatprep.subr.mxu1 %v558_v4  ;;  %v5998_v4 = vmov 0.0  }
 0x30d   : > { %2065 = vmatpush2.msra.mxu1 %v557_v47 }
 0x32e   : > { %v3582_v8 = vpop.permute.xlu1 %3581  ;;  %v3587_v9 = vpop.permute.xlu0 %3586 }
 0x32f   : > { %v3584_v15 = vunpack.i.h.bf16 %v3582_v8  ;;  %v3583_v43 = vunpack.i.l.bf16 %v3582_v8  ;;  %v3589_v50 = vunpack.i.h.bf16 %v3587_v9  ;;  %v3588_v11 = vunpack.i.l.bf16 %v3587_v9 }
 0x331   : > { %v1679_v42 = vsel %vm619_vm13, %v4899_v16, %v3584_v15  ;;  %v1686_v23 = vsel %vm619_vm13, %v3579_v41, %v3583_v43  ;;  %v1675_v55 = vsel %vm619_vm13, %v3584_v15, %v3588_v11  ;;  %v1699_v16 = vsel %vm619_vm13, %v3589_v50, %v3528_v12 }
 0x332   : > { %v1707_v26 = vmax.f32 %v4712_v34, %v1679_v42  ;;  %v3592_v19 = vpop.permute.xlu1 %3591  ;;  %v1730_v58 = vmax.f32 %v4826_v2, %v1686_v23  ;;  %v1708_v32 = vmax.f32 %v4850_v39, %v1675_v55  ;;  %v1671_v22 = vsel %vm619_vm13, %v3588_v11, %v3589_v50 }
 0x333   : > { %v3594_v31 = vunpack.i.h.bf16 %v3592_v19  ;;  %v3593_v63 = vunpack.i.l.bf16 %v3592_v19  ;;  %v1710_v34 = vmax.f32 %v4862_v53, %v1699_v16  ;;  %v1709_v12 = vmax.f32 %v4858_v27, %v1671_v22 }
 0x334   : > { %1906 = vmatprep.mubr.f32.mxu1 %v1730_v58  ;;  %1977 = vmatprep.mubr.f32.mxu0 %v1708_v32 }
 0x335   : > { %1907 = vmatmul.mubr.f32.gmra.mxu1 %v1729_v38  ;;  %1978 = vmatmul.mubr.f32.vlgmr.msra.gmra.mxu0 %v1707_v26  ;;  %v1676_v2 = vsel %vm619_vm13, %v3593_v63, %v3594_v31  ;;  %v1680_v57 = vsel %vm619_vm13, %v3568_v61, %v3593_v63 }
 0x336   : > { %2066 = vmatprep.mubr.f32.mxu1 %v1710_v34  ;;  %v1716_v39 = vmax.f32 %v4878_v30, %v1676_v2  ;;  %v1715_v14 = vmax.f32 %v4799_v17, %v1680_v57 }
 0x338   : > { %1983 = vmatprep.mubr.f32.mxu0 %v1716_v39 }
 0x339   : > { %1984 = vmatmul.mubr.f32.gmra.mxu0 %v1715_v14  ;;  %2067 = vmatmul.mubr.f32.vlgmr.msra.gmra.mxu1 %v1709_v12 }
 0x33e   : > { %v3597_v53 = vpop.permute.xlu0 %3596  ;;  %v3602_v18 = vpop.permute.xlu1 %3601 }
 0x33f   : > { %v3599_v62 = vunpack.i.h.bf16 %v3597_v53  ;;  %v3598_v54 = vunpack.i.l.bf16 %v3597_v53  ;;  %v3604_v40 = vunpack.i.h.bf16 %v3602_v18  ;;  %v3603_v60 = vunpack.i.l.bf16 %v3602_v18 }
 0x341   : > { %v1677_v25 = vsel %vm619_vm13, %v3599_v62, %v3603_v60  ;;  %v1700_v30 = vsel %vm619_vm13, %v3598_v54, %v3553_v46  ;;  %v1681_v17 = vsel %vm619_vm13, %v3574_v28, %v3599_v62  ;;  %v1672_v27 = vsel %vm619_vm13, %v3594_v31, %v3598_v54 }
 0x342   : > { %v3607_v61 = vpop.permute.xlu0 %3606  ;;  %v1724_v48 = vmax.f32 %v4951_v21, %v1677_v25  ;;  %v1718_v44 = vmax.f32 %v4917_v59, %v1700_v30  ;;  %v1723_v6 = vmax.f32 %v4809_v45, %v1681_v17  ;;  %v1717_v49 = vmax.f32 %v4882_v5, %v1672_v27 }
 0x343   : > { %v1670_v24 = vpop.permute.xlu1 %1669  ;;  %v3609_v52 = vunpack.i.h.bf16 %v3607_v61  ;;  %v3608_v46 = vunpack.i.l.bf16 %v3607_v61  ;;  %v1701_v10 = vsel %vm619_vm13, %v3604_v40, %v3559_v13  ;;  %v1673_v21 = vsel %vm619_vm13, %v3603_v60, %v3604_v40 }
 0x344   : > { %1989 = vmatprep.mubr.f32.mxu0 %v1724_v48  ;;  %2072 = vmatprep.mubr.f32.mxu1 %v1718_v44  ;;  %v1726_v28 = vmax.f32 %v4941_v35, %v1701_v10  ;;  %v1702_v45 = vsel %vm619_vm13, %v1670_v24, %v3578_v7  ;;  %v1725_v13 = vmax.f32 %v4945_v0, %v1673_v21 }
 0x345   : > { %1990 = vmatmul.mubr.f32.gmra.mxu0 %v1723_v6  ;;  %2073 = vmatmul.mubr.f32.gmra.mxu1 %v1717_v49  ;;  %v1678_v5 = vsel %vm619_vm13, %v3608_v46, %v3609_v52  ;;  %v1682_v1 = vsel %vm619_vm13, %v3583_v43, %v3608_v46  ;;  %v1674_v56 = vsel %vm619_vm13, %v3609_v52, %v1670_v24 }
 0x346   : > { %2078 = vmatprep.mubr.f32.mxu1 %v1726_v28  ;;  %v1732_v59 = vmax.f32 %v4927_v33, %v1678_v5  ;;  %v1731_v35 = vmax.f32 %v4854_v37, %v1682_v1  ;;  %v1734_v7 = vmax.f32 %v4979_v51, %v1702_v45  ;;  %v1733_v3 = vmax.f32 %v4955_v36, %v1674_v56 }
 0x348   : > { %1995 = vmatprep.mubr.f32.mxu0 %v1732_v59  ;;  %v2092_v59 = vld [vmem:[%s5942_s2 + $0x8] sm:$0xff] }
 0x349   : > { %1996 = vmatmul.mubr.f32.gmra.mxu0 %v1731_v35  ;;  %2079 = vmatmul.mubr.f32.gmra.mxu1 %v1725_v13 }
 0x34a   : > { %2084 = vmatprep.mubr.f32.mxu1 %v1734_v7  ;;  %2434 = vmatprep.mubr.f32.mxu0 %v2092_v59 }
 0x34d   : > { %2085 = vmatmul.mubr.f32.gmra.mxu1 %v1733_v3 }
 0x34e   : > { %2523 = vmatprep.mubr.f32.mxu1 %v5998_v4 }
 0x382   : > { %v1801_v47 = vpop.f32.mrf.mxu0 }
 0x384   : > { %v1803_v33 = vpop.f32.mrf.mxu0 }
 0x385   : > { %v1890_v41 = vpop.f32.mrf.mxu1 }
 0x386   : > { %v1891_v55 = vadd.f32 %v1890_v41, %v1801_v47 }
 0x387   : > { %v1892_v8 = vpop.f32.mrf.mxu1 }
 0x388   : > { %v1893_v58 = vadd.f32 %v1892_v8, %v1803_v33  ;;  %v3223_v33 = vld [vmem:[%s5944_s4 + $0x20] sm:$0xff] }
 0x390   : > { %v1807_v37 = vpop.f32.mrf.mxu0 }
 0x392   : > { %v1809_v0 = vpop.f32.mrf.mxu0 }
 0x394   : > { %v1896_v9 = vpop.f32.mrf.mxu1  ;;  %v1813_v15 = vpop.f32.mrf.mxu0 }
 0x395   : > { %v1897_v57 = vadd.f32 %v1896_v9, %v1807_v37  ;;  %v3224_v37 = vld [vmem:[%s5944_s4 + $0x28] sm:$0xff] }
 0x396   : > { %v1898_v43 = vpop.f32.mrf.mxu1  ;;  %v1815_v50 = vpop.f32.mrf.mxu0 }
 0x397   : > { %v1899_v14 = vadd.f32 %v1898_v43, %v1809_v0  ;;  %v3225_v0 = vld [vmem:[%s5944_s4 + $0x30] sm:$0xff] }
 0x398   : > { %v1902_v11 = vpop.f32.mrf.mxu1 }
 0x399   : > { %v1903_v25 = vadd.f32 %v1902_v11, %v1813_v15  ;;  %v3226_v15 = vld [vmem:[%s5944_s4 + $0x38] sm:$0xff] }
 0x39a   : > { %v1904_v20 = vpop.f32.mrf.mxu1 }
 0x39b   : > { %v5106_v51 = vpop.f32.mrf.mxu0  ;;  %v1905_v17 = vadd.f32 %v1904_v20, %v1815_v50 }
 0x39d   : > { %v5108_v42 = vpop.f32.mrf.mxu0 }
 0x3f5   : > { %v5110_v36 = vpop.f32.mrf.mxu1  ;;  %v1979_v23 = vpop.f32.mrf.mxu0 }
 0x3f6   : > { %v1980_v32 = vadd.f32 %v1979_v23, %v1891_v55  ;;  %v1909_v52 = vadd.f32 %v5110_v36, %v5106_v51 }
 0x3f7   : > { %v5112_v26 = vpop.f32.mrf.mxu1  ;;  %v1981_v19 = vpop.f32.mrf.mxu0 }
 0x3f8   : > { %v1982_v63 = vadd.f32 %v1981_v19, %v1893_v58  ;;  %v1911_v10 = vadd.f32 %v5112_v26, %v5108_v42 }
 0x3f9   : > { %v2068_v31 = vpop.f32.mrf.mxu1  ;;  %v1985_v34 = vpop.f32.mrf.mxu0 }
 0x3fa   : > { %v5114_v38 = vadd.f32 %v2068_v31, %v1980_v32  ;;  %v1986_v12 = vadd.f32 %v1985_v34, %v1897_v57 }
 0x3fb   : > { %v2070_v16 = vpop.f32.mrf.mxu1  ;;  %v1987_v39 = vpop.f32.mrf.mxu0 }
 0x3fc   : > { %v5116_v22 = vadd.f32 %v2070_v16, %v1982_v63  ;;  %2188 = vrot.lane.b32.xlu0 %v5114_v38, %s3725_s29  ;;  %v1988_v18 = vadd.f32 %v1987_v39, %v1899_v14 }
 0x3fe   : > { %2196 = vrot.lane.b32.xlu1 %v5116_v22, %s3725_s29 }
 0x400   : > { %2164 = vrot.lane.b32.xlu0 %v5114_v38, %s3717_s21 }
 0x402   : > { %2172 = vrot.lane.b32.xlu1 %v5116_v22, %s3717_s21 }
 0x404   : > { %2140 = vrot.lane.b32.xlu0 %v5114_v38, %s3722_s26 }
 0x405   : > { %v2074_v2 = vpop.f32.mrf.mxu1  ;;  %v1991_v40 = vpop.f32.mrf.mxu0 }
 0x406   : > { %2148 = vrot.lane.b32.xlu1 %v5116_v22, %s3722_s26  ;;  %v5136_v62 = vadd.f32 %v2074_v2, %v1986_v12  ;;  %v1992_v27 = vadd.f32 %v1991_v40, %v1903_v25 }
 0x407   : > { %v2076_v53 = vpop.f32.mrf.mxu1  ;;  %v1993_v30 = vpop.f32.mrf.mxu0 }
 0x408   : > { %2288 = vrot.lane.b32.xlu0 %v5114_v38, %s3726_s30  ;;  %v5140_v54 = vadd.f32 %v2076_v53, %v1988_v18  ;;  %v1994_v24 = vadd.f32 %v1993_v30, %v1905_v17 }
 0x409   : > { %v2080_v60 = vpop.f32.mrf.mxu1  ;;  %v1997_v6 = vpop.f32.mrf.mxu0 }
 0x40a   : > { %2296 = vrot.lane.b32.xlu1 %v5116_v22, %s3726_s30  ;;  %v5160_v48 = vadd.f32 %v2080_v60, %v1992_v27  ;;  %v1998_v28 = vadd.f32 %v1997_v6, %v1909_v52 }
 0x40b   : > { %v2082_v61 = vpop.f32.mrf.mxu1  ;;  %v1999_v46 = vpop.f32.mrf.mxu0 }
 0x40c   : > { %2263 = vrot.lane.b32.xlu0 %v5114_v38, %s3727_s9  ;;  %v5164_v44 = vadd.f32 %v2082_v61, %v1994_v24  ;;  %v2000_v45 = vadd.f32 %v1999_v46, %v1911_v10 }
 0x40d   : > { %v2086_v49 = vpop.f32.mrf.mxu1 }
 0x40e   : > { %2271 = vrot.lane.b32.xlu1 %v5116_v22, %s3727_s9  ;;  %v5188_v5 = vadd.f32 %v2086_v49, %v1998_v28 }
 0x40f   : > { %v2088_v21 = vpop.f32.mrf.mxu1 }
 0x410   : > { %2190 = vrot.lane.b32.xlu0 %v5136_v62, %s3725_s29  ;;  %v5192_v1 = vadd.f32 %v2088_v21, %v2000_v45 }
 0x412   : > { %2198 = vrot.lane.b32.xlu1 %v5140_v54, %s3725_s29 }
 0x414   : > { %2166 = vrot.lane.b32.xlu0 %v5136_v62, %s3717_s21 }
 0x416   : > { %2174 = vrot.lane.b32.xlu1 %v5140_v54, %s3717_s21 }
 0x418   : > { %2142 = vrot.lane.b32.xlu0 %v5136_v62, %s3722_s26 }
 0x41a   : > { %2150 = vrot.lane.b32.xlu1 %v5140_v54, %s3722_s26 }
 0x41c   : > { %2290 = vrot.lane.b32.xlu0 %v5136_v62, %s3726_s30 }
 0x41e   : > { %2298 = vrot.lane.b32.xlu1 %v5140_v54, %s3726_s30 }
 0x420   : > { %2265 = vrot.lane.b32.xlu0 %v5136_v62, %s3727_s9 }
 0x422   : > { %2273 = vrot.lane.b32.xlu1 %v5140_v54, %s3727_s9 }
 0x424   : > { %2192 = vrot.lane.b32.xlu0 %v5160_v48, %s3725_s29 }
 0x426   : > { %2200 = vrot.lane.b32.xlu1 %v5164_v44, %s3725_s29 }
 0x428   : > { %2168 = vrot.lane.b32.xlu0 %v5160_v48, %s3717_s21 }
 0x42a   : > { %2176 = vrot.lane.b32.xlu1 %v5164_v44, %s3717_s21 }
 0x42c   : > { %2144 = vrot.lane.b32.xlu0 %v5160_v48, %s3722_s26 }
 0x42e   : > { %2152 = vrot.lane.b32.xlu1 %v5164_v44, %s3722_s26 }
 0x430   : > { %2292 = vrot.lane.b32.xlu0 %v5160_v48, %s3726_s30 }
 0x432   : > { %2300 = vrot.lane.b32.xlu1 %v5164_v44, %s3726_s30 }
 0x434   : > { %2267 = vrot.lane.b32.xlu0 %v5160_v48, %s3727_s9 }
 0x436   : > { %2275 = vrot.lane.b32.xlu1 %v5164_v44, %s3727_s9 }
 0x438   : > { %2194 = vrot.lane.b32.xlu0 %v5188_v5, %s3725_s29 }
 0x43a   : > { %2202 = vrot.lane.b32.xlu1 %v5192_v1, %s3725_s29 }
 0x43c   : > { %2242 = vrot.lane.b32.xlu0 %v5160_v48, %s3728_s10 }
 0x43e   : > { %2250 = vrot.lane.b32.xlu1 %v5164_v44, %s3728_s10 }
 0x440   : > { %2170 = vrot.lane.b32.xlu0 %v5188_v5, %s3717_s21 }
 0x442   : > { %2178 = vrot.lane.b32.xlu1 %v5192_v1, %s3717_s21 }
 0x444   : > { %2146 = vrot.lane.b32.xlu0 %v5188_v5, %s3722_s26 }
 0x446   : > { %2248 = vrot.lane.b32.xlu1 %v5140_v54, %s3728_s10 }
 0x448   : > { %2294 = vrot.lane.b32.xlu0 %v5188_v5, %s3726_s30 }
 0x44a   : > { %2154 = vrot.lane.b32.xlu1 %v5192_v1, %s3722_s26 }
 0x44c   : > { %2269 = vrot.lane.b32.xlu0 %v5188_v5, %s3727_s9 }
 0x44e   : > { %2246 = vrot.lane.b32.xlu1 %v5116_v22, %s3728_s10 }
 0x450   : > { %2244 = vrot.lane.b32.xlu0 %v5188_v5, %s3728_s10 }
 0x452   : > { %2225 = vrot.lane.b32.xlu1 %v5164_v44, %s3729_s11 }
 0x454   : > { %2240 = vrot.lane.b32.xlu0 %v5136_v62, %s3728_s10 }
 0x456   : > { %2223 = vrot.lane.b32.xlu1 %v5140_v54, %s3729_s11 }
 0x458   : > { %2238 = vrot.lane.b32.xlu0 %v5114_v38, %s3728_s10 }
 0x45a   : > { %2302 = vrot.lane.b32.xlu1 %v5192_v1, %s3726_s30 }
 0x45c   : > { %2219 = vrot.lane.b32.xlu0 %v5188_v5, %s3729_s11 }
 0x45e   : > { %2325 = vrot.lane.b32.xlu1 %v5164_v44, %s3718_s22 }
 0x460   : > { %2217 = vrot.lane.b32.xlu0 %v5160_v48, %s3729_s11 }
 0x462   : > { %2277 = vrot.lane.b32.xlu1 %v5192_v1, %s3727_s9  ;;  %s3730_s9 = smov 115  }
 0x464   : > { %2319 = vrot.lane.b32.xlu0 %v5188_v5, %s3718_s22 }
 0x466   : > { %2221 = vrot.lane.b32.xlu1 %v5116_v22, %s3729_s11 }
 0x468   : > { %2215 = vrot.lane.b32.xlu0 %v5136_v62, %s3729_s11 }
 0x46a   : > { %2252 = vrot.lane.b32.xlu1 %v5192_v1, %s3728_s10  ;;  %s3731_s10 = smov 122  }
 0x46c   : > { %2317 = vrot.lane.b32.xlu0 %v5160_v48, %s3718_s22 }
 0x46e   : > { %v5237_v35 = vpop.permute.xlu0 %2188  ;;  %2227 = vrot.lane.b32.xlu1 %v5192_v1, %s3729_s11 }
 0x470   : > { %v5240_v13 = vpop.permute.xlu1 %2196  ;;  %2213 = vrot.lane.b32.xlu0 %v5114_v38, %s3729_s11  ;;  %s3732_s11 = smov 116  }
 0x471   : > { %v2209_v52 = vsel %vm2204_vm3, %v5240_v13, %v5237_v35  ;;  %v2205_v10 = vsel %vm2204_vm3, %v5237_v35, %v5240_v13 }
 0x472   : > { %v5243_v56 = vpop.permute.xlu0 %2164  ;;  %2327 = vrot.lane.b32.xlu1 %v5192_v1, %s3718_s22 }
 0x474   : > { %v5247_v7 = vpop.permute.xlu1 %2172  ;;  %2315 = vrot.lane.b32.xlu0 %v5136_v62, %s3718_s22 }
 0x476   : > { %v5251_v3 = vpop.permute.xlu0 %2140  ;;  %2323 = vrot.lane.b32.xlu1 %v5140_v54, %s3718_s22 }
 0x478   : > { %v5255_v47 = vpop.permute.xlu1 %2148  ;;  %2313 = vrot.lane.b32.xlu0 %v5114_v38, %s3718_s22 }
 0x47a   : > { %v5262_v41 = vpop.permute.xlu0 %2288  ;;  %2321 = vrot.lane.b32.xlu1 %v5116_v22, %s3718_s22 }
 0x47c   : > { %v5269_v8 = vpop.permute.xlu1 %2296  ;;  %2339 = vperm.xlu0 %3453, %v3223_v33  }
 0x47e   : > { %v5274_v9 = vpop.permute.xlu0 %2263  ;;  %2344 = vperm.xlu1 %3454, %v3224_v37  }
 0x480   : > { %v5279_v43 = vpop.permute.xlu1 %2271  ;;  %2349 = vperm.xlu0 %3453, %v3225_v0  }
 0x482   : > { %v2191_v50 = vpop.permute.xlu0 %2190  ;;  %2354 = vperm.xlu1 %3454, %v3226_v15   ;;  %v2184_v15 = vsel %vm644_vm1, %v5247_v7, %v5243_v56 }
 0x484   : > { %v2199_v11 = vpop.permute.xlu1 %2198 }
 0x485   : > { %v2210_v24 = vsel %vm2204_vm3, %v2199_v11, %v2191_v50  ;;  %v2206_v49 = vsel %vm2204_vm3, %v2191_v50, %v2199_v11  ;;  %v2180_v11 = vsel %vm644_vm1, %v5243_v56, %v5247_v7 }
 0x486   : > { %v2167_v51 = vpop.permute.xlu0 %2166 }
 0x488   : > { %v2175_v20 = vpop.permute.xlu1 %2174 }
 0x489   : > { %v2185_v35 = vsel %vm644_vm1, %v2175_v20, %v2167_v51  ;;  %v2181_v0 = vsel %vm644_vm1, %v2167_v51, %v2175_v20 }
 0x48a   : > { %v5281_v42 = vpop.permute.xlu0 %2142 }
 0x48c   : > { %v5283_v36 = vpop.permute.xlu1 %2150 }
 0x48d   : > { %v2161_v56 = vsel %vm619_vm13, %v5283_v36, %v5281_v42 }
 0x48e   : > { %v5285_v23 = vpop.permute.xlu0 %2290 }
 0x490   : > { %v5287_v55 = vpop.permute.xlu1 %2298 }
 0x492   : > { %v2266_v26 = vpop.permute.xlu0 %2265 }
 0x494   : > { %v2274_v19 = vpop.permute.xlu1 %2273 }
 0x495   : > { %v5292_v58 = vsel %vm2279_vm0, %v2266_v26, %v2274_v19  ;;  %v5296_v32 = vsel %vm2279_vm0, %v2274_v19, %v2266_v26 }
 0x496   : > { %v2193_v31 = vpop.permute.xlu0 %2192 }
 0x498   : > { %v2201_v63 = vpop.permute.xlu1 %2200 }
 0x499   : > { %v2211_v17 = vsel %vm2204_vm3, %v2201_v63, %v2193_v31  ;;  %v2207_v27 = vsel %vm2204_vm3, %v2193_v31, %v2201_v63 }
 0x49a   : > { %v2169_v16 = vpop.permute.xlu0 %2168 }
 0x49c   : > { %v2177_v34 = vpop.permute.xlu1 %2176 }
 0x49d   : > { %v2186_v59 = vsel %vm644_vm1, %v2177_v34, %v2169_v16  ;;  %v2182_v33 = vsel %vm644_vm1, %v2169_v16, %v2177_v34  ;;  %v2157_v16 = vsel %vm619_vm13, %v5281_v42, %v5283_v36  ;;  %v2160_v34 = vsel %vm619_vm13, %v5255_v47, %v5251_v3 }
 0x49e   : > { %v2145_v2 = vpop.permute.xlu0 %2144 }
 0x4a0   : > { %v2153_v57 = vpop.permute.xlu1 %2152 }
 0x4a1   : > { %v2162_v19 = vsel %vm619_vm13, %v2153_v57, %v2145_v2  ;;  %v2158_v31 = vsel %vm619_vm13, %v2145_v2, %v2153_v57  ;;  %v2156_v57 = vsel %vm619_vm13, %v5251_v3, %v5255_v47 }
 0x4a2   : > { %v5298_v39 = vpop.permute.xlu0 %2292 }
 0x4a4   : > { %v5300_v14 = vpop.permute.xlu1 %2300 }
 0x4a6   : > { %v5302_v12 = vpop.permute.xlu0 %2267 }
 0x4a8   : > { %v5304_v53 = vpop.permute.xlu1 %2275 }
 0x4aa   : > { %v2195_v18 = vpop.permute.xlu0 %2194 }
 0x4ac   : > { %v2203_v40 = vpop.permute.xlu1 %2202 }
 0x4ad   : > { %v2208_v60 = vsel %vm2204_vm3, %v2195_v18, %v2203_v40  ;;  %v2212_v25 = vsel %vm2204_vm3, %v2203_v40, %v2195_v18 }
 0x4ae   : > { %v5311_v30 = vpop.permute.xlu0 %2242  ;;  %2370 = vmatprep.subr.mxu0 %v2212_v25  ;;  %v2286_v25 = vsel %vm2279_vm0, %v5304_v53, %v5302_v12 }
 0x4af   : > { %2371 = vmatpush1.msra.mxu0 %v2208_v60 }
 0x4b0   : > { %2372 = vmatprep.subr.mxu0 %v2211_v17  ;;  %v5317_v61 = vpop.permute.xlu1 %2250 }
 0x4b1   : > { %2373 = vmatpush1.msra.mxu0 %v2207_v27  ;;  %v2284_v27 = vsel %vm2279_vm0, %v5279_v43, %v5274_v9 }
 0x4b2   : > { %v2171_v6 = vpop.permute.xlu0 %2170  ;;  %2374 = vmatprep.subr.mxu0 %v2210_v24 }
 0x4b3   : > { %2375 = vmatpush1.msra.mxu0 %v2206_v49 }
 0x4b4   : > { %2376 = vmatprep.subr.mxu0 %v2209_v52  ;;  %v2179_v46 = vpop.permute.xlu1 %2178 }
 0x4b5   : > { %v2183_v28 = vsel %vm644_vm1, %v2171_v6, %v2179_v46  ;;  %2377 = vmatpush1.msra.mxu0 %v2205_v10  ;;  %v2187_v21 = vsel %vm644_vm1, %v2179_v46, %v2171_v6  ;;  %vm2304_vm1 = vcmp.lt.s32.totalorder %v4001_v29, 97  ;;  %v2261_v6 = vsel %vm2254_vm4, %v5317_v61, %v5311_v30 }
 0x4b6   : > { %v2147_v45 = vpop.permute.xlu0 %2146  ;;  %2378 = vmatprep.subr.mxu0 %v2187_v21  ;;  %v2306_v47 = vsel %vm2304_vm1, %v5285_v23, %v5287_v55  ;;  %v2305_v40 = vsel %vm2304_vm1, %v5262_v41, %v5269_v8 }
 0x4b7   : > { %2379 = vmatpush1.msra.mxu0 %v2183_v28 }
 0x4b8   : > { %2380 = vmatprep.subr.mxu0 %v2186_v59  ;;  %v5339_v37 = vpop.permute.xlu1 %2248 }
 0x4b9   : > { %2381 = vmatpush1.msra.mxu0 %v2182_v33 }
 0x4ba   : > { %v2295_v13 = vpop.permute.xlu0 %2294  ;;  %2382 = vmatprep.subr.mxu0 %v2185_v35 }
 0x4bb   : > { %2383 = vmatpush1.msra.mxu0 %v2181_v0 }
 0x4bc   : > { %2384 = vmatprep.subr.mxu0 %v2184_v15  ;;  %v2155_v50 = vpop.permute.xlu1 %2154 }
 0x4bd   : > { %v2159_v26 = vsel %vm619_vm13, %v2147_v45, %v2155_v50  ;;  %2385 = vmatpush1.msra.mxu0 %v2180_v11  ;;  %v2163_v51 = vsel %vm619_vm13, %v2155_v50, %v2147_v45 }
 0x4be   : > { %v2270_v20 = vpop.permute.xlu0 %2269  ;;  %2386 = vmatprep.subr.mxu0 %v2163_v51 }
 0x4bf   : > { %2387 = vmatpush1.msra.mxu0 %v2159_v26 }
 0x4c0   : > { %2388 = vmatprep.subr.mxu0 %v2162_v19  ;;  %v5361_v63 = vpop.permute.xlu1 %2246  ;;  %v2091_v19 = vld [vmem:[%s5942_s2] sm:$0xff] }
 0x4c1   : > { %2389 = vmatpush1.msra.mxu0 %v2158_v31 }
 0x4c2   : > { %v5367_v7 = vpop.permute.xlu0 %2244  ;;  %2390 = vmatprep.subr.mxu0 %v2161_v56 }
 0x4c3   : > { %2391 = vmatpush1.msra.mxu0 %v2157_v16 }
 0x4c4   : > { %2392 = vmatprep.subr.mxu0 %v2160_v34  ;;  %v5377_v2 = vpop.permute.xlu1 %2225 }
 0x4c5   : > { %2393 = vmatpush1.msra.mxu0 %v2156_v57  ;;  %v2094_v57 = vld [vmem:[%s5942_s2 + $0x18] sm:$0xff] }
 0x4c6   : > { %v5383_v18 = vpop.permute.xlu0 %2240  ;;  %2394 = vmatprep.subr.mxu0 %v5192_v1 }
 0x4c7   : > { %2395 = vmatpush1.msra.mxu0 %v5188_v5  ;;  %v2260_v49 = vsel %vm2254_vm4, %v5339_v37, %v5383_v18  ;;  %v2256_v52 = vsel %vm2254_vm4, %v5383_v18, %v5339_v37  ;;  %v2098_v18 = vld [vmem:[%s5942_s2 + $0x38] sm:$0xff] }
 0x4c8   : > { %2396 = vmatprep.subr.mxu0 %v5164_v44  ;;  %v5388_v42 = vpop.permute.xlu1 %2223 }
 0x4c9   : > { %2397 = vmatpush1.msra.mxu0 %v5160_v48 }
 0x4ca   : > { %v5391_v36 = vpop.permute.xlu0 %2238  ;;  %2398 = vmatprep.subr.mxu0 %v5140_v54 }
 0x4cb   : > { %2399 = vmatpush1.msra.mxu0 %v5136_v62  ;;  %v2311_v62 = vsel %vm2304_vm1, %v5300_v14, %v5298_v39 }
 0x4cc   : > { %2400 = vmatprep.subr.mxu0 %v5116_v22  ;;  %v2303_v3 = vpop.permute.xlu1 %2302  ;;  %v2307_v22 = vsel %vm2304_vm1, %v5298_v39, %v5300_v14  ;;  %v2309_v39 = vsel %vm2304_vm1, %v5269_v8, %v5262_v41  ;;  %v2282_v41 = vsel %vm2279_vm0, %v5302_v12, %v5304_v53  ;;  %v2280_v12 = vsel %vm2279_vm0, %v5274_v9, %v5279_v43 }
 0x4cd   : > { %v2308_v5 = vsel %vm2304_vm1, %v2295_v13, %v2303_v3  ;;  %2401 = vmatpush1.msra.mxu0 %v5114_v38  ;;  %v2312_v44 = vsel %vm2304_vm1, %v2303_v3, %v2295_v13  ;;  %v2310_v38 = vsel %vm2304_vm1, %v5287_v55, %v5285_v23  ;;  %v2257_v9 = vsel %vm2254_vm4, %v5311_v30, %v5317_v61  ;;  %v2101_v3 = vld [vmem:[%s5942_s2 + $0x50] sm:$0xff] }
 0x4ce   : > { %v2220_v48 = vpop.permute.xlu0 %2219  ;;  %2402 = vmatprep.subr.mxu0 %v2312_v44  ;;  %v2259_v30 = vsel %vm2254_vm4, %v5361_v63, %v5391_v36  ;;  %v2255_v61 = vsel %vm2254_vm4, %v5391_v36, %v5361_v63  ;;  %v2097_v36 = vld [vmem:[%s5942_s2 + $0x30] sm:$0xff]  ;;  %v2100_v44 = vld [vmem:[%s5942_s2 + $0x48] sm:$0xff] }
 0x4cf   : > { %2403 = vmatpush2.msra.mxu0 %v2308_v5  ;;  %v2099_v5 = vld [vmem:[%s5942_s2 + $0x40] sm:$0xff] }
 0x4d0   : > { %2404 = vmatprep.subr.mxu0 %v2311_v62  ;;  %v5410_v54 = vpop.permute.xlu1 %2325 }
 0x4d1   : > { %2405 = vmatpush2.msra.mxu0 %v2307_v22 }
 0x4d2   : > { %v2218_v1 = vpop.permute.xlu0 %2217  ;;  %2406 = vmatprep.subr.mxu0 %v2310_v38 }
 0x4d3   : > { %2407 = vmatpush2.msra.mxu0 %v2306_v47  ;;  %v2236_v37 = vsel %vm2229_vm5, %v5377_v2, %v2218_v1  ;;  %v2232_v13 = vsel %vm2229_vm5, %v2218_v1, %v5377_v2  ;;  %v2093_v2 = vld [vmem:[%s5942_s2 + $0x10] sm:$0xff] }
 0x4d4   : > { %2408 = vmatprep.subr.mxu0 %v2309_v39  ;;  %v2278_v14 = vpop.permute.xlu1 %2277 }
 0x4d5   : > { %v2283_v60 = vsel %vm2279_vm0, %v2270_v20, %v2278_v14  ;;  %2409 = vmatpush2.msra.mxu0 %v2305_v40  ;;  %v2287_v23 = vsel %vm2279_vm0, %v2278_v14, %v2270_v20 }
 0x4d6   : > { %v2320_v55 = vpop.permute.xlu0 %2319  ;;  %2410 = vmatprep.subr.mxu0 %v2287_v23 }
 0x4d7   : > { %2411 = vmatpush2.msra.mxu0 %v2283_v60 }
 0x4d8   : > { %2412 = vmatprep.subr.mxu0 %v2286_v25  ;;  %v2222_v8 = vpop.permute.xlu1 %2221 }
 0x4d9   : > { %2413 = vmatpush2.msra.mxu0 %v2282_v41 }
 0x4da   : > { %v2216_v17 = vpop.permute.xlu0 %2215  ;;  %2414 = vmatprep.subr.mxu0 %v5296_v32 }
 0x4db   : > { %2415 = vmatpush2.msra.mxu0 %v5292_v58  ;;  %v2235_v11 = vsel %vm2229_vm5, %v5388_v42, %v2216_v17  ;;  %v2231_v51 = vsel %vm2229_vm5, %v2216_v17, %v5388_v42  ;;  %v2096_v42 = vld [vmem:[%s5942_s2 + $0x28] sm:$0xff] }
 0x4dc   : > { %2416 = vmatprep.subr.mxu0 %v2284_v27  ;;  %v2253_v24 = vpop.permute.xlu1 %2252 }
 0x4dd   : > { %v2258_v32 = vsel %vm2254_vm4, %v5367_v7, %v2253_v24  ;;  %2417 = vmatpush2.msra.mxu0 %v2280_v12  ;;  %v2262_v58 = vsel %vm2254_vm4, %v2253_v24, %v5367_v7  ;;  %v2095_v7 = vld [vmem:[%s5942_s2 + $0x20] sm:$0xff] }
 0x4de   : > { %v2318_v53 = vpop.permute.xlu0 %2317  ;;  %2418 = vmatprep.subr.mxu0 %v2262_v58 }
 0x4df   : > { %2419 = vmatpush2.msra.mxu0 %v2258_v32  ;;  %v2335_v35 = vsel %vm669_vm2, %v5410_v54, %v2318_v53  ;;  %v2331_v0 = vsel %vm669_vm2, %v2318_v53, %v5410_v54 }
 0x4e0   : > { %2420 = vmatprep.subr.mxu0 %v2261_v6  ;;  %v2228_v43 = vpop.permute.xlu1 %2227 }
 0x4e1   : > { %2421 = vmatpush2.msra.mxu0 %v2257_v9  ;;  %v2237_v21 = vsel %vm2229_vm5, %v2228_v43, %v2220_v48  ;;  %v2233_v59 = vsel %vm2229_vm5, %v2220_v48, %v2228_v43  ;;  %v2102_v48 = vld [vmem:[%s5942_s2 + $0x58] sm:$0xff] }
 0x4e2   : > { %v2214_v46 = vpop.permute.xlu0 %2213  ;;  %2422 = vmatprep.subr.mxu0 %v2260_v49 }
 0x4e3   : > { %2423 = vmatpush2.msra.mxu0 %v2256_v52  ;;  %v2234_v20 = vsel %vm2229_vm5, %v2222_v8, %v2214_v46  ;;  %v2230_v31 = vsel %vm2229_vm5, %v2214_v46, %v2222_v8 }
 0x4e4   : > { %2424 = vmatprep.subr.mxu0 %v2259_v30  ;;  %v2328_v10 = vpop.permute.xlu1 %2327 }
 0x4e5   : > { %v2332_v28 = vsel %vm669_vm2, %v2320_v55, %v2328_v10  ;;  %2425 = vmatpush2.msra.mxu0 %v2255_v61  ;;  %v2336_v45 = vsel %vm669_vm2, %v2328_v10, %v2320_v55 }
 0x4e6   : > { %v2316_v33 = vpop.permute.xlu0 %2315  ;;  %2426 = vmatprep.subr.mxu0 %v2237_v21  ;;  %2483 = vmatprep.subr.mxu1 %v2336_v45 }
 0x4e7   : > { %2427 = vmatpush2.msra.mxu0 %v2233_v59  ;;  %2484 = vmatpush1.msra.mxu1 %v2332_v28 }
 0x4e8   : > { %2428 = vmatprep.subr.mxu0 %v2236_v37  ;;  %2485 = vmatprep.subr.mxu1 %v2335_v35  ;;  %v2324_v15 = vpop.permute.xlu1 %2323 }
 0x4e9   : > { %v2330_v50 = vsel %vm669_vm2, %v2316_v33, %v2324_v15  ;;  %2429 = vmatpush2.msra.mxu0 %v2232_v13  ;;  %2486 = vmatpush1.msra.mxu1 %v2331_v0  ;;  %v2334_v26 = vsel %vm669_vm2, %v2324_v15, %v2316_v33 }
 0x4ea   : > { %2430 = vmatprep.subr.mxu0 %v2235_v11  ;;  %2487 = vmatprep.subr.mxu1 %v2334_v26  ;;  %v2314_v63 = vpop.permute.xlu0 %2313 }
 0x4eb   : > { %2431 = vmatpush2.msra.mxu0 %v2231_v51  ;;  %2488 = vmatpush1.msra.mxu1 %v2330_v50  ;;  %v2139_v51 = vld [vmem:[%s5946_s6 + $0xf8] sm:$0xff] }
 0x4ec   : > { %2432 = vmatprep.subr.mxu0 %v2234_v20  ;;  %v2322_v56 = vpop.permute.xlu1 %2321  ;;  %v2123_v20 = vld [vmem:[%s5946_s6 + $0x78] sm:$0xff] }
 0x4ed   : > { %v2329_v16 = vsel %vm669_vm2, %v2314_v63, %v2322_v56  ;;  %2433 = vmatpush2.msra.mxu0 %v2230_v31  ;;  %v2333_v34 = vsel %vm669_vm2, %v2322_v56, %v2314_v63  ;;  %v2122_v31 = vld [vmem:[%s5946_s6 + $0x70] sm:$0xff] }
 0x4ee   : > { %2435 = vmatmul.mubr.f32.vlgmr.msra.gmra.mxu0 %v2091_v19  ;;  %2489 = vmatprep.subr.mxu1 %v2333_v34  ;;  %v2138_v19 = vld [vmem:[%s5946_s6 + $0xf0] sm:$0xff] }
 0x4ef   : > { %2490 = vmatpush1.msra.mxu1 %v2329_v16  ;;  %2440 = vmatprep.mubr.f32.mxu0 %v2095_v7  ;;  %v2137_v7 = vld [vmem:[%s5946_s6 + $0xe8] sm:$0xff] }
 0x4f0   : > { %3227 = vmatmul.mubr.msk.f32.vlgmr.msra.gmra.mxu1 %vm2357_vm6, %v2093_v2  ;;  %3243 = vmatprep.subr.mxu1 %v2139_v51  ;;  %v2121_v16 = vld [vmem:[%s5946_s6 + $0x68] sm:$0xff]  ;;  %v2136_v2 = vld [vmem:[%s5946_s6 + $0xe0] sm:$0xff] }
 0x4f1   : > { %2529 = vmatprep.mubr.f32.mxu1 %v5998_v4  ;;  %3244 = vmatpush3.msra.mxu1 %v2123_v20 }
 0x4f2   : > { %2441 = vmatmul.mubr.f32.gmra.mxu0 %v2094_v57  ;;  %3245 = vmatprep.subr.mxu1 %v2138_v19  ;;  %v2120_v57 = vld [vmem:[%s5946_s6 + $0x60] sm:$0xff] }
 0x4f3   : > { %2446 = vmatprep.mubr.f32.mxu0 %v2098_v18  ;;  %3246 = vmatpush3.msra.mxu1 %v2122_v31  ;;  %v2135_v18 = vld [vmem:[%s5946_s6 + $0xd8] sm:$0xff] }
 0x4f4   : > { %3228 = vmatmul.mubr.msk.f32.gmra.mxu1 %vm2357_vm6, %v2096_v42  ;;  %3247 = vmatprep.subr.mxu1 %v2137_v7  ;;  %v2119_v42 = vld [vmem:[%s5946_s6 + $0x58] sm:$0xff] }
 0x4f5   : > { %2535 = vmatprep.mubr.f32.mxu1 %v5998_v4  ;;  %3248 = vmatpush3.msra.mxu1 %v2121_v16 }
 0x4f6   : > { %2447 = vmatmul.mubr.f32.gmra.mxu0 %v2097_v36  ;;  %3249 = vmatprep.subr.mxu1 %v2136_v2  ;;  %v2134_v36 = vld [vmem:[%s5946_s6 + $0xd0] sm:$0xff] }
 0x4f7   : > { %2452 = vmatprep.mubr.f32.mxu0 %v2101_v3  ;;  %v2340_v62 = vpop.permute.xlu0 %2339  ;;  %3250 = vmatpush3.msra.mxu1 %v2120_v57  ;;  %v2118_v3 = vld [vmem:[%s5946_s6 + $0x50] sm:$0xff] }
 0x4f8   : > { %3229 = vmatmul.mubr.msk.f32.gmra.mxu1 %vm2357_vm6, %v2099_v5  ;;  %3251 = vmatprep.subr.mxu1 %v2135_v18  ;;  %v2133_v5 = vld [vmem:[%s5946_s6 + $0xc8] sm:$0xff] }
 0x4f9   : > { %2541 = vmatprep.mubr.f32.mxu1 %v5998_v4  ;;  %v2345_v47 = vpop.permute.xlu1 %2344  ;;  %3252 = vmatpush3.msra.mxu1 %v2119_v42 }
 0x4fa   : > { %2453 = vmatmul.mubr.f32.gmra.mxu0 %v2100_v44  ;;  %3253 = vmatprep.subr.mxu1 %v2134_v36  ;;  %v2117_v44 = vld [vmem:[%s5946_s6 + $0x48] sm:$0xff] }
 0x4fb   : > { %v2350_v41 = vpop.permute.xlu0 %2349  ;;  %3254 = vmatpush3.msra.mxu1 %v2118_v3 }
 0x4fc   : > { %3230 = vmatmul.mubr.msk.f32.gmra.mxu1 %vm2357_vm6, %v2102_v48  ;;  %v2132_v48 = vld [vmem:[%s5946_s6 + $0xc0] sm:$0xff]  ;;  %3255 = vmatprep.subr.mxu1 %v2133_v5 }
 0x4fd   : > { %v2355_v49 = vpop.permute.xlu1 %2354  ;;  %3256 = vmatpush3.msra.mxu1 %v2117_v44 }
 0x4fe   : > { %3257 = vmatprep.subr.mxu1 %v2132_v48 }
 0x5ae   : > { %v2436_v22 = vpop.f32.mrf.mxu0 }
 0x5af   : > { %v2437_v54 = vadd.f32 %v2436_v22, %v2340_v62  ;;  %v2131_v22 = vld [vmem:[%s5946_s6 + $0xb8] sm:$0xff] }
 0x5b0   : > { %v2438_v38 = vpop.f32.mrf.mxu0  ;;  %v2525_v1 = vpop.f32.mrf.mxu1 }
 0x5b1   : > { %v2439_v39 = vadd.f32 %v2438_v38, %v2340_v62  ;;  %v5560_v14 = vadd.f32 %v2525_v1, %v2437_v54  ;;  %v2116_v62 = vld [vmem:[%s5946_s6 + $0x40] sm:$0xff]  ;;  %v2115_v54 = vld [vmem:[%s5946_s6 + $0x38] sm:$0xff]  ;;  %v2130_v38 = vld [vmem:[%s5946_s6 + $0xb0] sm:$0xff] }
 0x5b2   : > { %v2442_v40 = vpop.f32.mrf.mxu0  ;;  %v2527_v60 = vpop.f32.mrf.mxu1  ;;  %3258 = vmatpush3.msra.mxu1 %v2116_v62  ;;  %v2114_v1 = vld [vmem:[%s5946_s6 + $0x30] sm:$0xff] }
 0x5b3   : > { %v2443_v23 = vadd.f32 %v2442_v40, %v2345_v47  ;;  %v5562_v4 = vadd.f32 %v2527_v60, %v2439_v39  ;;  %v2548_v8 = vmax.f32 %v5560_v14, 0.0  ;;  %3259 = vmatprep.subr.mxu1 %v2131_v22  ;;  %v2113_v39 = vld [vmem:[%s5946_s6 + $0x28] sm:$0xff]  ;;  %v2128_v40 = vld [vmem:[%s5946_s6 + $0xa0] sm:$0xff] }
 0x5b4   : > { %v2444_v55 = vpop.f32.mrf.mxu0  ;;  %v2531_v25 = vpop.f32.mrf.mxu1  ;;  %3260 = vmatpush3.msra.mxu1 %v2115_v54  ;;  %v2112_v60 = vld [vmem:[%s5946_s6 + $0x20] sm:$0xff] }
 0x5b5   : > { %v2549_v17 = vmax.f32 %v5562_v4, 0.0  ;;  %v2445_v27 = vadd.f32 %v2444_v55, %v2345_v47  ;;  %v5566_v24 = vadd.f32 %v2531_v25, %v2443_v23  ;;  %v2129_v47 = vld [vmem:[%s5946_s6 + $0xa8] sm:$0xff]  ;;  %3261 = vmatprep.subr.mxu1 %v2130_v38  ;;  %v2127_v23 = vld [vmem:[%s5946_s6 + $0x98] sm:$0xff]  ;;  %v2126_v25 = vld [vmem:[%s5946_s6 + $0x90] sm:$0xff] }
 0x5b6   : > { %v2448_v12 = vpop.f32.mrf.mxu0  ;;  %v2533_v32 = vpop.f32.mrf.mxu1  ;;  %3262 = vmatpush3.msra.mxu1 %v2114_v1  ;;  %v2111_v55 = vld [vmem:[%s5946_s6 + $0x18] sm:$0xff] }
 0x5b7   : > { %v3610_v58 = vpack.i.bf16 %v2549_v17, %v2548_v8  ;;  %v2449_v53 = vadd.f32 %v2448_v12, %v2350_v41  ;;  %v5572_v6 = vadd.f32 %v2533_v32, %v2445_v27  ;;  %v2550_v52 = vmax.f32 %v5566_v24, 0.0  ;;  %3263 = vmatprep.subr.mxu1 %v2129_v47  ;;  %v2125_v27 = vld [vmem:[%s5946_s6 + $0x88] sm:$0xff] }
 0x5b8   : > { %v2450_v9 = vpop.f32.mrf.mxu0  ;;  %v2537_v43 = vpop.f32.mrf.mxu1  ;;  %3264 = vmatpush3.msra.mxu1 %v2113_v39  ;;  %v2109_v12 = vld [vmem:[%s5946_s6 + $0x8] sm:$0xff] }
 0x5b9   : > { %v2551_v46 = vmax.f32 %v5572_v6, 0.0  ;;  %v2451_v30 = vadd.f32 %v2450_v9, %v2350_v41  ;;  %v5576_v61 = vadd.f32 %v2537_v43, %v2449_v53  ;;  %3611 = vrot.lane.b32.xlu0 %v3610_v58, %s3725_s29  ;;  %3265 = vmatprep.subr.mxu1 %v2128_v40  ;;  %v2110_v41 = vld [vmem:[%s5946_s6 + $0x10] sm:$0xff]  ;;  %v2124_v58 = vld [vmem:[%s5946_s6 + $0x80] sm:$0xff] }
 0x5ba   : > { %v2454_v10 = vpop.f32.mrf.mxu0  ;;  %v2539_v28 = vpop.f32.mrf.mxu1  ;;  %3266 = vmatpush3.msra.mxu1 %v2112_v60  ;;  %v2108_v43 = vld [vmem:[%s5946_s6] sm:$0xff] }
 0x5bb   : > { %v3615_v21 = vpack.i.bf16 %v2551_v46, %v2550_v52  ;;  %v2455_v45 = vadd.f32 %v2454_v10, %v2355_v49  ;;  %v5583_v59 = vadd.f32 %v2539_v28, %v2451_v30  ;;  %v2552_v35 = vmax.f32 %v5576_v61, 0.0  ;;  %3267 = vmatprep.subr.mxu1 %v2127_v23 }
 0x5bc   : > { %v2456_v33 = vpop.f32.mrf.mxu0  ;;  %v2543_v37 = vpop.f32.mrf.mxu1  ;;  %3268 = vmatpush3.msra.mxu1 %v2111_v55 }
 0x5bd   : > { %v2553_v13 = vmax.f32 %v5583_v59, 0.0  ;;  %v2457_v0 = vadd.f32 %v2456_v33, %v2355_v49  ;;  %v5587_v15 = vadd.f32 %v2543_v37, %v2455_v45  ;;  %3616 = vrot.lane.b32.xlu1 %v3615_v21, %s3725_s29  ;;  %3269 = vmatprep.subr.mxu1 %v2126_v25 }
 0x5be   : > { %v2545_v50 = vpop.f32.mrf.mxu1  ;;  %3270 = vmatpush3.msra.mxu1 %v2110_v41 }
 0x5bf   : > { %v3620_v11 = vpack.i.bf16 %v2553_v13, %v2552_v35  ;;  %v5594_v26 = vadd.f32 %v2545_v50, %v2457_v0  ;;  %v2554_v63 = vmax.f32 %v5587_v15, 0.0  ;;  %3271 = vmatprep.subr.mxu1 %v2125_v27 }
 0x5c0   : > { %3272 = vmatpush3.msra.mxu1 %v2109_v12 }
 0x5c1   : > { %v2555_v56 = vmax.f32 %v5594_v26, 0.0  ;;  %3621 = vrot.lane.b32.xlu0 %v3620_v11, %s3725_s29  ;;  %3273 = vmatprep.subr.mxu1 %v2124_v58 }
 0x5c2   : > { %3274 = vmatpush3.msra.mxu1 %v2108_v43 }
 0x5c3   : > { %v3625_v34 = vpack.i.bf16 %v2555_v56, %v2554_v63 }
 0x5c5   : > { %3626 = vrot.lane.b32.xlu1 %v3625_v34, %s3725_s29 }
 0x62b   : > { %v3612_v32 = vpop.permute.xlu0 %3611 }
 0x62c   : > { %v3614_v53 = vunpack.i.h.bf16 %v3612_v32  ;;  %v3613_v9 = vunpack.i.l.bf16 %v3612_v32 }
 0x62e   : > { %v2572_v49 = vsel %vm2204_vm3, %v3613_v9, %v3614_v53  ;;  %v2576_v30 = vsel %vm2204_vm3, %v3614_v53, %v3613_v9 }
 0x62f   : > { %v2580_v10 = vmax.f32 %v2548_v8, %v2572_v49  ;;  %v2581_v28 = vmax.f32 %v2549_v17, %v2576_v30  ;;  %v3617_v21 = vpop.permute.xlu1 %3616 }
 0x630   : > { %v3619_v45 = vunpack.i.h.bf16 %v3617_v21  ;;  %v3618_v33 = vunpack.i.l.bf16 %v3617_v21 }
 0x631   : > { %v3630_v37 = vpack.i.bf16 %v2581_v28, %v2580_v10 }
 0x632   : > { %v2573_v0 = vsel %vm2204_vm3, %v3618_v33, %v3619_v45  ;;  %v2577_v50 = vsel %vm2204_vm3, %v3619_v45, %v3618_v33  ;;  %v2706_v45 = vld [vmem:[%s5943_s3 + $0x8] sm:$0xff] }
 0x633   : > { %v2582_v11 = vmax.f32 %v2550_v52, %v2573_v0  ;;  %v2583_v14 = vmax.f32 %v2551_v46, %v2577_v50  ;;  %v3622_v8 = vpop.permute.xlu0 %3621  ;;  %3631 = vrot.lane.b32.xlu0 %v3630_v37, %s3722_s26  ;;  %v3232_v33 = vld [vmem:[%s5944_s4 + $0x48] sm:$0xff]  ;;  %v3231_v37 = vld [vmem:[%s5944_s4 + $0x40] sm:$0xff]  ;;  %v3234_v0 = vld [vmem:[%s5944_s4 + $0x58] sm:$0xff] }
 0x634   : > { %v3624_v4 = vunpack.i.h.bf16 %v3622_v8  ;;  %v3623_v17 = vunpack.i.l.bf16 %v3622_v8  ;;  %v3233_v50 = vld [vmem:[%s5944_s4 + $0x50] sm:$0xff] }
 0x635   : > { %v3635_v51 = vpack.i.bf16 %v2583_v14, %v2582_v11 }
 0x636   : > { %v2574_v20 = vsel %vm2204_vm3, %v3623_v17, %v3624_v4  ;;  %v2578_v19 = vsel %vm2204_vm3, %v3624_v4, %v3623_v17 }
 0x637   : > { %v2584_v31 = vmax.f32 %v2552_v35, %v2574_v20  ;;  %v2585_v24 = vmax.f32 %v2553_v13, %v2578_v19  ;;  %v3627_v6 = vpop.permute.xlu1 %3626  ;;  %3636 = vrot.lane.b32.xlu1 %v3635_v51, %s3722_s26 }
 0x638   : > { %v3629_v52 = vunpack.i.h.bf16 %v3627_v6  ;;  %v3628_v46 = vunpack.i.l.bf16 %v3627_v6 }
 0x639   : > { %v3640_v7 = vpack.i.bf16 %v2585_v24, %v2584_v31 }
 0x63a   : > { %v2575_v16 = vsel %vm2204_vm3, %v3628_v46, %v3629_v52  ;;  %v2579_v34 = vsel %vm2204_vm3, %v3629_v52, %v3628_v46 }
 0x63b   : > { %v2586_v2 = vmax.f32 %v2554_v63, %v2575_v16  ;;  %v2587_v61 = vmax.f32 %v2555_v56, %v2579_v34  ;;  %3641 = vrot.lane.b32.xlu0 %v3640_v7, %s3722_s26 }
 0x63d   : > { %v3645_v59 = vpack.i.bf16 %v2587_v61, %v2586_v2 }
 0x63f   : > { %3646 = vrot.lane.b32.xlu1 %v3645_v59, %s3722_s26 }
 0x6a5   : > { %v3632_v35 = vpop.permute.xlu0 %3631 }
 0x6a6   : > { %v3634_v13 = vunpack.i.h.bf16 %v3632_v35  ;;  %v3633_v57 = vunpack.i.l.bf16 %v3632_v35 }
 0x6a8   : > { %v2604_v18 = vsel %vm619_vm13, %v3633_v57, %v3634_v13  ;;  %v2608_v42 = vsel %vm619_vm13, %v3634_v13, %v3633_v57 }
 0x6a9   : > { %v2612_v36 = vmax.f32 %v2580_v10, %v2604_v18  ;;  %v3637_v15 = vpop.permute.xlu1 %3636  ;;  %v2613_v63 = vmax.f32 %v2581_v28, %v2608_v42 }
 0x6aa   : > { %v3639_v3 = vunpack.i.h.bf16 %v3637_v15  ;;  %v3638_v26 = vunpack.i.l.bf16 %v3637_v15 }
 0x6ab   : > { %2684 = vmatprep.mubr.f32.mxu1 %v2613_v63 }
 0x6ac   : > { %2685 = vmatmul.mubr.f32.vlgmr.msra.gmra.mxu1 %v2612_v36  ;;  %v2609_v56 = vsel %vm619_vm13, %v3639_v3, %v3638_v26  ;;  %v2605_v5 = vsel %vm619_vm13, %v3638_v26, %v3639_v3  ;;  %v2705_v26 = vld [vmem:[%s5943_s3] sm:$0xff] }
 0x6ad   : > { %v3642_v44 = vpop.permute.xlu0 %3641  ;;  %v2615_v48 = vmax.f32 %v2583_v14, %v2609_v56  ;;  %v2614_v62 = vmax.f32 %v2582_v11, %v2605_v5  ;;  %v2709_v56 = vld [vmem:[%s5943_s3 + $0x20] sm:$0xff] }
 0x6ae   : > { %v3644_v22 = vunpack.i.h.bf16 %v3642_v44  ;;  %v3643_v54 = vunpack.i.l.bf16 %v3642_v44 }
 0x6af   : > { %2689 = vmatprep.mubr.f32.mxu1 %v2615_v48  ;;  %v2708_v48 = vld [vmem:[%s5943_s3 + $0x18] sm:$0xff] }
 0x6b0   : > { %2690 = vmatmul.mubr.f32.gmra.mxu1 %v2614_v62  ;;  %v2610_v38 = vsel %vm619_vm13, %v3644_v22, %v3643_v54  ;;  %v2606_v1 = vsel %vm619_vm13, %v3643_v54, %v3644_v22  ;;  %v2712_v62 = vld [vmem:[%s5943_s3 + $0x38] sm:$0xff] }
 0x6b1   : > { %v3647_v47 = vpop.permute.xlu1 %3646  ;;  %v2617_v39 = vmax.f32 %v2585_v24, %v2610_v38  ;;  %v2616_v40 = vmax.f32 %v2584_v31, %v2606_v1  ;;  %v2711_v38 = vld [vmem:[%s5943_s3 + $0x30] sm:$0xff] }
 0x6b2   : > { %v3649_v60 = vunpack.i.h.bf16 %v3647_v47  ;;  %v3648_v23 = vunpack.i.l.bf16 %v3647_v47  ;;  %v2715_v1 = vld [vmem:[%s5943_s3 + $0x50] sm:$0xff]  ;;  %v2714_v47 = vld [vmem:[%s5943_s3 + $0x48] sm:$0xff] }
 0x6b3   : > { %2694 = vmatprep.mubr.f32.mxu1 %v2617_v39  ;;  %v2707_v39 = vld [vmem:[%s5943_s3 + $0x10] sm:$0xff] }
 0x6b4   : > { %2695 = vmatmul.mubr.f32.gmra.mxu1 %v2616_v40  ;;  %v2611_v55 = vsel %vm619_vm13, %v3649_v60, %v3648_v23  ;;  %v2607_v25 = vsel %vm619_vm13, %v3648_v23, %v3649_v60  ;;  %v2710_v40 = vld [vmem:[%s5943_s3 + $0x28] sm:$0xff]  ;;  %v2713_v60 = vld [vmem:[%s5943_s3 + $0x40] sm:$0xff]  ;;  %v2716_v23 = vld [vmem:[%s5943_s3 + $0x58] sm:$0xff] }
 0x6b5   : > { %v2619_v41 = vmax.f32 %v2587_v61, %v2611_v55  ;;  %v2618_v27 = vmax.f32 %v2586_v2, %v2607_v25 }
 0x6b7   : > { %2699 = vmatprep.mubr.f32.mxu1 %v2619_v41 }
 0x6b8   : > { %2700 = vmatmul.mubr.f32.gmra.mxu1 %v2618_v27 }
 0x6b9   : > { %2898 = vmatprep.mubr.f32.mxu1 %v2706_v45 }
 0x76c   : > { %v3275_v12 = vpop.f32.mrf.mxu1 }
 0x76e   : > { %v3276_v32 = vpop.f32.mrf.mxu1 }
 0x76f   : > { %v5752_v58 = vadd.f32 %v3276_v32, %v3275_v12 }
 0x770   : > { %v3278_v53 = vpop.f32.mrf.mxu1 }
 0x771   : > { %2786 = vrot.lane.b32.xlu0 %v5752_v58, %s3730_s9  ;;  %2754 = vrot.lane.b32.xlu1 %v5752_v58, %s3731_s10 }
 0x772   : > { %v3279_v9 = vpop.f32.mrf.mxu1 }
 0x773   : > { %v5757_v43 = vadd.f32 %v3279_v9, %v3278_v53 }
 0x774   : > { %v3281_v29 = vpop.f32.mrf.mxu1 }
 0x775   : > { %2778 = vrot.lane.b32.xlu0 %v5752_v58, %s3732_s11  ;;  %2756 = vrot.lane.b32.xlu1 %v5757_v43, %s3731_s10 }
 0x776   : > { %v3282_v49 = vpop.f32.mrf.mxu1 }
 0x777   : > { %v5765_v30 = vadd.f32 %v3282_v49, %v3281_v29 }
 0x778   : > { %v3284_v10 = vpop.f32.mrf.mxu1 }
 0x779   : > { %2748 = vrot.lane.b32.xlu1 %v5757_v43, %s3717_s21  ;;  %2788 = vrot.lane.b32.xlu0 %v5757_v43, %s3730_s9 }
 0x77a   : > { %v3285_v28 = vpop.f32.mrf.mxu1 }
 0x77b   : > { %v5773_v21 = vadd.f32 %v3285_v28, %v3284_v10 }
 0x77d   : > { %2758 = vrot.lane.b32.xlu1 %v5765_v30, %s3731_s10  ;;  %2780 = vrot.lane.b32.xlu0 %v5757_v43, %s3732_s11 }
 0x781   : > { %2750 = vrot.lane.b32.xlu1 %v5765_v30, %s3717_s21  ;;  %2790 = vrot.lane.b32.xlu0 %v5765_v30, %s3730_s9 }
 0x785   : > { %2760 = vrot.lane.b32.xlu1 %v5773_v21, %s3731_s10  ;;  %2782 = vrot.lane.b32.xlu0 %v5765_v30, %s3732_s11 }
 0x789   : > { %2746 = vrot.lane.b32.xlu1 %v5752_v58, %s3717_s21  ;;  %2792 = vrot.lane.b32.xlu0 %v5773_v21, %s3730_s9 }
 0x78d   : > { %2752 = vrot.lane.b32.xlu1 %v5773_v21, %s3717_s21  ;;  %2774 = vrot.lane.b32.xlu0 %v5765_v30, %s3733_s12 }
 0x791   : > { %2742 = vrot.lane.b32.xlu1 %v5765_v30, %s3722_s26  ;;  %2784 = vrot.lane.b32.xlu0 %v5773_v21, %s3732_s11 }
 0x795   : > { %2744 = vrot.lane.b32.xlu1 %v5773_v21, %s3722_s26  ;;  %2772 = vrot.lane.b32.xlu0 %v5757_v43, %s3733_s12 }
 0x799   : > { %2740 = vrot.lane.b32.xlu1 %v5757_v43, %s3722_s26  ;;  %2776 = vrot.lane.b32.xlu0 %v5773_v21, %s3733_s12 }
 0x79d   : > { %2738 = vrot.lane.b32.xlu1 %v5752_v58, %s3722_s26  ;;  %2770 = vrot.lane.b32.xlu0 %v5752_v58, %s3733_s12 }
 0x7a1   : > { %2766 = vrot.lane.b32.xlu1 %v5765_v30, %s3734_s14  ;;  %2768 = vrot.lane.b32.xlu0 %v5773_v21, %s3734_s14 }
 0x7a5   : > { %2762 = vrot.lane.b32.xlu1 %v5752_v58, %s3734_s14  ;;  %2764 = vrot.lane.b32.xlu0 %v5757_v43, %s3734_s14 }
 0x7a9   : > { %2798 = vrot.lane.b32.xlu1 %v5765_v30, %s3735_s16  ;;  %2800 = vrot.lane.b32.xlu0 %v5773_v21, %s3735_s16 }
 0x7ad   : > { %2794 = vrot.lane.b32.xlu1 %v5752_v58, %s3735_s16  ;;  %2796 = vrot.lane.b32.xlu0 %v5757_v43, %s3735_s16 }
 0x7b1   : > { %2809 = vperm.xlu1 %3454, %v3232_v33   ;;  %2804 = vperm.xlu0 %3453, %v3231_v37  }
 0x7b5   : > { %2819 = vperm.xlu1 %3454, %v3234_v0   ;;  %2814 = vperm.xlu0 %3453, %v3233_v50  }
 0x7e3   : > { %v2787_v11 = vpop.permute.xlu0 %2786  ;;  %v2755_v14 = vpop.permute.xlu1 %2754 }
 0x7e7   : > { %v2779_v8 = vpop.permute.xlu0 %2778  ;;  %v2757_v4 = vpop.permute.xlu1 %2756 }
 0x7eb   : > { %v2749_v17 = vpop.permute.xlu1 %2748  ;;  %v2789_v51 = vpop.permute.xlu0 %2788 }
 0x7ef   : > { %v2759_v20 = vpop.permute.xlu1 %2758  ;;  %v2781_v19 = vpop.permute.xlu0 %2780 }
 0x7f3   : > { %v2751_v31 = vpop.permute.xlu1 %2750  ;;  %v2791_v24 = vpop.permute.xlu0 %2790 }
 0x7f7   : > { %v2761_v6 = vpop.permute.xlu1 %2760  ;;  %v2783_v52 = vpop.permute.xlu0 %2782 }
 0x7fb   : > { %v2747_v46 = vpop.permute.xlu1 %2746  ;;  %v2793_v7 = vpop.permute.xlu0 %2792 }
 0x7fc   : > { %3287 = vmatprep.subr.mxu1 %v2793_v7 }
 0x7fd   : > { %3288 = vmatpush3.msra.mxu1 %v2761_v6 }
 0x7fe   : > { %3289 = vmatprep.subr.mxu1 %v2791_v24  ;;  %v2736_v24 = vld [vmem:[%s5947_s7 + $0x70] sm:$0xff] }
 0x7ff   : > { %v2753_v16 = vpop.permute.xlu1 %2752  ;;  %3290 = vmatpush3.msra.mxu1 %v2759_v20  ;;  %v2775_v34 = vpop.permute.xlu0 %2774 }
 0x800   : > { %3291 = vmatprep.subr.mxu1 %v2789_v51 }
 0x801   : > { %3292 = vmatpush3.msra.mxu1 %v2757_v4 }
 0x802   : > { %3293 = vmatprep.subr.mxu1 %v2787_v11 }
 0x803   : > { %v2743_v2 = vpop.permute.xlu1 %2742  ;;  %3294 = vmatpush3.msra.mxu1 %v2755_v14  ;;  %v2785_v61 = vpop.permute.xlu0 %2784 }
 0x804   : > { %3295 = vmatprep.subr.mxu1 %v2785_v61  ;;  %v2733_v61 = vld [vmem:[%s5947_s7 + $0x58] sm:$0xff] }
 0x805   : > { %3296 = vmatpush3.msra.mxu1 %v2753_v16 }
 0x806   : > { %3297 = vmatprep.subr.mxu1 %v2783_v52 }
 0x807   : > { %v2745_v59 = vpop.permute.xlu1 %2744  ;;  %3298 = vmatpush3.msra.mxu1 %v2751_v31  ;;  %v2773_v35 = vpop.permute.xlu0 %2772  ;;  %v2737_v31 = vld [vmem:[%s5947_s7 + $0x78] sm:$0xff] }
 0x808   : > { %3299 = vmatprep.subr.mxu1 %v2781_v19  ;;  %3373 = vmatprep.subr.mxu0 %v2737_v31 }
 0x809   : > { %3300 = vmatpush3.msra.mxu1 %v2749_v17  ;;  %3374 = vmatpush3.msra.mxu0 %v2737_v31 }
 0x80a   : > { %3301 = vmatprep.subr.mxu1 %v2779_v8  ;;  %3375 = vmatprep.subr.mxu0 %v2736_v24 }
 0x80b   : > { %v2741_v13 = vpop.permute.xlu1 %2740  ;;  %3302 = vmatpush3.msra.mxu1 %v2747_v46  ;;  %v2777_v57 = vpop.permute.xlu0 %2776  ;;  %v2735_v46 = vld [vmem:[%s5947_s7 + $0x68] sm:$0xff]  ;;  %3376 = vmatpush3.msra.mxu0 %v2736_v24 }
 0x80c   : > { %3303 = vmatprep.subr.mxu1 %v2777_v57  ;;  %3377 = vmatprep.subr.mxu0 %v2735_v46  ;;  %v2729_v57 = vld [vmem:[%s5947_s7 + $0x38] sm:$0xff] }
 0x80d   : > { %3304 = vmatpush3.msra.mxu1 %v2745_v59  ;;  %3378 = vmatpush3.msra.mxu0 %v2735_v46  ;;  %v2732_v59 = vld [vmem:[%s5947_s7 + $0x50] sm:$0xff] }
 0x80e   : > { %3305 = vmatprep.subr.mxu1 %v2775_v34  ;;  %v2734_v34 = vld [vmem:[%s5947_s7 + $0x60] sm:$0xff] }
 0x80f   : > { %v2739_v18 = vpop.permute.xlu1 %2738  ;;  %3306 = vmatpush3.msra.mxu1 %v2743_v2  ;;  %v2771_v42 = vpop.permute.xlu0 %2770  ;;  %3379 = vmatprep.subr.mxu0 %v2734_v34 }
 0x810   : > { %3307 = vmatprep.subr.mxu1 %v2773_v35  ;;  %3380 = vmatpush3.msra.mxu0 %v2734_v34  ;;  %v2731_v35 = vld [vmem:[%s5947_s7 + $0x48] sm:$0xff] }
 0x811   : > { %3308 = vmatpush3.msra.mxu1 %v2741_v13  ;;  %3381 = vmatprep.subr.mxu0 %v2733_v61  ;;  %v2730_v13 = vld [vmem:[%s5947_s7 + $0x40] sm:$0xff] }
 0x812   : > { %3309 = vmatprep.subr.mxu1 %v2771_v42  ;;  %3382 = vmatpush3.msra.mxu0 %v2733_v61  ;;  %v2727_v42 = vld [vmem:[%s5947_s7 + $0x28] sm:$0xff] }
 0x813   : > { %v2767_v36 = vpop.permute.xlu1 %2766  ;;  %3310 = vmatpush3.msra.mxu1 %v2739_v18  ;;  %v2769_v15 = vpop.permute.xlu0 %2768  ;;  %3383 = vmatprep.subr.mxu0 %v2732_v59  ;;  %v2728_v18 = vld [vmem:[%s5947_s7 + $0x30] sm:$0xff] }
 0x814   : > { %3311 = vmatprep.subr.mxu1 %v2769_v15  ;;  %3384 = vmatpush3.msra.mxu0 %v2732_v59  ;;  %v2725_v15 = vld [vmem:[%s5947_s7 + $0x18] sm:$0xff] }
 0x815   : > { %3312 = vmatpush3.msra.mxu1 %v5773_v21  ;;  %3385 = vmatprep.subr.mxu0 %v2731_v35 }
 0x816   : > { %3313 = vmatprep.subr.mxu1 %v2767_v36  ;;  %3386 = vmatpush3.msra.mxu0 %v2731_v35  ;;  %v2726_v36 = vld [vmem:[%s5947_s7 + $0x20] sm:$0xff] }
 0x817   : > { %v2763_v63 = vpop.permute.xlu1 %2762  ;;  %3314 = vmatpush3.msra.mxu1 %v5765_v30  ;;  %v2765_v3 = vpop.permute.xlu0 %2764  ;;  %3387 = vmatprep.subr.mxu0 %v2730_v13 }
 0x818   : > { %3315 = vmatprep.subr.mxu1 %v2765_v3  ;;  %3388 = vmatpush3.msra.mxu0 %v2730_v13  ;;  %v2723_v3 = vld [vmem:[%s5947_s7 + $0x8] sm:$0xff] }
 0x819   : > { %3316 = vmatpush3.msra.mxu1 %v5757_v43  ;;  %3389 = vmatprep.subr.mxu0 %v2729_v57 }
 0x81a   : > { %3317 = vmatprep.subr.mxu1 %v2763_v63  ;;  %3390 = vmatpush3.msra.mxu0 %v2729_v57  ;;  %v2724_v63 = vld [vmem:[%s5947_s7 + $0x10] sm:$0xff] }
 0x81b   : > { %v2799_v5 = vpop.permute.xlu1 %2798  ;;  %3318 = vmatpush3.msra.mxu1 %v5752_v58  ;;  %v2801_v44 = vpop.permute.xlu0 %2800  ;;  %3391 = vmatprep.subr.mxu0 %v2728_v18 }
 0x81c   : > { %2899 = vmatmul.mubr.f32.vlgmr.msra.gmra.mxu1 %v2705_v26  ;;  %3359 = vmatprep.subr.mxu1 %v2801_v44  ;;  %v2722_v26 = vld [vmem:[%s5947_s7] sm:$0xff] }
 0x81d   : > { %3360 = vmatpush3.msra.mxu1 %v2801_v44  ;;  %2903 = vmatprep.mubr.f32.mxu1 %v2709_v56 }
 0x81e   : > { %3361 = vmatprep.subr.mxu1 %v2799_v5  ;;  %3392 = vmatpush3.msra.mxu0 %v2728_v18 }
 0x81f   : > { %3362 = vmatpush3.msra.mxu1 %v2799_v5  ;;  %v2797_v22 = vpop.permute.xlu0 %2796  ;;  %v2795_v54 = vpop.permute.xlu1 %2794  ;;  %3393 = vmatprep.subr.mxu0 %v2727_v42 }
 0x820   : > { %2904 = vmatmul.mubr.f32.gmra.mxu1 %v2708_v48  ;;  %3363 = vmatprep.subr.mxu1 %v2797_v22 }
 0x821   : > { %3364 = vmatpush3.msra.mxu1 %v2797_v22  ;;  %2908 = vmatprep.mubr.f32.mxu1 %v2712_v62 }
 0x822   : > { %3365 = vmatprep.subr.mxu1 %v2795_v54  ;;  %3394 = vmatpush3.msra.mxu0 %v2727_v42 }
 0x823   : > { %3366 = vmatpush3.msra.mxu1 %v2795_v54  ;;  %3395 = vmatprep.subr.mxu0 %v2726_v36 }
 0x824   : > { %2909 = vmatmul.mubr.f32.gmra.mxu1 %v2711_v38  ;;  %3396 = vmatpush3.msra.mxu0 %v2726_v36 }
 0x825   : > { %2913 = vmatprep.mubr.f32.mxu1 %v2715_v1  ;;  %3397 = vmatprep.subr.mxu0 %v2725_v15 }
 0x826   : > { %3398 = vmatpush3.msra.mxu0 %v2725_v15 }
 0x827   : > { %3399 = vmatprep.subr.mxu0 %v2724_v63 }
 0x828   : > { %2914 = vmatmul.mubr.f32.gmra.mxu1 %v2714_v47  ;;  %3400 = vmatpush3.msra.mxu0 %v2724_v63 }
 0x829   : > { %3367 = vmatprep.mubr.msk.f32.mxu1 %vm2357_vm6, %v2707_v39  ;;  %3401 = vmatprep.subr.mxu0 %v2723_v3 }
 0x82a   : > { %3402 = vmatpush3.msra.mxu0 %v2723_v3 }
 0x82b   : > { %3403 = vmatprep.subr.mxu0 %v2722_v26 }
 0x82c   : > { %3368 = vmatmul.mubr.msk.f32.vlgmr.msra.gmra.mxu1 %vm2357_vm6, %v2710_v40  ;;  %v2810_v53 = vpop.permute.xlu1 %2809  ;;  %v2805_v29 = vpop.permute.xlu0 %2804  ;;  %3404 = vmatpush3.msra.mxu0 %v2722_v26 }
 0x82d   : > { %3370 = vmatprep.mubr.msk.f32.mxu1 %vm2357_vm6, %v2713_v60 }
 0x830   : > { %3371 = vmatmul.mubr.msk.f32.gmra.mxu1 %vm2357_vm6, %v2716_v23  ;;  %v2820_v37 = vpop.permute.xlu1 %2819  ;;  %v2815_v14 = vpop.permute.xlu0 %2814 }
 0x8dc   : > { %v3319_v55 = vpop.f32.mrf.mxu1 }
 0x8de   : > { %v3320_v25 = vpop.f32.mrf.mxu1 }
 0x8df   : > { %v3321_v43 = vadd.f32 %v3320_v25, %v3319_v55 }
 0x8e0   : > { %v3322_v41 = vpop.f32.mrf.mxu1 }
 0x8e1   : > { %v2901_v33 = vadd.f32 %v3321_v43, %v2805_v29 }
 0x8e2   : > { %v3323_v27 = vpop.f32.mrf.mxu1 }
 0x8e3   : > { %v3324_v58 = vadd.f32 %v3323_v27, %v3322_v41 }
 0x8e4   : > { %v3325_v12 = vpop.f32.mrf.mxu1 }
 0x8e5   : > { %v2906_v10 = vadd.f32 %v3324_v58, %v2810_v53 }
 0x8e6   : > { %v3326_v32 = vpop.f32.mrf.mxu1 }
 0x8e7   : > { %v3327_v21 = vadd.f32 %v3326_v32, %v3325_v12 }
 0x8e8   : > { %v3328_v9 = vpop.f32.mrf.mxu1 }
 0x8e9   : > { %v2911_v20 = vadd.f32 %v3327_v21, %v2815_v14 }
 0x8ea   : > { %v3329_v49 = vpop.f32.mrf.mxu1 }
 0x8eb   : > { %v3330_v30 = vadd.f32 %v3329_v49, %v3328_v9 }
 0x8ec   : > { %v3369_v28 = vpop.f32.mrf.mxu1 }
 0x8ed   : > { %v5860_v45 = vadd.f32 %v3369_v28, %v2906_v10  ;;  %v2916_v11 = vadd.f32 %v3330_v30, %v2820_v37 }
 0x8ee   : > { %v2985_v0 = vpop.f32.mrf.mxu1 }
 0x8ef   : > { %v5862_v50 = vadd.f32 %v2985_v0, %v2901_v33  ;;  %v3005_v4 = vmax.f32 %v5860_v45, 0.0 }
 0x8f0   : > { %v3372_v8 = vpop.f32.mrf.mxu1 }
 0x8f1   : > { %v3004_v17 = vmax.f32 %v5862_v50, 0.0  ;;  %v5866_v51 = vadd.f32 %v3372_v8, %v2916_v11 }
 0x8f2   : > { %v2995_v19 = vpop.f32.mrf.mxu1 }
 0x8f3   : > { %v3650_v6 = vpack.i.bf16 %v3005_v4, %v3004_v17  ;;  %v5878_v52 = vadd.f32 %v2995_v19, %v2911_v20  ;;  %v3007_v7 = vmax.f32 %v5866_v51, 0.0 }
 0x8f5   : > { %v3006_v16 = vmax.f32 %v5878_v52, 0.0  ;;  %3651 = vrot.lane.b32.xlu0 %v3650_v6, %s3731_s10 }
 0x8f7   : > { %v3655_v2 = vpack.i.bf16 %v3007_v7, %v3006_v16 }
 0x8f9   : > { %3656 = vrot.lane.b32.xlu1 %v3655_v2, %s3731_s10  ;;  %s320_s10 = scalar_lea.vmem %s5948_s8, %s3241_s15 }
 0x967   : > { %v3652_v56 = vpop.permute.xlu0 %3651 }
 0x968   : > { %v3654_v5 = vunpack.i.h.bf16 %v3652_v56  ;;  %v3653_v44 = vunpack.i.l.bf16 %v3652_v56 }
 0x96a   : > { %v3017_v48 = vmax.f32 %v3005_v4, %v3654_v5  ;;  %v3016_v62 = vmax.f32 %v3004_v17, %v3653_v44 }
 0x96b   : > { %v3657_v22 = vpop.permute.xlu1 %3656 }
 0x96c   : > { %v3660_v54 = vpack.i.bf16 %v3017_v48, %v3016_v62  ;;  %v3659_v38 = vunpack.i.h.bf16 %v3657_v22  ;;  %v3658_v1 = vunpack.i.l.bf16 %v3657_v22 }
 0x96e   : > { %v3019_v47 = vmax.f32 %v3007_v7, %v3659_v38  ;;  %v3018_v39 = vmax.f32 %v3006_v16, %v3658_v1  ;;  %3661 = vrot.lane.b32.xlu0 %v3660_v54, %s3722_s26 }
 0x970   : > { %v3665_v40 = vpack.i.bf16 %v3019_v47, %v3018_v39 }
 0x972   : > { %3666 = vrot.lane.b32.xlu1 %v3665_v40, %s3722_s26 }
 0x9e0   : > { %v3662_v60 = vpop.permute.xlu0 %3661 }
 0x9e1   : > { %v3664_v23 = vunpack.i.h.bf16 %v3662_v60  ;;  %v3663_v55 = vunpack.i.l.bf16 %v3662_v60 }
 0x9e3   : > { %v3029_v25 = vmax.f32 %v3017_v48, %v3664_v23  ;;  %v3028_v41 = vmax.f32 %v3016_v62, %v3663_v55 }
 0x9e4   : > { %v3667_v27 = vpop.permute.xlu1 %3666 }
 0x9e5   : > { %v3669_v12 = vunpack.i.h.bf16 %v3667_v27  ;;  %v3668_v32 = vunpack.i.l.bf16 %v3667_v27  ;;  %3405 = vmatprep.mubr.f32.mxu0 %v3028_v41 }
 0x9e6   : > { %3406 = vmatmul.mubr.f32.vlgmr.msra.gmra.mxu0 %v3029_v25 }
 0x9e7   : > { %v3031_v58 = vmax.f32 %v3019_v47, %v3669_v12  ;;  %v3030_v53 = vmax.f32 %v3018_v39, %v3668_v32 }
 0x9e9   : > { %3408 = vmatprep.mubr.f32.mxu0 %v3030_v53 }
 0x9ea   : > { %3409 = vmatmul.mubr.f32.gmra.mxu0 %v3031_v58 }
 0xaa6   : > { %v3407_v9 = vpop.f32.mrf.mxu0 }
 0xaa7   : > { %3118 = vst [vmem:[%s320_s10 + $0x8] sm:$0xff] %v3407_v9 }
 0xaa8   : > { %v3098_v43 = vpop.f32.mrf.mxu0 }
 0xaa9   : > { %3117 = vst [vmem:[%s320_s10] sm:$0xff] %v3098_v43 }
 0xaaa   : > { %v3410_v29 = vpop.f32.mrf.mxu0 }
 0xaab   : > { %3120 = vst [vmem:[%s320_s10 + $0x18] sm:$0xff] %v3410_v29 }
 0xaac   : > { %v3108_v49 = vpop.f32.mrf.mxu0 }
 0xaad   : > { %3119 = vst [vmem:[%s320_s10 + $0x10] sm:$0xff] %v3108_v49 }
 0xaae PF: > { %s19_s27 = sadd.s32 1, %s3710_s27  }
 0xaaf   : > { %p16_p1 = scmp.ge.s32.totalorder %s19_s27, 4  }
 0xab1   :  { %18 = sbr.rel (!%p16_p1) target bundleno = 1 (0x1), region = 89 }
 0xab6   :  { %3142 = vsyncpa [#allocation3], 1 }
 0xab7   :  { %3144 = vsyncpa [#allocation3 + $0x1], 1 }

</bundles_post_ra>
